<compile_context>
chip_gen: v7x
topology: tpu7x:2x2x1
jax: 0.10.0
libtpu: 0.0.40
codegen_flags: <defaults>
</compile_context>

<pallas_src>
import math
import numpy as np
import jax
import jax.numpy as jnp
from jax.experimental import pallas as pl
from jax.experimental.pallas import tpu as pltpu

# ---------------- small synthetic BERT config ----------------
VOCAB = 50
HIDDEN = 32
N_HEADS = 4
HEAD_DIM = HIDDEN // N_HEADS
INTERMEDIATE = 64
N_LAYERS = 2
MAX_POS = 32
TYPE_VOCAB = 2
NUM_LABELS = 2
LN_EPS = 1e-12
PAD_ID, CLS_ID, SEP_ID = 0, 2, 3
MAX_LENGTH = 16                      # BertClassifier.max_length (small)
NEG_INF = -1e9                       # finite stand-in for float('-inf') mask


# ---------------- kernel helpers ----------------
def _layer_norm(x, gamma, beta):
    # one-pass statistics E[x], E[x^2]; clamp var >= 0 (f32 cancellation safety)
    mu = jnp.mean(x, axis=-1, keepdims=True)
    m2 = jnp.mean(x * x, axis=-1, keepdims=True)
    var = jnp.maximum(m2 - mu * mu, 0.0)
    return (x - mu) * jax.lax.rsqrt(var + LN_EPS) * gamma + beta


# ---------------- fused forward kernel ----------------
def bert_fused_kernel(x_ref, mask_ref,
                      emb_g_ref, emb_b_ref,
                      wqkv_ref, bqkv_ref, wo_ref, bo_ref,
                      ln1_g_ref, ln1_b_ref,
                      wi_ref, bi_ref, wo2_ref, bo2_ref,
                      ln2_g_ref, ln2_b_ref,
                      wp_ref, bp_ref, wc_ref, bc_ref,
                      out_ref):
    B, _, S = mask_ref.shape                    # mask is (B, 1, S) additive key mask
    hidden = x_ref.shape[-1]
    n_layers = wqkv_ref.shape[0]
    n_heads = N_HEADS
    head_dim = hidden // n_heads
    scale = 1.0 / math.sqrt(head_dim)

    mask = mask_ref[...]                        # (B, 1, S), 0 / -1e9

    # embeddings LayerNorm (word+pos+type already pre-summed outside)
    h = _layer_norm(x_ref[...], emb_g_ref[...], emb_b_ref[...])        # (B*S, H) f32

    for l in range(n_layers):                   # small, unrolled layer loop
        h_bf = h.astype(jnp.bfloat16)
        # fused QKV: single lane-dense matmul (B*S, H) @ (H, 3H) for ALL batch elements
        qkv = jnp.dot(h_bf, wqkv_ref[l],
                      preferred_element_type=jnp.float32) + bqkv_ref[l]  # (B*S, 3H) f32
        qkv_bf = qkv.astype(jnp.bfloat16)       # one cast covers Q, K, V for all heads

        # attention: batch handled by einsum batch dim (never mixes batch elements);
        # small unrolled head loop keeps head split as simple 2-D lane slices + leading
        # -dim reshapes (no 4-D transposes in-kernel).
        ctx_cols = []
        for hh in range(n_heads):
            c = hh * head_dim
            q_h = qkv_bf[:, c:c + head_dim].reshape(B, S, head_dim)
            k_h = qkv_bf[:, hidden + c:hidden + c + head_dim].reshape(B, S, head_dim)
            v_h = qkv_bf[:, 2 * hidden + c:2 * hidden + c + head_dim].reshape(B, S, head_dim)

            scores = jnp.einsum('bqd,bkd->bqk', q_h, k_h,
                                preferred_element_type=jnp.float32) * scale + mask
            e = jnp.exp(scores - jnp.max(scores, axis=-1, keepdims=True))
            probs = e * pl.reciprocal(jnp.sum(e, axis=-1, keepdims=True), approx=True)
            ctx_h = jnp.einsum('bqk,bkd->bqd', probs.astype(jnp.bfloat16), v_h,
                               preferred_element_type=jnp.float32)       # (B, S, DH)
            ctx_cols.append(ctx_h.reshape(B * S, head_dim))

        ctx = jnp.concatenate(ctx_cols, axis=-1)                          # (B*S, H)
        # output projection: cross-head reduction is MXU K-accumulation, no scratch
        attn_out = jnp.dot(ctx.astype(jnp.bfloat16), wo_ref[l],
                           preferred_element_type=jnp.float32) + bo_ref[l]

        # attention/hidden dropout are identity in eval mode
        h1 = _layer_norm(h + attn_out, ln1_g_ref[l], ln1_b_ref[l])

        inter = jnp.dot(h1.astype(jnp.bfloat16), wi_ref[l],
                        preferred_element_type=jnp.float32) + bi_ref[l]
        inter = jax.nn.gelu(inter, approximate=True)                      # tanh GELU
        ffn = jnp.dot(inter.astype(jnp.bfloat16), wo2_ref[l],
                      preferred_element_type=jnp.float32) + bo2_ref[l]
        h = _layer_norm(h1 + ffn, ln2_g_ref[l], ln2_b_ref[l])

    # pooler (tanh) + classifier: only on the B [CLS] rows; single output store.
    cls = h.reshape(B, S, hidden)[:, 0:1, :].reshape(B, hidden)           # (B, H)
    pooled = jnp.tanh(jnp.dot(cls.astype(jnp.bfloat16), wp_ref[...],
                              preferred_element_type=jnp.float32) + bp_ref[...])
    logits = jnp.dot(pooled.astype(jnp.bfloat16), wc_ref[...],
                     preferred_element_type=jnp.float32) + bc_ref[...]    # (B, NL)
    out_ref[...] = logits


# ---------------- pallas_call wrapper ----------------
def _full_spec(arr):
    nd = arr.ndim
    return pl.BlockSpec(arr.shape, lambda i, nd=nd: (0,) * nd)


def bert_fused_forward(x_flat, mask3, kp, B, S):
    order = ['emb_g', 'emb_b',
             'wqkv', 'bqkv', 'wo', 'bo', 'ln1_g', 'ln1_b',
             'wi', 'bi', 'wo2', 'bo2', 'ln2_g', 'ln2_b',
             'wp', 'bp', 'wc', 'bc']
    inputs = [x_flat, mask3] + [kp[k] for k in order]

    flops = int(
        2 * (B * S) * HIDDEN * (3 * HIDDEN + HIDDEN + 2 * INTERMEDIATE) * N_LAYERS
        + 4 * B * N_HEADS * S * S * HEAD_DIM * N_LAYERS
        + 2 * B * HIDDEN * (HIDDEN + NUM_LABELS))
    transcendentals = int(
        N_LAYERS * (B * N_HEADS * S * S + B * S * INTERMEDIATE) + B * HIDDEN)
    bytes_accessed = int(sum(a.size * a.dtype.itemsize for a in inputs)
                         + B * NUM_LABELS * 4)

    return pl.pallas_call(
        bert_fused_kernel,
        grid=(1,),
        in_specs=[_full_spec(a) for a in inputs],
        out_specs=pl.BlockSpec((B, NUM_LABELS), lambda i: (0, 0)),
        out_shape=jax.ShapeDtypeStruct((B, NUM_LABELS), jnp.float32),
        cost_estimate=pl.CostEstimate(flops=flops, transcendentals=transcendentals,
                                      bytes_accessed=bytes_accessed),
        compiler_params=pltpu.CompilerParams(dimension_semantics=("arbitrary",)),
    )(*inputs)


# ---------------- full forward ----------------
def bert_classifier_forward(params, kparams, input_ids, position_ids, attn_mask):
    # embedding gathers are plain-JAX glue (table lookups); everything else is in-kernel.
    B, S = input_ids.shape
    we = params['word_emb'][input_ids]                     # (B, S, H)
    pe = params['pos_emb'][position_ids]
    te = params['type_emb'][jnp.zeros_like(input_ids)]     # HF default token_type_ids=0
    x_flat = (we + pe + te).reshape(B * S, HIDDEN)         # pre-summed: 1x DMA, not 3x
    mask3 = attn_mask[:, None, :]                          # (B, 1, S) additive key mask
    return bert_fused_forward(x_flat, mask3, kparams, B, S)


# ---------------- deterministic parameter init (standard BERT layout) ----------------
def init_params(key):
    ks = iter(jax.random.split(key, 16 + 8 * N_LAYERS))

    def nrm(shape):
        return jax.random.normal(next(ks), shape, jnp.float32) * 0.02

    p = {
        'word_emb': nrm((VOCAB, HIDDEN)),
        'pos_emb':  nrm((MAX_POS, HIDDEN)),
        'type_emb': nrm((TYPE_VOCAB, HIDDEN)),
        'emb_ln_g': jnp.ones((1, HIDDEN), jnp.float32),
        'emb_ln_b': jnp.zeros((1, HIDDEN), jnp.float32),
        'pool_w': nrm((HIDDEN, HIDDEN)),
        'pool_b': jnp.zeros((1, HIDDEN), jnp.float32),
        'cls_w':  nrm((HIDDEN, NUM_LABELS)),
        'cls_b':  jnp.zeros((1, NUM_LABELS), jnp.float32),
        'layers': [],
    }
    for _ in range(N_LAYERS):
        p['layers'].append({
            'wq': nrm((HIDDEN, HIDDEN)), 'bq': jnp.zeros((1, HIDDEN), jnp.float32),
            'wk': nrm((HIDDEN, HIDDEN)), 'bk': jnp.zeros((1, HIDDEN), jnp.float32),
            'wv': nrm((HIDDEN, HIDDEN)), 'bv': jnp.zeros((1, HIDDEN), jnp.float32),
            'wo': nrm((HIDDEN, HIDDEN)), 'bo': jnp.zeros((1, HIDDEN), jnp.float32),
            'ln1_g': jnp.ones((1, HIDDEN), jnp.float32),
            'ln1_b': jnp.zeros((1, HIDDEN), jnp.float32),
            'wi': nrm((HIDDEN, INTERMEDIATE)),
            'bi': jnp.zeros((1, INTERMEDIATE), jnp.float32),
            'wo2': nrm((INTERMEDIATE, HIDDEN)),
            'bo2': jnp.zeros((1, HIDDEN), jnp.float32),
            'ln2_g': jnp.ones((1, HIDDEN), jnp.float32),
            'ln2_b': jnp.zeros((1, HIDDEN), jnp.float32),
        })
    return p


# ---------------- repack into the fused-kernel layout ----------------
def pack_params(p):
    """Stack per-layer weights on a leading layer axis, fuse QKV along the lane axis
    ((L, H, 3H)), and cast matmul weights to bf16 (biases / LN params stay f32)."""
    bf = jnp.bfloat16

    def stk(name):
        return jnp.stack([lyr[name] for lyr in p['layers']])

    wqkv = jnp.stack([jnp.concatenate([l['wq'], l['wk'], l['wv']], axis=-1)
                      for l in p['layers']])                 # (L, H, 3H)
    bqkv = jnp.stack([jnp.concatenate([l['bq'], l['bk'], l['bv']], axis=-1)
                      for l in p['layers']])                 # (L, 1, 3H)

    return {
        'emb_g': p['emb_ln_g'], 'emb_b': p['emb_ln_b'],
        'wqkv': wqkv.astype(bf), 'bqkv': bqkv,
        'wo': stk('wo').astype(bf), 'bo': stk('bo'),
        'ln1_g': stk('ln1_g'), 'ln1_b': stk('ln1_b'),
        'wi': stk('wi').astype(bf), 'bi': stk('bi'),
        'wo2': stk('wo2').astype(bf), 'bo2': stk('bo2'),
        'ln2_g': stk('ln2_g'), 'ln2_b': stk('ln2_b'),
        'wp': p['pool_w'].astype(bf), 'bp': p['pool_b'],
        'wc': p['cls_w'].astype(bf), 'bc': p['cls_b'],
    }


# ---------------- BertClassifier front-end glue ----------------
def build_inputs(queries, docs):
    """Mirrors BertClassifier.forward pre-processing: [CLS]+q+[SEP]+d, padded,
    additive attention mask with on=0.0 / off=-inf, custom position ids."""
    input_tensors, position_ids = [], []
    for q, d in zip(queries, docs):
        if len(q) + len(d) + 2 > MAX_LENGTH:
            d = d[: MAX_LENGTH - len(q) - 2]
        ids = [CLS_ID] + list(q) + [SEP_ID] + list(d)
        pos = list(range(0, len(q) + 1)) + list(range(0, len(d) + 1))
        input_tensors.append(ids)
        position_ids.append(pos)
    B = len(input_tensors)
    S = max(len(t) for t in input_tensors)
    ids_np = np.full((B, S), PAD_ID, np.int32)
    pos_np = np.zeros((B, S), np.int32)
    mask_np = np.full((B, S), NEG_INF, np.float32)
    for i, (ids, pos) in enumerate(zip(input_tensors, position_ids)):
        ids_np[i, :len(ids)] = ids
        pos_np[i, :len(pos)] = pos
        mask_np[i, :len(ids)] = 0.0
    return jnp.asarray(ids_np), jnp.asarray(pos_np), jnp.asarray(mask_np)


# ---------------- main ----------------
if __name__ == "__main__":
    key = jax.random.PRNGKey(0)
    pkey, qkey, dkey = jax.random.split(key, 3)
    params = init_params(pkey)
    kparams = pack_params(params)

    # small deterministic "query" / "document" token id lists (batch=2)
    q_lens, d_lens = [3, 4], [11, 9]
    q_tok = np.asarray(jax.random.randint(qkey, (2, max(q_lens)), 4, VOCAB))
    d_tok = np.asarray(jax.random.randint(dkey, (2, max(d_lens)), 4, VOCAB))
    queries = [list(map(int, q_tok[i, :q_lens[i]])) for i in range(2)]
    docs = [list(map(int, d_tok[i, :d_lens[i]])) for i in range(2)]

    input_ids, position_ids, attn_mask = build_inputs(queries, docs)  # (2, 16)

    logits = bert_classifier_forward(params, kparams, input_ids, position_ids, attn_mask)
    logits = jax.block_until_ready(logits)

    # mirrors `assert torch.all(classes == classes)` (no NaNs)
    assert bool(jnp.all(logits == logits))
    assert logits.shape == (2, NUM_LABELS)
    print("KERNEL_OK")
</pallas_src>

<mosaic_0001>
module attributes {stable_mosaic.version = 11 : i64} {
  func.func @bert_fused_kernel(%arg0: i32, %arg1: memref<32x32xf32, #tpu.memory_space<vmem>>, %arg2: memref<2x1x16xf32, #tpu.memory_space<vmem>>, %arg3: memref<1x32xf32, #tpu.memory_space<vmem>>, %arg4: memref<1x32xf32, #tpu.memory_space<vmem>>, %arg5: memref<2x32x96xbf16, #tpu.memory_space<vmem>>, %arg6: memref<2x1x96xf32, #tpu.memory_space<vmem>>, %arg7: memref<2x32x32xbf16, #tpu.memory_space<vmem>>, %arg8: memref<2x1x32xf32, #tpu.memory_space<vmem>>, %arg9: memref<2x1x32xf32, #tpu.memory_space<vmem>>, %arg10: memref<2x1x32xf32, #tpu.memory_space<vmem>>, %arg11: memref<2x32x64xbf16, #tpu.memory_space<vmem>>, %arg12: memref<2x1x64xf32, #tpu.memory_space<vmem>>, %arg13: memref<2x64x32xbf16, #tpu.memory_space<vmem>>, %arg14: memref<2x1x32xf32, #tpu.memory_space<vmem>>, %arg15: memref<2x1x32xf32, #tpu.memory_space<vmem>>, %arg16: memref<2x1x32xf32, #tpu.memory_space<vmem>>, %arg17: memref<32x32xbf16, #tpu.memory_space<vmem>>, %arg18: memref<1x32xf32, #tpu.memory_space<vmem>>, %arg19: memref<32x2xbf16, #tpu.memory_space<vmem>>, %arg20: memref<1x2xf32, #tpu.memory_space<vmem>>, %arg21: memref<2x2xf32, #tpu.memory_space<vmem>>) attributes {dimension_semantics = [#tpu.dimension_semantics<arbitrary>], iteration_bounds = array<i64: 1>, scalar_prefetch = 0 : i64, scratch_operands = 0 : i64, tpu.core_type = #tpu.core_type<tc>, window_params = [{pipeline_mode = #tpu.pipeline_mode<synchronous>, transform_indices = @transform_0, window_bounds = array<i64: 32, 32>}, {pipeline_mode = #tpu.pipeline_mode<synchronous>, transform_indices = @transform_1, window_bounds = array<i64: 2, 1, 16>}, {pipeline_mode = #tpu.pipeline_mode<synchronous>, transform_indices = @transform_2, window_bounds = array<i64: 1, 32>}, {pipeline_mode = #tpu.pipeline_mode<synchronous>, transform_indices = @transform_3, window_bounds = array<i64: 1, 32>}, {pipeline_mode = #tpu.pipeline_mode<synchronous>, transform_indices = @transform_4, window_bounds = array<i64: 2, 32, 96>}, {pipeline_mode = #tpu.pipeline_mode<synchronous>, transform_indices = @transform_5, window_bounds = array<i64: 2, 1, 96>}, {pipeline_mode = #tpu.pipeline_mode<synchronous>, transform_indices = @transform_6, window_bounds = array<i64: 2, 32, 32>}, {pipeline_mode = #tpu.pipeline_mode<synchronous>, transform_indices = @transform_7, window_bounds = array<i64: 2, 1, 32>}, {pipeline_mode = #tpu.pipeline_mode<synchronous>, transform_indices = @transform_8, window_bounds = array<i64: 2, 1, 32>}, {pipeline_mode = #tpu.pipeline_mode<synchronous>, transform_indices = @transform_9, window_bounds = array<i64: 2, 1, 32>}, {pipeline_mode = #tpu.pipeline_mode<synchronous>, transform_indices = @transform_10, window_bounds = array<i64: 2, 32, 64>}, {pipeline_mode = #tpu.pipeline_mode<synchronous>, transform_indices = @transform_11, window_bounds = array<i64: 2, 1, 64>}, {pipeline_mode = #tpu.pipeline_mode<synchronous>, transform_indices = @transform_12, window_bounds = array<i64: 2, 64, 32>}, {pipeline_mode = #tpu.pipeline_mode<synchronous>, transform_indices = @transform_13, window_bounds = array<i64: 2, 1, 32>}, {pipeline_mode = #tpu.pipeline_mode<synchronous>, transform_indices = @transform_14, window_bounds = array<i64: 2, 1, 32>}, {pipeline_mode = #tpu.pipeline_mode<synchronous>, transform_indices = @transform_15, window_bounds = array<i64: 2, 1, 32>}, {pipeline_mode = #tpu.pipeline_mode<synchronous>, transform_indices = @transform_16, window_bounds = array<i64: 32, 32>}, {pipeline_mode = #tpu.pipeline_mode<synchronous>, transform_indices = @transform_17, window_bounds = array<i64: 1, 32>}, {pipeline_mode = #tpu.pipeline_mode<synchronous>, transform_indices = @transform_18, window_bounds = array<i64: 32, 2>}, {pipeline_mode = #tpu.pipeline_mode<synchronous>, transform_indices = @transform_19, window_bounds = array<i64: 1, 2>}, {pipeline_mode = #tpu.pipeline_mode<synchronous>, transform_indices = @transform_20, window_bounds = array<i64: 2, 2>}]} {
    %c0 = arith.constant 0 : index
    %c0_0 = arith.constant 0 : index
    %c0_1 = arith.constant 0 : index
    %0 = vector.load %arg2[%c0, %c0_0, %c0_1] : memref<2x1x16xf32, #tpu.memory_space<vmem>>, vector<2x1x16xf32>
    %c0_2 = arith.constant 0 : index
    %c0_3 = arith.constant 0 : index
    %1 = vector.load %arg1[%c0_2, %c0_3] : memref<32x32xf32, #tpu.memory_space<vmem>>, vector<32x32xf32>
    %c0_4 = arith.constant 0 : index
    %c0_5 = arith.constant 0 : index
    %2 = vector.load %arg3[%c0_4, %c0_5] : memref<1x32xf32, #tpu.memory_space<vmem>>, vector<1x32xf32>
    %c0_6 = arith.constant 0 : index
    %c0_7 = arith.constant 0 : index
    %3 = vector.load %arg4[%c0_6, %c0_7] : memref<1x32xf32, #tpu.memory_space<vmem>>, vector<1x32xf32>
    %cst = arith.constant dense<0.000000e+00> : vector<32xf32>
    %4 = vector.multi_reduction <add>, %1, %cst [1] : vector<32x32xf32> to vector<32xf32>
    %5 = vector.shape_cast %4 : vector<32xf32> to vector<32x1xf32>
    %cst_8 = arith.constant 3.200000e+01 : f32
    %6 = vector.broadcast %cst_8 : f32 to vector<32x1xf32>
    %7 = arith.divf %5, %6 : vector<32x1xf32>
    %8 = arith.mulf %1, %1 : vector<32x32xf32>
    %cst_9 = arith.constant dense<0.000000e+00> : vector<32xf32>
    %9 = vector.multi_reduction <add>, %8, %cst_9 [1] : vector<32x32xf32> to vector<32xf32>
    %10 = vector.shape_cast %9 : vector<32xf32> to vector<32x1xf32>
    %cst_10 = arith.constant 3.200000e+01 : f32
    %11 = vector.broadcast %cst_10 : f32 to vector<32x1xf32>
    %12 = arith.divf %10, %11 : vector<32x1xf32>
    %13 = arith.mulf %7, %7 : vector<32x1xf32>
    %14 = arith.subf %12, %13 : vector<32x1xf32>
    %cst_11 = arith.constant 0.000000e+00 : f32
    %15 = vector.broadcast %cst_11 : f32 to vector<32x1xf32>
    %16 = arith.maximumf %14, %15 : vector<32x1xf32>
    %17 = vector.broadcast %7 : vector<32x1xf32> to vector<32x32xf32>
    %18 = arith.subf %1, %17 : vector<32x32xf32>
    %cst_12 = arith.constant 9.99999996E-13 : f32
    %19 = vector.broadcast %cst_12 : f32 to vector<32x1xf32>
    %20 = arith.addf %16, %19 : vector<32x1xf32>
    %21 = math.rsqrt %20 : vector<32x1xf32>
    %22 = vector.broadcast %21 : vector<32x1xf32> to vector<32x32xf32>
    %23 = arith.mulf %18, %22 : vector<32x32xf32>
    %24 = vector.broadcast %2 : vector<1x32xf32> to vector<32x32xf32>
    %25 = arith.mulf %23, %24 : vector<32x32xf32>
    %26 = vector.broadcast %3 : vector<1x32xf32> to vector<32x32xf32>
    %27 = arith.addf %25, %26 : vector<32x32xf32>
    %28 = arith.truncf %27 : vector<32x32xf32> to vector<32x32xbf16>
    %c0_13 = arith.constant 0 : index
    %c0_14 = arith.constant 0 : index
    %c0_15 = arith.constant 0 : index
    %29 = vector.load %arg5[%c0_13, %c0_14, %c0_15] : memref<2x32x96xbf16, #tpu.memory_space<vmem>>, vector<1x32x96xbf16>
    %30 = vector.shape_cast %29 : vector<1x32x96xbf16> to vector<32x96xbf16>
    %cst_16 = arith.constant dense<0.000000e+00> : vector<32x96xf32>
    %31 = tpu.matmul %28, %30, %cst_16 {dimension_numbers = #tpu.dot_dimension_numbers<[1], [0], [0], [1], [0, 0, 1, 1], [], []>} : vector<32x32xbf16>, vector<32x96xbf16>, vector<32x96xf32> -> vector<32x96xf32>
    %c0_17 = arith.constant 0 : index
    %c0_18 = arith.constant 0 : index
    %c0_19 = arith.constant 0 : index
    %32 = vector.load %arg6[%c0_17, %c0_18, %c0_19] : memref<2x1x96xf32, #tpu.memory_space<vmem>>, vector<1x1x96xf32>
    %33 = vector.shape_cast %32 : vector<1x1x96xf32> to vector<1x96xf32>
    %34 = vector.broadcast %33 : vector<1x96xf32> to vector<32x96xf32>
    %35 = arith.addf %31, %34 : vector<32x96xf32>
    %36 = arith.truncf %35 : vector<32x96xf32> to vector<32x96xbf16>
    %37 = vector.extract_strided_slice %36 {offsets = [0, 0], sizes = [32, 8], strides = [1, 1]} : vector<32x96xbf16> to vector<32x8xbf16>
    %38 = vector.shape_cast %37 : vector<32x8xbf16> to vector<2x16x8xbf16>
    %39 = vector.extract_strided_slice %36 {offsets = [0, 32], sizes = [32, 8], strides = [1, 1]} : vector<32x96xbf16> to vector<32x8xbf16>
    %40 = vector.shape_cast %39 : vector<32x8xbf16> to vector<2x16x8xbf16>
    %41 = vector.extract_strided_slice %36 {offsets = [0, 64], sizes = [32, 8], strides = [1, 1]} : vector<32x96xbf16> to vector<32x8xbf16>
    %42 = vector.shape_cast %41 : vector<32x8xbf16> to vector<2x16x8xbf16>
    "tpu.trace_start"() <{level = 10 : i32, message = "bqd,bkd->bqk"}> : () -> ()
    %cst_20 = arith.constant dense<0.000000e+00> : vector<2x16x16xf32>
    %43 = tpu.matmul %38, %40, %cst_20 {dimension_numbers = #tpu.dot_dimension_numbers<[2], [2], [1], [1], [0, 0, 0, 1, 1, 1], [0], [0]>} : vector<2x16x8xbf16>, vector<2x16x8xbf16>, vector<2x16x16xf32> -> vector<2x16x16xf32>
    "tpu.trace_stop"() : () -> ()
    %cst_21 = arith.constant 0.353553385 : f32
    %44 = vector.broadcast %cst_21 : f32 to vector<2x16x16xf32>
    %45 = arith.mulf %43, %44 : vector<2x16x16xf32>
    %46 = vector.broadcast %0 : vector<2x1x16xf32> to vector<2x16x16xf32>
    %47 = arith.addf %45, %46 : vector<2x16x16xf32>
    %cst_22 = arith.constant dense<0xFF800000> : vector<2x16xf32>
    %48 = vector.multi_reduction <maximumf>, %47, %cst_22 [2] : vector<2x16x16xf32> to vector<2x16xf32>
    %49 = vector.shape_cast %48 : vector<2x16xf32> to vector<2x16x1xf32>
    %50 = vector.broadcast %49 : vector<2x16x1xf32> to vector<2x16x16xf32>
    %51 = arith.subf %47, %50 : vector<2x16x16xf32>
    %52 = math.exp %51 : vector<2x16x16xf32>
    %cst_23 = arith.constant dense<0.000000e+00> : vector<2x16xf32>
    %53 = vector.multi_reduction <add>, %52, %cst_23 [2] : vector<2x16x16xf32> to vector<2x16xf32>
    %54 = vector.shape_cast %53 : vector<2x16xf32> to vector<2x16x1xf32>
    %55 = tpu.reciprocal %54 {approx = true} : vector<2x16x1xf32> -> vector<2x16x1xf32>
    %56 = vector.broadcast %55 : vector<2x16x1xf32> to vector<2x16x16xf32>
    %57 = arith.mulf %52, %56 : vector<2x16x16xf32>
    %58 = arith.truncf %57 : vector<2x16x16xf32> to vector<2x16x16xbf16>
    "tpu.trace_start"() <{level = 10 : i32, message = "bqk,bkd->bqd"}> : () -> ()
    %cst_24 = arith.constant dense<0.000000e+00> : vector<2x16x8xf32>
    %59 = tpu.matmul %58, %42, %cst_24 {dimension_numbers = #tpu.dot_dimension_numbers<[2], [1], [1], [2], [0, 0, 0, 1, 1, 2], [0], [0]>} : vector<2x16x16xbf16>, vector<2x16x8xbf16>, vector<2x16x8xf32> -> vector<2x16x8xf32>
    "tpu.trace_stop"() : () -> ()
    %60 = vector.shape_cast %59 : vector<2x16x8xf32> to vector<32x8xf32>
    %61 = vector.extract_strided_slice %36 {offsets = [0, 8], sizes = [32, 8], strides = [1, 1]} : vector<32x96xbf16> to vector<32x8xbf16>
    %62 = vector.shape_cast %61 : vector<32x8xbf16> to vector<2x16x8xbf16>
    %63 = vector.extract_strided_slice %36 {offsets = [0, 40], sizes = [32, 8], strides = [1, 1]} : vector<32x96xbf16> to vector<32x8xbf16>
    %64 = vector.shape_cast %63 : vector<32x8xbf16> to vector<2x16x8xbf16>
    %65 = vector.extract_strided_slice %36 {offsets = [0, 72], sizes = [32, 8], strides = [1, 1]} : vector<32x96xbf16> to vector<32x8xbf16>
    %66 = vector.shape_cast %65 : vector<32x8xbf16> to vector<2x16x8xbf16>
    "tpu.trace_start"() <{level = 10 : i32, message = "bqd,bkd->bqk"}> : () -> ()
    %cst_25 = arith.constant dense<0.000000e+00> : vector<2x16x16xf32>
    %67 = tpu.matmul %62, %64, %cst_25 {dimension_numbers = #tpu.dot_dimension_numbers<[2], [2], [1], [1], [0, 0, 0, 1, 1, 1], [0], [0]>} : vector<2x16x8xbf16>, vector<2x16x8xbf16>, vector<2x16x16xf32> -> vector<2x16x16xf32>
    "tpu.trace_stop"() : () -> ()
    %cst_26 = arith.constant 0.353553385 : f32
    %68 = vector.broadcast %cst_26 : f32 to vector<2x16x16xf32>
    %69 = arith.mulf %67, %68 : vector<2x16x16xf32>
    %70 = vector.broadcast %0 : vector<2x1x16xf32> to vector<2x16x16xf32>
    %71 = arith.addf %69, %70 : vector<2x16x16xf32>
    %cst_27 = arith.constant dense<0xFF800000> : vector<2x16xf32>
    %72 = vector.multi_reduction <maximumf>, %71, %cst_27 [2] : vector<2x16x16xf32> to vector<2x16xf32>
    %73 = vector.shape_cast %72 : vector<2x16xf32> to vector<2x16x1xf32>
    %74 = vector.broadcast %73 : vector<2x16x1xf32> to vector<2x16x16xf32>
    %75 = arith.subf %71, %74 : vector<2x16x16xf32>
    %76 = math.exp %75 : vector<2x16x16xf32>
    %cst_28 = arith.constant dense<0.000000e+00> : vector<2x16xf32>
    %77 = vector.multi_reduction <add>, %76, %cst_28 [2] : vector<2x16x16xf32> to vector<2x16xf32>
    %78 = vector.shape_cast %77 : vector<2x16xf32> to vector<2x16x1xf32>
    %79 = tpu.reciprocal %78 {approx = true} : vector<2x16x1xf32> -> vector<2x16x1xf32>
    %80 = vector.broadcast %79 : vector<2x16x1xf32> to vector<2x16x16xf32>
    %81 = arith.mulf %76, %80 : vector<2x16x16xf32>
    %82 = arith.truncf %81 : vector<2x16x16xf32> to vector<2x16x16xbf16>
    "tpu.trace_start"() <{level = 10 : i32, message = "bqk,bkd->bqd"}> : () -> ()
    %cst_29 = arith.constant dense<0.000000e+00> : vector<2x16x8xf32>
    %83 = tpu.matmul %82, %66, %cst_29 {dimension_numbers = #tpu.dot_dimension_numbers<[2], [1], [1], [2], [0, 0, 0, 1, 1, 2], [0], [0]>} : vector<2x16x16xbf16>, vector<2x16x8xbf16>, vector<2x16x8xf32> -> vector<2x16x8xf32>
    "tpu.trace_stop"() : () -> ()
    %84 = vector.shape_cast %83 : vector<2x16x8xf32> to vector<32x8xf32>
    %85 = vector.extract_strided_slice %36 {offsets = [0, 16], sizes = [32, 8], strides = [1, 1]} : vector<32x96xbf16> to vector<32x8xbf16>
    %86 = vector.shape_cast %85 : vector<32x8xbf16> to vector<2x16x8xbf16>
    %87 = vector.extract_strided_slice %36 {offsets = [0, 48], sizes = [32, 8], strides = [1, 1]} : vector<32x96xbf16> to vector<32x8xbf16>
    %88 = vector.shape_cast %87 : vector<32x8xbf16> to vector<2x16x8xbf16>
    %89 = vector.extract_strided_slice %36 {offsets = [0, 80], sizes = [32, 8], strides = [1, 1]} : vector<32x96xbf16> to vector<32x8xbf16>
    %90 = vector.shape_cast %89 : vector<32x8xbf16> to vector<2x16x8xbf16>
    "tpu.trace_start"() <{level = 10 : i32, message = "bqd,bkd->bqk"}> : () -> ()
    %cst_30 = arith.constant dense<0.000000e+00> : vector<2x16x16xf32>
    %91 = tpu.matmul %86, %88, %cst_30 {dimension_numbers = #tpu.dot_dimension_numbers<[2], [2], [1], [1], [0, 0, 0, 1, 1, 1], [0], [0]>} : vector<2x16x8xbf16>, vector<2x16x8xbf16>, vector<2x16x16xf32> -> vector<2x16x16xf32>
    "tpu.trace_stop"() : () -> ()
    %cst_31 = arith.constant 0.353553385 : f32
    %92 = vector.broadcast %cst_31 : f32 to vector<2x16x16xf32>
    %93 = arith.mulf %91, %92 : vector<2x16x16xf32>
    %94 = vector.broadcast %0 : vector<2x1x16xf32> to vector<2x16x16xf32>
    %95 = arith.addf %93, %94 : vector<2x16x16xf32>
    %cst_32 = arith.constant dense<0xFF800000> : vector<2x16xf32>
    %96 = vector.multi_reduction <maximumf>, %95, %cst_32 [2] : vector<2x16x16xf32> to vector<2x16xf32>
    %97 = vector.shape_cast %96 : vector<2x16xf32> to vector<2x16x1xf32>
    %98 = vector.broadcast %97 : vector<2x16x1xf32> to vector<2x16x16xf32>
    %99 = arith.subf %95, %98 : vector<2x16x16xf32>
    %100 = math.exp %99 : vector<2x16x16xf32>
    %cst_33 = arith.constant dense<0.000000e+00> : vector<2x16xf32>
    %101 = vector.multi_reduction <add>, %100, %cst_33 [2] : vector<2x16x16xf32> to vector<2x16xf32>
    %102 = vector.shape_cast %101 : vector<2x16xf32> to vector<2x16x1xf32>
    %103 = tpu.reciprocal %102 {approx = true} : vector<2x16x1xf32> -> vector<2x16x1xf32>
    %104 = vector.broadcast %103 : vector<2x16x1xf32> to vector<2x16x16xf32>
    %105 = arith.mulf %100, %104 : vector<2x16x16xf32>
    %106 = arith.truncf %105 : vector<2x16x16xf32> to vector<2x16x16xbf16>
    "tpu.trace_start"() <{level = 10 : i32, message = "bqk,bkd->bqd"}> : () -> ()
    %cst_34 = arith.constant dense<0.000000e+00> : vector<2x16x8xf32>
    %107 = tpu.matmul %106, %90, %cst_34 {dimension_numbers = #tpu.dot_dimension_numbers<[2], [1], [1], [2], [0, 0, 0, 1, 1, 2], [0], [0]>} : vector<2x16x16xbf16>, vector<2x16x8xbf16>, vector<2x16x8xf32> -> vector<2x16x8xf32>
    "tpu.trace_stop"() : () -> ()
    %108 = vector.shape_cast %107 : vector<2x16x8xf32> to vector<32x8xf32>
    %109 = vector.extract_strided_slice %36 {offsets = [0, 24], sizes = [32, 8], strides = [1, 1]} : vector<32x96xbf16> to vector<32x8xbf16>
    %110 = vector.shape_cast %109 : vector<32x8xbf16> to vector<2x16x8xbf16>
    %111 = vector.extract_strided_slice %36 {offsets = [0, 56], sizes = [32, 8], strides = [1, 1]} : vector<32x96xbf16> to vector<32x8xbf16>
    %112 = vector.shape_cast %111 : vector<32x8xbf16> to vector<2x16x8xbf16>
    %113 = vector.extract_strided_slice %36 {offsets = [0, 88], sizes = [32, 8], strides = [1, 1]} : vector<32x96xbf16> to vector<32x8xbf16>
    %114 = vector.shape_cast %113 : vector<32x8xbf16> to vector<2x16x8xbf16>
    "tpu.trace_start"() <{level = 10 : i32, message = "bqd,bkd->bqk"}> : () -> ()
    %cst_35 = arith.constant dense<0.000000e+00> : vector<2x16x16xf32>
    %115 = tpu.matmul %110, %112, %cst_35 {dimension_numbers = #tpu.dot_dimension_numbers<[2], [2], [1], [1], [0, 0, 0, 1, 1, 1], [0], [0]>} : vector<2x16x8xbf16>, vector<2x16x8xbf16>, vector<2x16x16xf32> -> vector<2x16x16xf32>
    "tpu.trace_stop"() : () -> ()
    %cst_36 = arith.constant 0.353553385 : f32
    %116 = vector.broadcast %cst_36 : f32 to vector<2x16x16xf32>
    %117 = arith.mulf %115, %116 : vector<2x16x16xf32>
    %118 = vector.broadcast %0 : vector<2x1x16xf32> to vector<2x16x16xf32>
    %119 = arith.addf %117, %118 : vector<2x16x16xf32>
    %cst_37 = arith.constant dense<0xFF800000> : vector<2x16xf32>
    %120 = vector.multi_reduction <maximumf>, %119, %cst_37 [2] : vector<2x16x16xf32> to vector<2x16xf32>
    %121 = vector.shape_cast %120 : vector<2x16xf32> to vector<2x16x1xf32>
    %122 = vector.broadcast %121 : vector<2x16x1xf32> to vector<2x16x16xf32>
    %123 = arith.subf %119, %122 : vector<2x16x16xf32>
    %124 = math.exp %123 : vector<2x16x16xf32>
    %cst_38 = arith.constant dense<0.000000e+00> : vector<2x16xf32>
    %125 = vector.multi_reduction <add>, %124, %cst_38 [2] : vector<2x16x16xf32> to vector<2x16xf32>
    %126 = vector.shape_cast %125 : vector<2x16xf32> to vector<2x16x1xf32>
    %127 = tpu.reciprocal %126 {approx = true} : vector<2x16x1xf32> -> vector<2x16x1xf32>
    %128 = vector.broadcast %127 : vector<2x16x1xf32> to vector<2x16x16xf32>
    %129 = arith.mulf %124, %128 : vector<2x16x16xf32>
    %130 = arith.truncf %129 : vector<2x16x16xf32> to vector<2x16x16xbf16>
    "tpu.trace_start"() <{level = 10 : i32, message = "bqk,bkd->bqd"}> : () -> ()
    %cst_39 = arith.constant dense<0.000000e+00> : vector<2x16x8xf32>
    %131 = tpu.matmul %130, %114, %cst_39 {dimension_numbers = #tpu.dot_dimension_numbers<[2], [1], [1], [2], [0, 0, 0, 1, 1, 2], [0], [0]>} : vector<2x16x16xbf16>, vector<2x16x8xbf16>, vector<2x16x8xf32> -> vector<2x16x8xf32>
    "tpu.trace_stop"() : () -> ()
    %132 = vector.shape_cast %131 : vector<2x16x8xf32> to vector<32x8xf32>
    %133 = tpu.concatenate %60, %84, %108, %132 in 1 : vector<32x8xf32>, vector<32x8xf32>, vector<32x8xf32>, vector<32x8xf32> -> vector<32x32xf32>
    %134 = arith.truncf %133 : vector<32x32xf32> to vector<32x32xbf16>
    %c0_40 = arith.constant 0 : index
    %c0_41 = arith.constant 0 : index
    %c0_42 = arith.constant 0 : index
    %135 = vector.load %arg7[%c0_40, %c0_41, %c0_42] : memref<2x32x32xbf16, #tpu.memory_space<vmem>>, vector<1x32x32xbf16>
    %136 = vector.shape_cast %135 : vector<1x32x32xbf16> to vector<32x32xbf16>
    %cst_43 = arith.constant dense<0.000000e+00> : vector<32x32xf32>
    %137 = tpu.matmul %134, %136, %cst_43 {dimension_numbers = #tpu.dot_dimension_numbers<[1], [0], [0], [1], [0, 0, 1, 1], [], []>} : vector<32x32xbf16>, vector<32x32xbf16>, vector<32x32xf32> -> vector<32x32xf32>
    %c0_44 = arith.constant 0 : index
    %c0_45 = arith.constant 0 : index
    %c0_46 = arith.constant 0 : index
    %138 = vector.load %arg8[%c0_44, %c0_45, %c0_46] : memref<2x1x32xf32, #tpu.memory_space<vmem>>, vector<1x1x32xf32>
    %139 = vector.shape_cast %138 : vector<1x1x32xf32> to vector<1x32xf32>
    %140 = vector.broadcast %139 : vector<1x32xf32> to vector<32x32xf32>
    %141 = arith.addf %137, %140 : vector<32x32xf32>
    %142 = arith.addf %27, %141 : vector<32x32xf32>
    %c0_47 = arith.constant 0 : index
    %c0_48 = arith.constant 0 : index
    %c0_49 = arith.constant 0 : index
    %143 = vector.load %arg9[%c0_47, %c0_48, %c0_49] : memref<2x1x32xf32, #tpu.memory_space<vmem>>, vector<1x1x32xf32>
    %144 = vector.shape_cast %143 : vector<1x1x32xf32> to vector<1x32xf32>
    %c0_50 = arith.constant 0 : index
    %c0_51 = arith.constant 0 : index
    %c0_52 = arith.constant 0 : index
    %145 = vector.load %arg10[%c0_50, %c0_51, %c0_52] : memref<2x1x32xf32, #tpu.memory_space<vmem>>, vector<1x1x32xf32>
    %146 = vector.shape_cast %145 : vector<1x1x32xf32> to vector<1x32xf32>
    %cst_53 = arith.constant dense<0.000000e+00> : vector<32xf32>
    %147 = vector.multi_reduction <add>, %142, %cst_53 [1] : vector<32x32xf32> to vector<32xf32>
    %148 = vector.shape_cast %147 : vector<32xf32> to vector<32x1xf32>
    %cst_54 = arith.constant 3.200000e+01 : f32
    %149 = vector.broadcast %cst_54 : f32 to vector<32x1xf32>
    %150 = arith.divf %148, %149 : vector<32x1xf32>
    %151 = arith.mulf %142, %142 : vector<32x32xf32>
    %cst_55 = arith.constant dense<0.000000e+00> : vector<32xf32>
    %152 = vector.multi_reduction <add>, %151, %cst_55 [1] : vector<32x32xf32> to vector<32xf32>
    %153 = vector.shape_cast %152 : vector<32xf32> to vector<32x1xf32>
    %cst_56 = arith.constant 3.200000e+01 : f32
    %154 = vector.broadcast %cst_56 : f32 to vector<32x1xf32>
    %155 = arith.divf %153, %154 : vector<32x1xf32>
    %156 = arith.mulf %150, %150 : vector<32x1xf32>
    %157 = arith.subf %155, %156 : vector<32x1xf32>
    %cst_57 = arith.constant 0.000000e+00 : f32
    %158 = vector.broadcast %cst_57 : f32 to vector<32x1xf32>
    %159 = arith.maximumf %157, %158 : vector<32x1xf32>
    %160 = vector.broadcast %150 : vector<32x1xf32> to vector<32x32xf32>
    %161 = arith.subf %142, %160 : vector<32x32xf32>
    %cst_58 = arith.constant 9.99999996E-13 : f32
    %162 = vector.broadcast %cst_58 : f32 to vector<32x1xf32>
    %163 = arith.addf %159, %162 : vector<32x1xf32>
    %164 = math.rsqrt %163 : vector<32x1xf32>
    %165 = vector.broadcast %164 : vector<32x1xf32> to vector<32x32xf32>
    %166 = arith.mulf %161, %165 : vector<32x32xf32>
    %167 = vector.broadcast %144 : vector<1x32xf32> to vector<32x32xf32>
    %168 = arith.mulf %166, %167 : vector<32x32xf32>
    %169 = vector.broadcast %146 : vector<1x32xf32> to vector<32x32xf32>
    %170 = arith.addf %168, %169 : vector<32x32xf32>
    %171 = arith.truncf %170 : vector<32x32xf32> to vector<32x32xbf16>
    %c0_59 = arith.constant 0 : index
    %c0_60 = arith.constant 0 : index
    %c0_61 = arith.constant 0 : index
    %172 = vector.load %arg11[%c0_59, %c0_60, %c0_61] : memref<2x32x64xbf16, #tpu.memory_space<vmem>>, vector<1x32x64xbf16>
    %173 = vector.shape_cast %172 : vector<1x32x64xbf16> to vector<32x64xbf16>
    %cst_62 = arith.constant dense<0.000000e+00> : vector<32x64xf32>
    %174 = tpu.matmul %171, %173, %cst_62 {dimension_numbers = #tpu.dot_dimension_numbers<[1], [0], [0], [1], [0, 0, 1, 1], [], []>} : vector<32x32xbf16>, vector<32x64xbf16>, vector<32x64xf32> -> vector<32x64xf32>
    %c0_63 = arith.constant 0 : index
    %c0_64 = arith.constant 0 : index
    %c0_65 = arith.constant 0 : index
    %175 = vector.load %arg12[%c0_63, %c0_64, %c0_65] : memref<2x1x64xf32, #tpu.memory_space<vmem>>, vector<1x1x64xf32>
    %176 = vector.shape_cast %175 : vector<1x1x64xf32> to vector<1x64xf32>
    %177 = vector.broadcast %176 : vector<1x64xf32> to vector<32x64xf32>
    %178 = arith.addf %174, %177 : vector<32x64xf32>
    %179 = arith.mulf %178, %178 : vector<32x64xf32>
    %180 = arith.mulf %178, %179 : vector<32x64xf32>
    %cst_66 = arith.constant 4.471500e-02 : f32
    %181 = vector.broadcast %cst_66 : f32 to vector<32x64xf32>
    %182 = arith.mulf %181, %180 : vector<32x64xf32>
    %183 = arith.addf %178, %182 : vector<32x64xf32>
    %cst_67 = arith.constant 0.797884583 : f32
    %184 = vector.broadcast %cst_67 : f32 to vector<32x64xf32>
    %185 = arith.mulf %184, %183 : vector<32x64xf32>
    %186 = math.tanh %185 : vector<32x64xf32>
    %cst_68 = arith.constant 1.000000e+00 : f32
    %187 = vector.broadcast %cst_68 : f32 to vector<32x64xf32>
    %188 = arith.addf %187, %186 : vector<32x64xf32>
    %cst_69 = arith.constant 5.000000e-01 : f32
    %189 = vector.broadcast %cst_69 : f32 to vector<32x64xf32>
    %190 = arith.mulf %189, %188 : vector<32x64xf32>
    %191 = arith.mulf %178, %190 : vector<32x64xf32>
    %192 = arith.truncf %191 : vector<32x64xf32> to vector<32x64xbf16>
    %c0_70 = arith.constant 0 : index
    %c0_71 = arith.constant 0 : index
    %c0_72 = arith.constant 0 : index
    %193 = vector.load %arg13[%c0_70, %c0_71, %c0_72] : memref<2x64x32xbf16, #tpu.memory_space<vmem>>, vector<1x64x32xbf16>
    %194 = vector.shape_cast %193 : vector<1x64x32xbf16> to vector<64x32xbf16>
    %cst_73 = arith.constant dense<0.000000e+00> : vector<32x32xf32>
    %195 = tpu.matmul %192, %194, %cst_73 {dimension_numbers = #tpu.dot_dimension_numbers<[1], [0], [0], [1], [0, 0, 1, 1], [], []>} : vector<32x64xbf16>, vector<64x32xbf16>, vector<32x32xf32> -> vector<32x32xf32>
    %c0_74 = arith.constant 0 : index
    %c0_75 = arith.constant 0 : index
    %c0_76 = arith.constant 0 : index
    %196 = vector.load %arg14[%c0_74, %c0_75, %c0_76] : memref<2x1x32xf32, #tpu.memory_space<vmem>>, vector<1x1x32xf32>
    %197 = vector.shape_cast %196 : vector<1x1x32xf32> to vector<1x32xf32>
    %198 = vector.broadcast %197 : vector<1x32xf32> to vector<32x32xf32>
    %199 = arith.addf %195, %198 : vector<32x32xf32>
    %200 = arith.addf %170, %199 : vector<32x32xf32>
    %c0_77 = arith.constant 0 : index
    %c0_78 = arith.constant 0 : index
    %c0_79 = arith.constant 0 : index
    %201 = vector.load %arg15[%c0_77, %c0_78, %c0_79] : memref<2x1x32xf32, #tpu.memory_space<vmem>>, vector<1x1x32xf32>
    %202 = vector.shape_cast %201 : vector<1x1x32xf32> to vector<1x32xf32>
    %c0_80 = arith.constant 0 : index
    %c0_81 = arith.constant 0 : index
    %c0_82 = arith.constant 0 : index
    %203 = vector.load %arg16[%c0_80, %c0_81, %c0_82] : memref<2x1x32xf32, #tpu.memory_space<vmem>>, vector<1x1x32xf32>
    %204 = vector.shape_cast %203 : vector<1x1x32xf32> to vector<1x32xf32>
    %cst_83 = arith.constant dense<0.000000e+00> : vector<32xf32>
    %205 = vector.multi_reduction <add>, %200, %cst_83 [1] : vector<32x32xf32> to vector<32xf32>
    %206 = vector.shape_cast %205 : vector<32xf32> to vector<32x1xf32>
    %cst_84 = arith.constant 3.200000e+01 : f32
    %207 = vector.broadcast %cst_84 : f32 to vector<32x1xf32>
    %208 = arith.divf %206, %207 : vector<32x1xf32>
    %209 = arith.mulf %200, %200 : vector<32x32xf32>
    %cst_85 = arith.constant dense<0.000000e+00> : vector<32xf32>
    %210 = vector.multi_reduction <add>, %209, %cst_85 [1] : vector<32x32xf32> to vector<32xf32>
    %211 = vector.shape_cast %210 : vector<32xf32> to vector<32x1xf32>
    %cst_86 = arith.constant 3.200000e+01 : f32
    %212 = vector.broadcast %cst_86 : f32 to vector<32x1xf32>
    %213 = arith.divf %211, %212 : vector<32x1xf32>
    %214 = arith.mulf %208, %208 : vector<32x1xf32>
    %215 = arith.subf %213, %214 : vector<32x1xf32>
    %cst_87 = arith.constant 0.000000e+00 : f32
    %216 = vector.broadcast %cst_87 : f32 to vector<32x1xf32>
    %217 = arith.maximumf %215, %216 : vector<32x1xf32>
    %218 = vector.broadcast %208 : vector<32x1xf32> to vector<32x32xf32>
    %219 = arith.subf %200, %218 : vector<32x32xf32>
    %cst_88 = arith.constant 9.99999996E-13 : f32
    %220 = vector.broadcast %cst_88 : f32 to vector<32x1xf32>
    %221 = arith.addf %217, %220 : vector<32x1xf32>
    %222 = math.rsqrt %221 : vector<32x1xf32>
    %223 = vector.broadcast %222 : vector<32x1xf32> to vector<32x32xf32>
    %224 = arith.mulf %219, %223 : vector<32x32xf32>
    %225 = vector.broadcast %202 : vector<1x32xf32> to vector<32x32xf32>
    %226 = arith.mulf %224, %225 : vector<32x32xf32>
    %227 = vector.broadcast %204 : vector<1x32xf32> to vector<32x32xf32>
    %228 = arith.addf %226, %227 : vector<32x32xf32>
    %229 = arith.truncf %228 : vector<32x32xf32> to vector<32x32xbf16>
    %c1 = arith.constant 1 : index
    %c0_89 = arith.constant 0 : index
    %c0_90 = arith.constant 0 : index
    %230 = vector.load %arg5[%c1, %c0_89, %c0_90] : memref<2x32x96xbf16, #tpu.memory_space<vmem>>, vector<1x32x96xbf16>
    %231 = vector.shape_cast %230 : vector<1x32x96xbf16> to vector<32x96xbf16>
    %cst_91 = arith.constant dense<0.000000e+00> : vector<32x96xf32>
    %232 = tpu.matmul %229, %231, %cst_91 {dimension_numbers = #tpu.dot_dimension_numbers<[1], [0], [0], [1], [0, 0, 1, 1], [], []>} : vector<32x32xbf16>, vector<32x96xbf16>, vector<32x96xf32> -> vector<32x96xf32>
    %c1_92 = arith.constant 1 : index
    %c0_93 = arith.constant 0 : index
    %c0_94 = arith.constant 0 : index
    %233 = vector.load %arg6[%c1_92, %c0_93, %c0_94] : memref<2x1x96xf32, #tpu.memory_space<vmem>>, vector<1x1x96xf32>
    %234 = vector.shape_cast %233 : vector<1x1x96xf32> to vector<1x96xf32>
    %235 = vector.broadcast %234 : vector<1x96xf32> to vector<32x96xf32>
    %236 = arith.addf %232, %235 : vector<32x96xf32>
    %237 = arith.truncf %236 : vector<32x96xf32> to vector<32x96xbf16>
    %238 = vector.extract_strided_slice %237 {offsets = [0, 0], sizes = [32, 8], strides = [1, 1]} : vector<32x96xbf16> to vector<32x8xbf16>
    %239 = vector.shape_cast %238 : vector<32x8xbf16> to vector<2x16x8xbf16>
    %240 = vector.extract_strided_slice %237 {offsets = [0, 32], sizes = [32, 8], strides = [1, 1]} : vector<32x96xbf16> to vector<32x8xbf16>
    %241 = vector.shape_cast %240 : vector<32x8xbf16> to vector<2x16x8xbf16>
    %242 = vector.extract_strided_slice %237 {offsets = [0, 64], sizes = [32, 8], strides = [1, 1]} : vector<32x96xbf16> to vector<32x8xbf16>
    %243 = vector.shape_cast %242 : vector<32x8xbf16> to vector<2x16x8xbf16>
    "tpu.trace_start"() <{level = 10 : i32, message = "bqd,bkd->bqk"}> : () -> ()
    %cst_95 = arith.constant dense<0.000000e+00> : vector<2x16x16xf32>
    %244 = tpu.matmul %239, %241, %cst_95 {dimension_numbers = #tpu.dot_dimension_numbers<[2], [2], [1], [1], [0, 0, 0, 1, 1, 1], [0], [0]>} : vector<2x16x8xbf16>, vector<2x16x8xbf16>, vector<2x16x16xf32> -> vector<2x16x16xf32>
    "tpu.trace_stop"() : () -> ()
    %cst_96 = arith.constant 0.353553385 : f32
    %245 = vector.broadcast %cst_96 : f32 to vector<2x16x16xf32>
    %246 = arith.mulf %244, %245 : vector<2x16x16xf32>
    %247 = vector.broadcast %0 : vector<2x1x16xf32> to vector<2x16x16xf32>
    %248 = arith.addf %246, %247 : vector<2x16x16xf32>
    %cst_97 = arith.constant dense<0xFF800000> : vector<2x16xf32>
    %249 = vector.multi_reduction <maximumf>, %248, %cst_97 [2] : vector<2x16x16xf32> to vector<2x16xf32>
    %250 = vector.shape_cast %249 : vector<2x16xf32> to vector<2x16x1xf32>
    %251 = vector.broadcast %250 : vector<2x16x1xf32> to vector<2x16x16xf32>
    %252 = arith.subf %248, %251 : vector<2x16x16xf32>
    %253 = math.exp %252 : vector<2x16x16xf32>
    %cst_98 = arith.constant dense<0.000000e+00> : vector<2x16xf32>
    %254 = vector.multi_reduction <add>, %253, %cst_98 [2] : vector<2x16x16xf32> to vector<2x16xf32>
    %255 = vector.shape_cast %254 : vector<2x16xf32> to vector<2x16x1xf32>
    %256 = tpu.reciprocal %255 {approx = true} : vector<2x16x1xf32> -> vector<2x16x1xf32>
    %257 = vector.broadcast %256 : vector<2x16x1xf32> to vector<2x16x16xf32>
    %258 = arith.mulf %253, %257 : vector<2x16x16xf32>
    %259 = arith.truncf %258 : vector<2x16x16xf32> to vector<2x16x16xbf16>
    "tpu.trace_start"() <{level = 10 : i32, message = "bqk,bkd->bqd"}> : () -> ()
    %cst_99 = arith.constant dense<0.000000e+00> : vector<2x16x8xf32>
    %260 = tpu.matmul %259, %243, %cst_99 {dimension_numbers = #tpu.dot_dimension_numbers<[2], [1], [1], [2], [0, 0, 0, 1, 1, 2], [0], [0]>} : vector<2x16x16xbf16>, vector<2x16x8xbf16>, vector<2x16x8xf32> -> vector<2x16x8xf32>
    "tpu.trace_stop"() : () -> ()
    %261 = vector.shape_cast %260 : vector<2x16x8xf32> to vector<32x8xf32>
    %262 = vector.extract_strided_slice %237 {offsets = [0, 8], sizes = [32, 8], strides = [1, 1]} : vector<32x96xbf16> to vector<32x8xbf16>
    %263 = vector.shape_cast %262 : vector<32x8xbf16> to vector<2x16x8xbf16>
    %264 = vector.extract_strided_slice %237 {offsets = [0, 40], sizes = [32, 8], strides = [1, 1]} : vector<32x96xbf16> to vector<32x8xbf16>
    %265 = vector.shape_cast %264 : vector<32x8xbf16> to vector<2x16x8xbf16>
    %266 = vector.extract_strided_slice %237 {offsets = [0, 72], sizes = [32, 8], strides = [1, 1]} : vector<32x96xbf16> to vector<32x8xbf16>
    %267 = vector.shape_cast %266 : vector<32x8xbf16> to vector<2x16x8xbf16>
    "tpu.trace_start"() <{level = 10 : i32, message = "bqd,bkd->bqk"}> : () -> ()
    %cst_100 = arith.constant dense<0.000000e+00> : vector<2x16x16xf32>
    %268 = tpu.matmul %263, %265, %cst_100 {dimension_numbers = #tpu.dot_dimension_numbers<[2], [2], [1], [1], [0, 0, 0, 1, 1, 1], [0], [0]>} : vector<2x16x8xbf16>, vector<2x16x8xbf16>, vector<2x16x16xf32> -> vector<2x16x16xf32>
    "tpu.trace_stop"() : () -> ()
    %cst_101 = arith.constant 0.353553385 : f32
    %269 = vector.broadcast %cst_101 : f32 to vector<2x16x16xf32>
    %270 = arith.mulf %268, %269 : vector<2x16x16xf32>
    %271 = vector.broadcast %0 : vector<2x1x16xf32> to vector<2x16x16xf32>
    %272 = arith.addf %270, %271 : vector<2x16x16xf32>
    %cst_102 = arith.constant dense<0xFF800000> : vector<2x16xf32>
    %273 = vector.multi_reduction <maximumf>, %272, %cst_102 [2] : vector<2x16x16xf32> to vector<2x16xf32>
    %274 = vector.shape_cast %273 : vector<2x16xf32> to vector<2x16x1xf32>
    %275 = vector.broadcast %274 : vector<2x16x1xf32> to vector<2x16x16xf32>
    %276 = arith.subf %272, %275 : vector<2x16x16xf32>
    %277 = math.exp %276 : vector<2x16x16xf32>
    %cst_103 = arith.constant dense<0.000000e+00> : vector<2x16xf32>
    %278 = vector.multi_reduction <add>, %277, %cst_103 [2] : vector<2x16x16xf32> to vector<2x16xf32>
    %279 = vector.shape_cast %278 : vector<2x16xf32> to vector<2x16x1xf32>
    %280 = tpu.reciprocal %279 {approx = true} : vector<2x16x1xf32> -> vector<2x16x1xf32>
    %281 = vector.broadcast %280 : vector<2x16x1xf32> to vector<2x16x16xf32>
    %282 = arith.mulf %277, %281 : vector<2x16x16xf32>
    %283 = arith.truncf %282 : vector<2x16x16xf32> to vector<2x16x16xbf16>
    "tpu.trace_start"() <{level = 10 : i32, message = "bqk,bkd->bqd"}> : () -> ()
    %cst_104 = arith.constant dense<0.000000e+00> : vector<2x16x8xf32>
    %284 = tpu.matmul %283, %267, %cst_104 {dimension_numbers = #tpu.dot_dimension_numbers<[2], [1], [1], [2], [0, 0, 0, 1, 1, 2], [0], [0]>} : vector<2x16x16xbf16>, vector<2x16x8xbf16>, vector<2x16x8xf32> -> vector<2x16x8xf32>
    "tpu.trace_stop"() : () -> ()
    %285 = vector.shape_cast %284 : vector<2x16x8xf32> to vector<32x8xf32>
    %286 = vector.extract_strided_slice %237 {offsets = [0, 16], sizes = [32, 8], strides = [1, 1]} : vector<32x96xbf16> to vector<32x8xbf16>
    %287 = vector.shape_cast %286 : vector<32x8xbf16> to vector<2x16x8xbf16>
    %288 = vector.extract_strided_slice %237 {offsets = [0, 48], sizes = [32, 8], strides = [1, 1]} : vector<32x96xbf16> to vector<32x8xbf16>
    %289 = vector.shape_cast %288 : vector<32x8xbf16> to vector<2x16x8xbf16>
    %290 = vector.extract_strided_slice %237 {offsets = [0, 80], sizes = [32, 8], strides = [1, 1]} : vector<32x96xbf16> to vector<32x8xbf16>
    %291 = vector.shape_cast %290 : vector<32x8xbf16> to vector<2x16x8xbf16>
    "tpu.trace_start"() <{level = 10 : i32, message = "bqd,bkd->bqk"}> : () -> ()
    %cst_105 = arith.constant dense<0.000000e+00> : vector<2x16x16xf32>
    %292 = tpu.matmul %287, %289, %cst_105 {dimension_numbers = #tpu.dot_dimension_numbers<[2], [2], [1], [1], [0, 0, 0, 1, 1, 1], [0], [0]>} : vector<2x16x8xbf16>, vector<2x16x8xbf16>, vector<2x16x16xf32> -> vector<2x16x16xf32>
    "tpu.trace_stop"() : () -> ()
    %cst_106 = arith.constant 0.353553385 : f32
    %293 = vector.broadcast %cst_106 : f32 to vector<2x16x16xf32>
    %294 = arith.mulf %292, %293 : vector<2x16x16xf32>
    %295 = vector.broadcast %0 : vector<2x1x16xf32> to vector<2x16x16xf32>
    %296 = arith.addf %294, %295 : vector<2x16x16xf32>
    %cst_107 = arith.constant dense<0xFF800000> : vector<2x16xf32>
    %297 = vector.multi_reduction <maximumf>, %296, %cst_107 [2] : vector<2x16x16xf32> to vector<2x16xf32>
    %298 = vector.shape_cast %297 : vector<2x16xf32> to vector<2x16x1xf32>
    %299 = vector.broadcast %298 : vector<2x16x1xf32> to vector<2x16x16xf32>
    %300 = arith.subf %296, %299 : vector<2x16x16xf32>
    %301 = math.exp %300 : vector<2x16x16xf32>
    %cst_108 = arith.constant dense<0.000000e+00> : vector<2x16xf32>
    %302 = vector.multi_reduction <add>, %301, %cst_108 [2] : vector<2x16x16xf32> to vector<2x16xf32>
    %303 = vector.shape_cast %302 : vector<2x16xf32> to vector<2x16x1xf32>
    %304 = tpu.reciprocal %303 {approx = true} : vector<2x16x1xf32> -> vector<2x16x1xf32>
    %305 = vector.broadcast %304 : vector<2x16x1xf32> to vector<2x16x16xf32>
    %306 = arith.mulf %301, %305 : vector<2x16x16xf32>
    %307 = arith.truncf %306 : vector<2x16x16xf32> to vector<2x16x16xbf16>
    "tpu.trace_start"() <{level = 10 : i32, message = "bqk,bkd->bqd"}> : () -> ()
    %cst_109 = arith.constant dense<0.000000e+00> : vector<2x16x8xf32>
    %308 = tpu.matmul %307, %291, %cst_109 {dimension_numbers = #tpu.dot_dimension_numbers<[2], [1], [1], [2], [0, 0, 0, 1, 1, 2], [0], [0]>} : vector<2x16x16xbf16>, vector<2x16x8xbf16>, vector<2x16x8xf32> -> vector<2x16x8xf32>
    "tpu.trace_stop"() : () -> ()
    %309 = vector.shape_cast %308 : vector<2x16x8xf32> to vector<32x8xf32>
    %310 = vector.extract_strided_slice %237 {offsets = [0, 24], sizes = [32, 8], strides = [1, 1]} : vector<32x96xbf16> to vector<32x8xbf16>
    %311 = vector.shape_cast %310 : vector<32x8xbf16> to vector<2x16x8xbf16>
    %312 = vector.extract_strided_slice %237 {offsets = [0, 56], sizes = [32, 8], strides = [1, 1]} : vector<32x96xbf16> to vector<32x8xbf16>
    %313 = vector.shape_cast %312 : vector<32x8xbf16> to vector<2x16x8xbf16>
    %314 = vector.extract_strided_slice %237 {offsets = [0, 88], sizes = [32, 8], strides = [1, 1]} : vector<32x96xbf16> to vector<32x8xbf16>
    %315 = vector.shape_cast %314 : vector<32x8xbf16> to vector<2x16x8xbf16>
    "tpu.trace_start"() <{level = 10 : i32, message = "bqd,bkd->bqk"}> : () -> ()
    %cst_110 = arith.constant dense<0.000000e+00> : vector<2x16x16xf32>
    %316 = tpu.matmul %311, %313, %cst_110 {dimension_numbers = #tpu.dot_dimension_numbers<[2], [2], [1], [1], [0, 0, 0, 1, 1, 1], [0], [0]>} : vector<2x16x8xbf16>, vector<2x16x8xbf16>, vector<2x16x16xf32> -> vector<2x16x16xf32>
    "tpu.trace_stop"() : () -> ()
    %cst_111 = arith.constant 0.353553385 : f32
    %317 = vector.broadcast %cst_111 : f32 to vector<2x16x16xf32>
    %318 = arith.mulf %316, %317 : vector<2x16x16xf32>
    %319 = vector.broadcast %0 : vector<2x1x16xf32> to vector<2x16x16xf32>
    %320 = arith.addf %318, %319 : vector<2x16x16xf32>
    %cst_112 = arith.constant dense<0xFF800000> : vector<2x16xf32>
    %321 = vector.multi_reduction <maximumf>, %320, %cst_112 [2] : vector<2x16x16xf32> to vector<2x16xf32>
    %322 = vector.shape_cast %321 : vector<2x16xf32> to vector<2x16x1xf32>
    %323 = vector.broadcast %322 : vector<2x16x1xf32> to vector<2x16x16xf32>
    %324 = arith.subf %320, %323 : vector<2x16x16xf32>
    %325 = math.exp %324 : vector<2x16x16xf32>
    %cst_113 = arith.constant dense<0.000000e+00> : vector<2x16xf32>
    %326 = vector.multi_reduction <add>, %325, %cst_113 [2] : vector<2x16x16xf32> to vector<2x16xf32>
    %327 = vector.shape_cast %326 : vector<2x16xf32> to vector<2x16x1xf32>
    %328 = tpu.reciprocal %327 {approx = true} : vector<2x16x1xf32> -> vector<2x16x1xf32>
    %329 = vector.broadcast %328 : vector<2x16x1xf32> to vector<2x16x16xf32>
    %330 = arith.mulf %325, %329 : vector<2x16x16xf32>
    %331 = arith.truncf %330 : vector<2x16x16xf32> to vector<2x16x16xbf16>
    "tpu.trace_start"() <{level = 10 : i32, message = "bqk,bkd->bqd"}> : () -> ()
    %cst_114 = arith.constant dense<0.000000e+00> : vector<2x16x8xf32>
    %332 = tpu.matmul %331, %315, %cst_114 {dimension_numbers = #tpu.dot_dimension_numbers<[2], [1], [1], [2], [0, 0, 0, 1, 1, 2], [0], [0]>} : vector<2x16x16xbf16>, vector<2x16x8xbf16>, vector<2x16x8xf32> -> vector<2x16x8xf32>
    "tpu.trace_stop"() : () -> ()
    %333 = vector.shape_cast %332 : vector<2x16x8xf32> to vector<32x8xf32>
    %334 = tpu.concatenate %261, %285, %309, %333 in 1 : vector<32x8xf32>, vector<32x8xf32>, vector<32x8xf32>, vector<32x8xf32> -> vector<32x32xf32>
    %335 = arith.truncf %334 : vector<32x32xf32> to vector<32x32xbf16>
    %c1_115 = arith.constant 1 : index
    %c0_116 = arith.constant 0 : index
    %c0_117 = arith.constant 0 : index
    %336 = vector.load %arg7[%c1_115, %c0_116, %c0_117] : memref<2x32x32xbf16, #tpu.memory_space<vmem>>, vector<1x32x32xbf16>
    %337 = vector.shape_cast %336 : vector<1x32x32xbf16> to vector<32x32xbf16>
    %cst_118 = arith.constant dense<0.000000e+00> : vector<32x32xf32>
    %338 = tpu.matmul %335, %337, %cst_118 {dimension_numbers = #tpu.dot_dimension_numbers<[1], [0], [0], [1], [0, 0, 1, 1], [], []>} : vector<32x32xbf16>, vector<32x32xbf16>, vector<32x32xf32> -> vector<32x32xf32>
    %c1_119 = arith.constant 1 : index
    %c0_120 = arith.constant 0 : index
    %c0_121 = arith.constant 0 : index
    %339 = vector.load %arg8[%c1_119, %c0_120, %c0_121] : memref<2x1x32xf32, #tpu.memory_space<vmem>>, vector<1x1x32xf32>
    %340 = vector.shape_cast %339 : vector<1x1x32xf32> to vector<1x32xf32>
    %341 = vector.broadcast %340 : vector<1x32xf32> to vector<32x32xf32>
    %342 = arith.addf %338, %341 : vector<32x32xf32>
    %343 = arith.addf %228, %342 : vector<32x32xf32>
    %c1_122 = arith.constant 1 : index
    %c0_123 = arith.constant 0 : index
    %c0_124 = arith.constant 0 : index
    %344 = vector.load %arg9[%c1_122, %c0_123, %c0_124] : memref<2x1x32xf32, #tpu.memory_space<vmem>>, vector<1x1x32xf32>
    %345 = vector.shape_cast %344 : vector<1x1x32xf32> to vector<1x32xf32>
    %c1_125 = arith.constant 1 : index
    %c0_126 = arith.constant 0 : index
    %c0_127 = arith.constant 0 : index
    %346 = vector.load %arg10[%c1_125, %c0_126, %c0_127] : memref<2x1x32xf32, #tpu.memory_space<vmem>>, vector<1x1x32xf32>
    %347 = vector.shape_cast %346 : vector<1x1x32xf32> to vector<1x32xf32>
    %cst_128 = arith.constant dense<0.000000e+00> : vector<32xf32>
    %348 = vector.multi_reduction <add>, %343, %cst_128 [1] : vector<32x32xf32> to vector<32xf32>
    %349 = vector.shape_cast %348 : vector<32xf32> to vector<32x1xf32>
    %cst_129 = arith.constant 3.200000e+01 : f32
    %350 = vector.broadcast %cst_129 : f32 to vector<32x1xf32>
    %351 = arith.divf %349, %350 : vector<32x1xf32>
    %352 = arith.mulf %343, %343 : vector<32x32xf32>
    %cst_130 = arith.constant dense<0.000000e+00> : vector<32xf32>
    %353 = vector.multi_reduction <add>, %352, %cst_130 [1] : vector<32x32xf32> to vector<32xf32>
    %354 = vector.shape_cast %353 : vector<32xf32> to vector<32x1xf32>
    %cst_131 = arith.constant 3.200000e+01 : f32
    %355 = vector.broadcast %cst_131 : f32 to vector<32x1xf32>
    %356 = arith.divf %354, %355 : vector<32x1xf32>
    %357 = arith.mulf %351, %351 : vector<32x1xf32>
    %358 = arith.subf %356, %357 : vector<32x1xf32>
    %cst_132 = arith.constant 0.000000e+00 : f32
    %359 = vector.broadcast %cst_132 : f32 to vector<32x1xf32>
    %360 = arith.maximumf %358, %359 : vector<32x1xf32>
    %361 = vector.broadcast %351 : vector<32x1xf32> to vector<32x32xf32>
    %362 = arith.subf %343, %361 : vector<32x32xf32>
    %cst_133 = arith.constant 9.99999996E-13 : f32
    %363 = vector.broadcast %cst_133 : f32 to vector<32x1xf32>
    %364 = arith.addf %360, %363 : vector<32x1xf32>
    %365 = math.rsqrt %364 : vector<32x1xf32>
    %366 = vector.broadcast %365 : vector<32x1xf32> to vector<32x32xf32>
    %367 = arith.mulf %362, %366 : vector<32x32xf32>
    %368 = vector.broadcast %345 : vector<1x32xf32> to vector<32x32xf32>
    %369 = arith.mulf %367, %368 : vector<32x32xf32>
    %370 = vector.broadcast %347 : vector<1x32xf32> to vector<32x32xf32>
    %371 = arith.addf %369, %370 : vector<32x32xf32>
    %372 = arith.truncf %371 : vector<32x32xf32> to vector<32x32xbf16>
    %c1_134 = arith.constant 1 : index
    %c0_135 = arith.constant 0 : index
    %c0_136 = arith.constant 0 : index
    %373 = vector.load %arg11[%c1_134, %c0_135, %c0_136] : memref<2x32x64xbf16, #tpu.memory_space<vmem>>, vector<1x32x64xbf16>
    %374 = vector.shape_cast %373 : vector<1x32x64xbf16> to vector<32x64xbf16>
    %cst_137 = arith.constant dense<0.000000e+00> : vector<32x64xf32>
    %375 = tpu.matmul %372, %374, %cst_137 {dimension_numbers = #tpu.dot_dimension_numbers<[1], [0], [0], [1], [0, 0, 1, 1], [], []>} : vector<32x32xbf16>, vector<32x64xbf16>, vector<32x64xf32> -> vector<32x64xf32>
    %c1_138 = arith.constant 1 : index
    %c0_139 = arith.constant 0 : index
    %c0_140 = arith.constant 0 : index
    %376 = vector.load %arg12[%c1_138, %c0_139, %c0_140] : memref<2x1x64xf32, #tpu.memory_space<vmem>>, vector<1x1x64xf32>
    %377 = vector.shape_cast %376 : vector<1x1x64xf32> to vector<1x64xf32>
    %378 = vector.broadcast %377 : vector<1x64xf32> to vector<32x64xf32>
    %379 = arith.addf %375, %378 : vector<32x64xf32>
    %380 = arith.mulf %379, %379 : vector<32x64xf32>
    %381 = arith.mulf %379, %380 : vector<32x64xf32>
    %cst_141 = arith.constant 4.471500e-02 : f32
    %382 = vector.broadcast %cst_141 : f32 to vector<32x64xf32>
    %383 = arith.mulf %382, %381 : vector<32x64xf32>
    %384 = arith.addf %379, %383 : vector<32x64xf32>
    %cst_142 = arith.constant 0.797884583 : f32
    %385 = vector.broadcast %cst_142 : f32 to vector<32x64xf32>
    %386 = arith.mulf %385, %384 : vector<32x64xf32>
    %387 = math.tanh %386 : vector<32x64xf32>
    %cst_143 = arith.constant 1.000000e+00 : f32
    %388 = vector.broadcast %cst_143 : f32 to vector<32x64xf32>
    %389 = arith.addf %388, %387 : vector<32x64xf32>
    %cst_144 = arith.constant 5.000000e-01 : f32
    %390 = vector.broadcast %cst_144 : f32 to vector<32x64xf32>
    %391 = arith.mulf %390, %389 : vector<32x64xf32>
    %392 = arith.mulf %379, %391 : vector<32x64xf32>
    %393 = arith.truncf %392 : vector<32x64xf32> to vector<32x64xbf16>
    %c1_145 = arith.constant 1 : index
    %c0_146 = arith.constant 0 : index
    %c0_147 = arith.constant 0 : index
    %394 = vector.load %arg13[%c1_145, %c0_146, %c0_147] : memref<2x64x32xbf16, #tpu.memory_space<vmem>>, vector<1x64x32xbf16>
    %395 = vector.shape_cast %394 : vector<1x64x32xbf16> to vector<64x32xbf16>
    %cst_148 = arith.constant dense<0.000000e+00> : vector<32x32xf32>
    %396 = tpu.matmul %393, %395, %cst_148 {dimension_numbers = #tpu.dot_dimension_numbers<[1], [0], [0], [1], [0, 0, 1, 1], [], []>} : vector<32x64xbf16>, vector<64x32xbf16>, vector<32x32xf32> -> vector<32x32xf32>
    %c1_149 = arith.constant 1 : index
    %c0_150 = arith.constant 0 : index
    %c0_151 = arith.constant 0 : index
    %397 = vector.load %arg14[%c1_149, %c0_150, %c0_151] : memref<2x1x32xf32, #tpu.memory_space<vmem>>, vector<1x1x32xf32>
    %398 = vector.shape_cast %397 : vector<1x1x32xf32> to vector<1x32xf32>
    %399 = vector.broadcast %398 : vector<1x32xf32> to vector<32x32xf32>
    %400 = arith.addf %396, %399 : vector<32x32xf32>
    %401 = arith.addf %371, %400 : vector<32x32xf32>
    %c1_152 = arith.constant 1 : index
    %c0_153 = arith.constant 0 : index
    %c0_154 = arith.constant 0 : index
    %402 = vector.load %arg15[%c1_152, %c0_153, %c0_154] : memref<2x1x32xf32, #tpu.memory_space<vmem>>, vector<1x1x32xf32>
    %403 = vector.shape_cast %402 : vector<1x1x32xf32> to vector<1x32xf32>
    %c1_155 = arith.constant 1 : index
    %c0_156 = arith.constant 0 : index
    %c0_157 = arith.constant 0 : index
    %404 = vector.load %arg16[%c1_155, %c0_156, %c0_157] : memref<2x1x32xf32, #tpu.memory_space<vmem>>, vector<1x1x32xf32>
    %405 = vector.shape_cast %404 : vector<1x1x32xf32> to vector<1x32xf32>
    %cst_158 = arith.constant dense<0.000000e+00> : vector<32xf32>
    %406 = vector.multi_reduction <add>, %401, %cst_158 [1] : vector<32x32xf32> to vector<32xf32>
    %407 = vector.shape_cast %406 : vector<32xf32> to vector<32x1xf32>
    %cst_159 = arith.constant 3.200000e+01 : f32
    %408 = vector.broadcast %cst_159 : f32 to vector<32x1xf32>
    %409 = arith.divf %407, %408 : vector<32x1xf32>
    %410 = arith.mulf %401, %401 : vector<32x32xf32>
    %cst_160 = arith.constant dense<0.000000e+00> : vector<32xf32>
    %411 = vector.multi_reduction <add>, %410, %cst_160 [1] : vector<32x32xf32> to vector<32xf32>
    %412 = vector.shape_cast %411 : vector<32xf32> to vector<32x1xf32>
    %cst_161 = arith.constant 3.200000e+01 : f32
    %413 = vector.broadcast %cst_161 : f32 to vector<32x1xf32>
    %414 = arith.divf %412, %413 : vector<32x1xf32>
    %415 = arith.mulf %409, %409 : vector<32x1xf32>
    %416 = arith.subf %414, %415 : vector<32x1xf32>
    %cst_162 = arith.constant 0.000000e+00 : f32
    %417 = vector.broadcast %cst_162 : f32 to vector<32x1xf32>
    %418 = arith.maximumf %416, %417 : vector<32x1xf32>
    %419 = vector.broadcast %409 : vector<32x1xf32> to vector<32x32xf32>
    %420 = arith.subf %401, %419 : vector<32x32xf32>
    %cst_163 = arith.constant 9.99999996E-13 : f32
    %421 = vector.broadcast %cst_163 : f32 to vector<32x1xf32>
    %422 = arith.addf %418, %421 : vector<32x1xf32>
    %423 = math.rsqrt %422 : vector<32x1xf32>
    %424 = vector.broadcast %423 : vector<32x1xf32> to vector<32x32xf32>
    %425 = arith.mulf %420, %424 : vector<32x32xf32>
    %426 = vector.broadcast %403 : vector<1x32xf32> to vector<32x32xf32>
    %427 = arith.mulf %425, %426 : vector<32x32xf32>
    %428 = vector.broadcast %405 : vector<1x32xf32> to vector<32x32xf32>
    %429 = arith.addf %427, %428 : vector<32x32xf32>
    %430 = vector.shape_cast %429 : vector<32x32xf32> to vector<2x16x32xf32>
    %431 = vector.extract_strided_slice %430 {offsets = [0, 0, 0], sizes = [2, 1, 32], strides = [1, 1, 1]} : vector<2x16x32xf32> to vector<2x1x32xf32>
    %432 = vector.shape_cast %431 : vector<2x1x32xf32> to vector<2x32xf32>
    %433 = arith.truncf %432 : vector<2x32xf32> to vector<2x32xbf16>
    %c0_164 = arith.constant 0 : index
    %c0_165 = arith.constant 0 : index
    %434 = vector.load %arg17[%c0_164, %c0_165] : memref<32x32xbf16, #tpu.memory_space<vmem>>, vector<32x32xbf16>
    %cst_166 = arith.constant dense<0.000000e+00> : vector<2x32xf32>
    %435 = tpu.matmul %433, %434, %cst_166 {dimension_numbers = #tpu.dot_dimension_numbers<[1], [0], [0], [1], [0, 0, 1, 1], [], []>} : vector<2x32xbf16>, vector<32x32xbf16>, vector<2x32xf32> -> vector<2x32xf32>
    %c0_167 = arith.constant 0 : index
    %c0_168 = arith.constant 0 : index
    %436 = vector.load %arg18[%c0_167, %c0_168] : memref<1x32xf32, #tpu.memory_space<vmem>>, vector<1x32xf32>
    %437 = vector.broadcast %436 : vector<1x32xf32> to vector<2x32xf32>
    %438 = arith.addf %435, %437 : vector<2x32xf32>
    %439 = math.tanh %438 : vector<2x32xf32>
    %440 = arith.truncf %439 : vector<2x32xf32> to vector<2x32xbf16>
    %c0_169 = arith.constant 0 : index
    %c0_170 = arith.constant 0 : index
    %441 = vector.load %arg19[%c0_169, %c0_170] : memref<32x2xbf16, #tpu.memory_space<vmem>>, vector<32x2xbf16>
    %cst_171 = arith.constant dense<0.000000e+00> : vector<2x2xf32>
    %442 = tpu.matmul %440, %441, %cst_171 {dimension_numbers = #tpu.dot_dimension_numbers<[1], [0], [0], [1], [0, 0, 1, 1], [], []>} : vector<2x32xbf16>, vector<32x2xbf16>, vector<2x2xf32> -> vector<2x2xf32>
    %c0_172 = arith.constant 0 : index
    %c0_173 = arith.constant 0 : index
    %443 = vector.load %arg20[%c0_172, %c0_173] : memref<1x2xf32, #tpu.memory_space<vmem>>, vector<1x2xf32>
    %444 = vector.broadcast %443 : vector<1x2xf32> to vector<2x2xf32>
    %445 = arith.addf %442, %444 : vector<2x2xf32>
    %c0_174 = arith.constant 0 : index
    %c0_175 = arith.constant 0 : index
    %446 = vector.load %arg21[%c0_174, %c0_175] : memref<2x2xf32, #tpu.memory_space<vmem>>, vector<2x2xf32>
    tpu.vector_store %arg21[%c0_174, %c0_175], %445 {strides = array<i32>} : memref<2x2xf32, #tpu.memory_space<vmem>>, vector<2x2xf32>,
    return
  }
  func.func @transform_0(%arg0: i32) -> (i32, i32) {
    %c0_i32 = arith.constant 0 : i32
    %c0_i32_0 = arith.constant 0 : i32
    %c0_i32_1 = arith.constant 0 : i32
    return %c0_i32, %c0_i32_0 : i32, i32
  }
  func.func @transform_1(%arg0: i32) -> (i32, i32, i32) {
    %c0_i32 = arith.constant 0 : i32
    %c0_i32_0 = arith.constant 0 : i32
    %c0_i32_1 = arith.constant 0 : i32
    %c0_i32_2 = arith.constant 0 : i32
    return %c0_i32, %c0_i32_0, %c0_i32_1 : i32, i32, i32
  }
  func.func @transform_2(%arg0: i32) -> (i32, i32) {
    %c0_i32 = arith.constant 0 : i32
    %c0_i32_0 = arith.constant 0 : i32
    %c0_i32_1 = arith.constant 0 : i32
    return %c0_i32, %c0_i32_0 : i32, i32
  }
  func.func @transform_3(%arg0: i32) -> (i32, i32) {
    %c0_i32 = arith.constant 0 : i32
    %c0_i32_0 = arith.constant 0 : i32
    %c0_i32_1 = arith.constant 0 : i32
    return %c0_i32, %c0_i32_0 : i32, i32
  }
  func.func @transform_4(%arg0: i32) -> (i32, i32, i32) {
    %c0_i32 = arith.constant 0 : i32
    %c0_i32_0 = arith.constant 0 : i32
    %c0_i32_1 = arith.constant 0 : i32
    %c0_i32_2 = arith.constant 0 : i32
    return %c0_i32, %c0_i32_0, %c0_i32_1 : i32, i32, i32
  }
  func.func @transform_5(%arg0: i32) -> (i32, i32, i32) {
    %c0_i32 = arith.constant 0 : i32
    %c0_i32_0 = arith.constant 0 : i32
    %c0_i32_1 = arith.constant 0 : i32
    %c0_i32_2 = arith.constant 0 : i32
    return %c0_i32, %c0_i32_0, %c0_i32_1 : i32, i32, i32
  }
  func.func @transform_6(%arg0: i32) -> (i32, i32, i32) {
    %c0_i32 = arith.constant 0 : i32
    %c0_i32_0 = arith.constant 0 : i32
    %c0_i32_1 = arith.constant 0 : i32
    %c0_i32_2 = arith.constant 0 : i32
    return %c0_i32, %c0_i32_0, %c0_i32_1 : i32, i32, i32
  }
  func.func @transform_7(%arg0: i32) -> (i32, i32, i32) {
    %c0_i32 = arith.constant 0 : i32
    %c0_i32_0 = arith.constant 0 : i32
    %c0_i32_1 = arith.constant 0 : i32
    %c0_i32_2 = arith.constant 0 : i32
    return %c0_i32, %c0_i32_0, %c0_i32_1 : i32, i32, i32
  }
  func.func @transform_8(%arg0: i32) -> (i32, i32, i32) {
    %c0_i32 = arith.constant 0 : i32
    %c0_i32_0 = arith.constant 0 : i32
    %c0_i32_1 = arith.constant 0 : i32
    %c0_i32_2 = arith.constant 0 : i32
    return %c0_i32, %c0_i32_0, %c0_i32_1 : i32, i32, i32
  }
  func.func @transform_9(%arg0: i32) -> (i32, i32, i32) {
    %c0_i32 = arith.constant 0 : i32
    %c0_i32_0 = arith.constant 0 : i32
    %c0_i32_1 = arith.constant 0 : i32
    %c0_i32_2 = arith.constant 0 : i32
    return %c0_i32, %c0_i32_0, %c0_i32_1 : i32, i32, i32
  }
  func.func @transform_10(%arg0: i32) -> (i32, i32, i32) {
    %c0_i32 = arith.constant 0 : i32
    %c0_i32_0 = arith.constant 0 : i32
    %c0_i32_1 = arith.constant 0 : i32
    %c0_i32_2 = arith.constant 0 : i32
    return %c0_i32, %c0_i32_0, %c0_i32_1 : i32, i32, i32
  }
  func.func @transform_11(%arg0: i32) -> (i32, i32, i32) {
    %c0_i32 = arith.constant 0 : i32
    %c0_i32_0 = arith.constant 0 : i32
    %c0_i32_1 = arith.constant 0 : i32
    %c0_i32_2 = arith.constant 0 : i32
    return %c0_i32, %c0_i32_0, %c0_i32_1 : i32, i32, i32
  }
  func.func @transform_12(%arg0: i32) -> (i32, i32, i32) {
    %c0_i32 = arith.constant 0 : i32
    %c0_i32_0 = arith.constant 0 : i32
    %c0_i32_1 = arith.constant 0 : i32
    %c0_i32_2 = arith.constant 0 : i32
    return %c0_i32, %c0_i32_0, %c0_i32_1 : i32, i32, i32
  }
  func.func @transform_13(%arg0: i32) -> (i32, i32, i32) {
    %c0_i32 = arith.constant 0 : i32
    %c0_i32_0 = arith.constant 0 : i32
    %c0_i32_1 = arith.constant 0 : i32
    %c0_i32_2 = arith.constant 0 : i32
    return %c0_i32, %c0_i32_0, %c0_i32_1 : i32, i32, i32
  }
  func.func @transform_14(%arg0: i32) -> (i32, i32, i32) {
    %c0_i32 = arith.constant 0 : i32
    %c0_i32_0 = arith.constant 0 : i32
    %c0_i32_1 = arith.constant 0 : i32
    %c0_i32_2 = arith.constant 0 : i32
    return %c0_i32, %c0_i32_0, %c0_i32_1 : i32, i32, i32
  }
  func.func @transform_15(%arg0: i32) -> (i32, i32, i32) {
    %c0_i32 = arith.constant 0 : i32
    %c0_i32_0 = arith.constant 0 : i32
    %c0_i32_1 = arith.constant 0 : i32
    %c0_i32_2 = arith.constant 0 : i32
    return %c0_i32, %c0_i32_0, %c0_i32_1 : i32, i32, i32
  }
  func.func @transform_16(%arg0: i32) -> (i32, i32) {
    %c0_i32 = arith.constant 0 : i32
    %c0_i32_0 = arith.constant 0 : i32
    %c0_i32_1 = arith.constant 0 : i32
    return %c0_i32, %c0_i32_0 : i32, i32
  }
  func.func @transform_17(%arg0: i32) -> (i32, i32) {
    %c0_i32 = arith.constant 0 : i32
    %c0_i32_0 = arith.constant 0 : i32
    %c0_i32_1 = arith.constant 0 : i32
    return %c0_i32, %c0_i32_0 : i32, i32
  }
  func.func @transform_18(%arg0: i32) -> (i32, i32) {
    %c0_i32 = arith.constant 0 : i32
    %c0_i32_0 = arith.constant 0 : i32
    %c0_i32_1 = arith.constant 0 : i32
    return %c0_i32, %c0_i32_0 : i32, i32
  }
  func.func @transform_19(%arg0: i32) -> (i32, i32) {
    %c0_i32 = arith.constant 0 : i32
    %c0_i32_0 = arith.constant 0 : i32
    %c0_i32_1 = arith.constant 0 : i32
    return %c0_i32, %c0_i32_0 : i32, i32
  }
  func.func @transform_20(%arg0: i32) -> (i32, i32) {
    %c0_i32 = arith.constant 0 : i32
    %c0_i32_0 = arith.constant 0 : i32
    %c0_i32_1 = arith.constant 0 : i32
    return %c0_i32, %c0_i32_0 : i32, i32
  }
}

</mosaic_0001>

<bundles_post_ra>
// kernel: tpu_custom_call.1
= control target key start
LH: loop header
LB: loop body
LE: loop exit
PB: predicated region body
PF: predicated region fallthrough
CT: control target
= control target key end

     0   :  { %s5454_s0 = inlined_call_operand.vmem [shape: f32[32,32], index: 0, kind: input, shape index: {}]   ;;  %s5455_s1 = inlined_call_operand.vmem [shape: f32[2,1,16], index: 1, kind: input, shape index: {}]   ;;  %s5456_s2 = inlined_call_operand.hbm [shape: f32[1,32], index: 2, kind: input, shape index: {}]   ;;  %s5457_s3 = inlined_call_operand.hbm [shape: f32[1,32], index: 3, kind: input, shape index: {}]   ;;  %s5458_s4 = inlined_call_operand.vmem [shape: bf16[2,32,96], index: 4, kind: input, shape index: {}]   ;;  %s5459_s5 = inlined_call_operand.vmem [shape: f32[2,1,96], index: 5, kind: input, shape index: {}]   ;;  %s5460_s6 = inlined_call_operand.vmem [shape: bf16[2,32,32], index: 6, kind: input, shape index: {}]   ;;  %s5461_s7 = inlined_call_operand.vmem [shape: f32[2,1,32], index: 7, kind: input, shape index: {}]   ;;  %s5462_s8 = inlined_call_operand.vmem [shape: f32[2,1,32], index: 8, kind: input, shape index: {}]   ;;  %s5463_s9 = inlined_call_operand.vmem [shape: f32[2,1,32], index: 9, kind: input, shape index: {}]   ;;  %s5464_s10 = inlined_call_operand.hbm [shape: bf16[2,32,64], index: 10, kind: input, shape index: {}]   ;;  %s5465_s11 = inlined_call_operand.vmem [shape: f32[2,1,64], index: 11, kind: input, shape index: {}]   ;;  %s5466_s12 = inlined_call_operand.vmem [shape: bf16[2,64,32], index: 12, kind: input, shape index: {}]   ;;  %s5467_s13 = inlined_call_operand.vmem [shape: f32[2,1,32], index: 13, kind: input, shape index: {}]   ;;  %s5468_s14 = inlined_call_operand.vmem [shape: f32[2,1,32], index: 14, kind: input, shape index: {}]   ;;  %s5469_s15 = inlined_call_operand.vmem [shape: f32[2,1,32], index: 15, kind: input, shape index: {}]   ;;  %s5470_s16 = inlined_call_operand.vmem [shape: bf16[32,32], index: 16, kind: input, shape index: {}]   ;;  %s5471_s17 = inlined_call_operand.vmem [shape: f32[1,32], index: 17, kind: input, shape index: {}]   ;;  %s5472_s18 = inlined_call_operand.vmem [shape: bf16[32,2], index: 18, kind: input, shape index: {}]   ;;  %s5473_s19 = inlined_call_operand.vmem [shape: f32[1,2], index: 19, kind: input, shape index: {}]   ;;  %s5474_s20 = inlined_call_operand.hbm [shape: f32[2,2], index: 20, kind: output, shape index: {}]  }
   0x1   :  { %5496 = sst [smem:[#allocation12_spill]] %s5454_s0 }
   0x2   :  { %5497 = sst [smem:[#allocation13_spill]] %s5455_s1 }
   0x3   :  { %5498 = sst [smem:[#allocation14_spill]] %s5456_s2 }
   0x4   :  { %5499 = sst [smem:[#allocation15_spill]] %s5457_s3 }
   0x5   :  { %5500 = sst [smem:[#allocation16_spill]] %s5458_s4 }
   0x6   :  { %25 = vsyncpa [#allocation3], 0 }
   0x7   :  { %26 = vsyncpa [#allocation6], 0 }
   0x8   :  { %27 = vsyncpa [#allocation4], 0  ;;  %s4461_s1 = smov [#allocation5]   ;;  %s4462_s23 = smov [#allocation2]  }
   0x9   :  { %s48_s22 = sshll.u32 %s4461_s1, 4  ;;  %s38_s24 = sshll.u32 %s4462_s23, 4  ;;  %s49_s22 = int_to_ptr.vmem [resolvable:$true] %s48_s22  ;;  %s39_s24 = int_to_ptr.vmem [resolvable:$true] %s38_s24 }
   0xa   :  { %s5501_s3 = sld [smem:[#allocation15_spill]] }
  0x10   :  { %s4367_s26 = scalar_lea.hbm %s5501_s3, 16 }
  0x11   :  { %p4368_p0 = scmp.ne.s32.totalorder %s5501_s3, %s4367_s26  ;;  %p4371_p1 = scmp.lt.u32.totalorder %s4367_s26, %s5501_s3 }
  0x13   :  { %p4373_p2 = pnand %p4371_p1, %p4368_p0 }
  0x15   :  { %4376 = shalt.err (!%p4373_p2)
}
  0x16   :  { %s4377_s30 = scalar_lea.vmem %s49_s22, 16  ;;  %s4381_s0 = scalar_lea.vmem %s49_s22, 32 }
  0x17   :  { %p4378_p3 = scmp.ne.s32.totalorder %s49_s22, %s4377_s30  ;;  %p4382_p4 = scmp.lt.s32.totalorder %s49_s22, %s49_s22 }
  0x18   :  { %p4383_p5 = scmp.lt.s32.totalorder %s4381_s0, %s4377_s30 }
  0x1a   :  { %p4384_p6 = por %p4383_p5, %p4382_p4 }
  0x1c   :  { %p4385_p7 = pnand %p4384_p6, %p4378_p3 }
  0x1e   :  { %4388 = shalt.err (!%p4385_p7)
}
  0x1f   :  { %51 = dma.hbm_to_vmem [thread:$0]  %s5501_s3, 16, %s49_s22, [#allocation6]  }
  0x20   :  { %s5502_s25 = sld [smem:[#allocation14_spill]] }
  0x26   :  { %s4389_s27 = scalar_lea.hbm %s5502_s25, 16 }
  0x27   :  { %p4390_p8 = scmp.ne.s32.totalorder %s5502_s25, %s4389_s27  ;;  %p4393_p9 = scmp.lt.u32.totalorder %s4389_s27, %s5502_s25 }
  0x29   :  { %p4395_p10 = pnand %p4393_p9, %p4390_p8 }
  0x2b   :  { %4398 = shalt.err (!%p4395_p10)
}
  0x2c   :  { %s4399_s30 = scalar_lea.vmem %s39_s24, 16  ;;  %s4403_s0 = scalar_lea.vmem %s39_s24, 32 }
  0x2d   :  { %p4400_p11 = scmp.ne.s32.totalorder %s39_s24, %s4399_s30  ;;  %p4404_p12 = scmp.lt.s32.totalorder %s39_s24, %s39_s24 }
  0x2e   :  { %p4405_p13 = scmp.lt.s32.totalorder %s4403_s0, %s4399_s30 }
  0x30   :  { %p4406_p0 = por %p4405_p13, %p4404_p12 }
  0x32   :  { %p4407_p1 = pnand %p4406_p0, %p4400_p11 }
  0x34   :  { %4410 = shalt.err (!%p4407_p1)
}
  0x35   :  { %41 = dma.hbm_to_vmem [thread:$0]  %s5502_s25, 16, %s39_s24, [#allocation3]  }
  0x36   :  { %s4463_s21 = smov [#allocation7]   ;;  %s4411_s27 = scalar_lea.hbm %s5464_s10, 512 }
  0x37   :  { %s69_s1 = sshll.u32 %s4463_s21, 4  ;;  %p4412_p2 = scmp.ne.s32.totalorder %s5464_s10, %s4411_s27  ;;  %s70_s1 = int_to_ptr.vmem [resolvable:$true] %s69_s1 }
  0x38   :  { %p4415_p3 = scmp.lt.u32.totalorder %s4411_s27, %s5464_s10 }
  0x3a   :  { %p4417_p4 = pnand %p4415_p3, %p4412_p2 }
  0x3c   :  { %4420 = shalt.err (!%p4417_p4)
}
  0x3d   :  { %s4421_s30 = scalar_lea.vmem %s70_s1, 512  ;;  %p4426_p6 = scmp.lt.s32.totalorder %s70_s1, %s70_s1 }
  0x3e   :  { %p4422_p5 = scmp.ne.s32.totalorder %s70_s1, %s4421_s30  ;;  %p4427_p7 = scmp.lt.s32.totalorder %s4421_s30, %s4421_s30 }
  0x40   :  { %p4428_p8 = por %p4427_p7, %p4426_p6 }
  0x42   :  { %p4429_p9 = pnand %p4428_p8, %p4422_p5 }
  0x44   :  { %4432 = shalt.err (!%p4429_p9)
}
  0x45   :  { %s4464_s24 = smov 64   ;;  %s4465_s25 = smov 4  }
  0x46   :  { %75 = dma.hbm_to_vmem [thread:$0]  %s5464_s10, 512, %s70_s1, [#allocation6], %s4464_s24, %s4464_s24, %s4465_s25  }
  0x47   :  { %4455 = dma.done.wait [#allocation3], 16  }
  0x48   :  { %4456 = vsyncadd [#allocation3], 4294967280 }
  0x49   :  { %4457 = dma.done.wait [#allocation6], 528  }
  0x4a   :  { %4458 = vsyncadd [#allocation6], 4294966768  ;;  %vm112_vm0 = vcmask 261120   ;;  %s5503_s23 = sld [smem:[#allocation12_spill]]  ;;  %s5504_s30 = sld [smem:[#allocation16_spill]]  ;;  %vm4467_vm1 = vmmov 0  }
  0x4b   :  { %v3572_v53 = vld [vmem:[#allocation2] ss:$0 sm:$0xff]  ;;  %v3573_v56 = vld [vmem:[#allocation5] ss:$0 sm:$0xff]  ;;  %s4468_s21 = smov 96   ;;  %vm283_vm2 = vcmask 64512  }
  0x4c   :  { %s5505_s27 = sld [smem:[#allocation13_spill]]  ;;  %vm401_vm3 = vcmask 130048   ;;  %s4469_s10 = smov 88   ;;  %vm1348_vm4 = vcmask 195584   ;;  %vm1680_vm5 = vcmask 523264   ;;  %vm3428_vm6 = vcmask 1041409  }
  0x4d   :  { %s4470_s1 = smov 120   ;;  %s4471_s4 = smov 56   ;;  %vm3554_vm7 = vcmask 9216  }
  0x4e   :  { %s4472_s29 = smov 80   ;;  %s5494_s25 = smov 112  }
  0x4f   :  { %s5492_s0 = smov 48   ;;  %s5490_s22 = smov 72  }
  0x50   :  { %v4628_v0 = vld [vmem:[%s5503_s23 + $0x10] sm:$0xff]  ;;  %v4633_v1 = vld [vmem:[%s5503_s23] sm:$0xff]  ;;  %v4638_v2 = vld [vmem:[%s5503_s23 + $0x18] sm:$0xff]  ;;  %s5486_s3 = smov 104   ;;  %s5482_s2 = smov 8  }
  0x51   :  { %v119_v3 = vsel %vm112_vm0, %v4628_v0, 0.0  ;;  %v113_v4 = vsel %vm112_vm0, %v4633_v1, 0.0  ;;  %v4647_v5 = vld [vmem:[%s5503_s23 + $0x8] sm:$0xff]  ;;  %v130_v6 = vmul.f32 %v4633_v1, %v4633_v1  ;;  %v133_v8 = vmul.f32 %v4638_v2, %v4638_v2  ;;  %v4159_v16 = vld [vmem:[%s5504_s30] sm:$0xff]   ;;  %s5484_s23 = smov 40   ;;  %s5480_s28 = smov 16  }
  0x52   :  { %120 = vadd.xlane.f32.xlu1 %v119_v3  ;;  %114 = vadd.xlane.f32.xlu0 %v113_v4  ;;  %v131_v7 = vmul.f32 %v4647_v5, %v4647_v5  ;;  %v132_v9 = vmul.f32 %v4628_v0, %v4628_v0  ;;  %v122_v10 = vsel %vm112_vm0, %v4638_v2, 0.0  ;;  %v116_v11 = vsel %vm112_vm0, %v4647_v5, 0.0  ;;  %v4160_v17 = vld [vmem:[%s5504_s30 + $0x8] sm:$0xff]  }
  0x53   :  { %v134_v13 = vsel %vm112_vm0, %v130_v6, 0.0  ;;  %v143_v14 = vsel %vm112_vm0, %v133_v8, 0.0  ;;  %3798 = vmatprep.subr.bf16.mxu0 %v4159_v16 }
  0x54   :  { %v137_v12 = vsel %vm112_vm0, %v131_v7, 0.0  ;;  %v140_v15 = vsel %vm112_vm0, %v132_v9, 0.0  ;;  %3799 = vmatpush3.bf16.msra.mxu0 %v4159_v16 }
  0x55   :  { %3800 = vmatprep.subr.bf16.mxu0 %v4160_v17 }
  0x56   :  { %123 = vadd.xlane.f32.xlu1 %v122_v10  ;;  %117 = vadd.xlane.f32.xlu0 %v116_v11  ;;  %v4466_v10 = vmov 0.0  }
  0x57   :  { %3806 = vmatprep.subr.bf16.mxu1 %v4466_v10  ;;  %3808 = vmatprep.mubr.msk.bf16.mxu1 %vm4467_vm1, %v4466_v10 }
  0x58   :  { %3801 = vmatpush3.bf16.msra.mxu0 %v4160_v17 }
  0x59   :  { %3812 = vmatprep.subr.bf16.mxu0 %v4466_v10 }
  0x5a   :  { %138 = vadd.xlane.f32.xlu1 %v137_v12  ;;  %135 = vadd.xlane.f32.xlu0 %v134_v13  ;;  %v3574_v12 = vld [vmem:[%s5459_s5] ss:$0 sm:$0xff] }
  0x5e   :  { %144 = vadd.xlane.f32.xlu1 %v143_v14  ;;  %141 = vadd.xlane.f32.xlu0 %v140_v15 }
  0xdf   :  { %v121_v18 = vpop.xlane.xlu1 %120  ;;  %v115_v19 = vpop.xlane.xlu0 %114 }
  0xe0   :  { %v126_v22 = vmul.f32 0.03125, %v115_v19  ;;  %v128_v24 = vmul.f32 0.03125, %v121_v18 }
  0xe2   :  { %v150_v28 = vmul.f32 %v126_v22, %v126_v22  ;;  %v152_v34 = vmul.f32 %v128_v24, %v128_v24  ;;  %v162_v52 = vsub.f32 %v4633_v1, %v126_v22  ;;  %v164_v61 = vsub.f32 %v4628_v0, %v128_v24 }
  0xe3   :  { %v124_v20 = vpop.xlane.xlu1 %123  ;;  %v118_v21 = vpop.xlane.xlu0 %117 }
  0xe4   :  { %v127_v23 = vmul.f32 0.03125, %v118_v21  ;;  %v129_v25 = vmul.f32 0.03125, %v124_v20 }
  0xe6   :  { %v151_v29 = vmul.f32 %v127_v23, %v127_v23  ;;  %v153_v35 = vmul.f32 %v129_v25, %v129_v25  ;;  %v163_v50 = vsub.f32 %v4647_v5, %v127_v23  ;;  %v165_v58 = vsub.f32 %v4638_v2, %v129_v25 }
  0xe7   :  { %v139_v26 = vpop.xlane.xlu1 %138  ;;  %v136_v27 = vpop.xlane.xlu0 %135 }
  0xe8   :  { %v147_v30 = vmul.f32 0.03125, %v139_v26  ;;  %v146_v31 = vmul.f32 0.03125, %v136_v27 }
  0xea   :  { %v155_v32 = vsub.f32 %v147_v30, %v151_v29  ;;  %v154_v33 = vsub.f32 %v146_v31, %v150_v28  ;;  %v4721_v29 = vld [vmem:[%s5505_s27] ss:$0 sm:$0xff] }
  0xeb   :  { %v145_v36 = vpop.xlane.xlu1 %144  ;;  %v142_v37 = vpop.xlane.xlu0 %141 }
  0xec   :  { %v159_v38 = vmax.f32 %v155_v32, 0.0  ;;  %v158_v39 = vmax.f32 %v154_v33, 0.0  ;;  %v149_v40 = vmul.f32 0.03125, %v145_v36  ;;  %v148_v41 = vmul.f32 0.03125, %v142_v37 }
  0xee   :  { %v167_v42 = vadd.f32 1e-12, %v159_v38  ;;  %v166_v43 = vadd.f32 1e-12, %v158_v39  ;;  %v157_v44 = vsub.f32 %v149_v40, %v153_v35  ;;  %v156_v45 = vsub.f32 %v148_v41, %v152_v34  ;;  %v4727_v40 = vld [vmem:[%s5505_s27 + $0x1] ss:$0 sm:$0xff] }
  0xf0   :  { %4183 = vrsqrt.f32 %v167_v42  ;;  %v161_v46 = vmax.f32 %v157_v44, 0.0  ;;  %v160_v47 = vmax.f32 %v156_v45, 0.0 }
  0xf1   :  { %4185 = vrsqrt.f32 %v166_v43 }
  0xf2   :  { %v169_v48 = vadd.f32 1e-12, %v161_v46  ;;  %v168_v49 = vadd.f32 1e-12, %v160_v47 }
  0xf4   :  { %4187 = vrsqrt.f32 %v169_v48 }
  0xf5   :  { %4189 = vrsqrt.f32 %v168_v49 }
  0xfa   :  { %v4184_v51 = vpop.eup %4183 }
  0xfb   :  { %v4186_v54 = vpop.eup %4185  ;;  %v175_v55 = vmul.f32 %v4184_v51, %v163_v50 }
  0xfc   :  { %v174_v57 = vmul.f32 %v4186_v54, %v162_v52 }
  0xfd   :  { %v185_v59 = vmul.f32 %v3572_v53, %v175_v55 }
  0xfe   :  { %v4188_v60 = vpop.eup %4187  ;;  %v184_v62 = vmul.f32 %v3572_v53, %v174_v57 }
  0xff   :  { %v4190_v63 = vpop.eup %4189  ;;  %v4675_v3 = vadd.f32 %v3573_v56, %v185_v59  ;;  %v177_v4 = vmul.f32 %v4188_v60, %v165_v58 }
 0x100   :  { %v4677_v5 = vadd.f32 %v3573_v56, %v184_v62  ;;  %v176_v6 = vmul.f32 %v4190_v63, %v164_v61 }
 0x101   :  { %v187_v1 = vmul.f32 %v3572_v53, %v177_v4 }
 0x102   :  { %v198_v7 = vpack.c.bf16 %v4675_v3, %v4677_v5  ;;  %v186_v8 = vmul.f32 %v3572_v53, %v176_v6 }
 0x103   :  { %v4681_v9 = vadd.f32 %v3573_v56, %v187_v1 }
 0x104   :  { %3802 = vmatprep.mubr.msk.bf16.mxu0 %vm112_vm0, %v198_v7  ;;  %v4684_v2 = vadd.f32 %v3573_v56, %v186_v8 }
 0x106   :  { %v199_v0 = vpack.c.bf16 %v4681_v9, %v4684_v2 }
 0x108   :  { %3803 = vmatmul.mubr.msk.bf16.vlgmr.msra.gmra.mrb[0].mxu0 %vm112_vm0, %v199_v0 }
 0x109   :  { %3814 = vmatprep.mubr.msk.bf16.mxu0 %vm4467_vm1, %v4466_v10 }
 0x1db   :  { %v3804_v11 = vpop.f32.mrb[0].mxu0 }
 0x1dc   :  { %v263_v13 = vpop.f32.mrb[1].mxu0  ;;  %v272_v15 = vadd.f32 %v3804_v11, %v3574_v12 }
 0x1dd   :  { %v3805_v14 = vpop.f32.mrb[2].mxu0  ;;  %v264_v18 = vadd.f32 %v3574_v12, %v263_v13 }
 0x1de   :  { %v275_v16 = vadd.f32 %v3805_v14, %v3574_v12  ;;  %v266_v17 = vpop.f32.mrb[3].mxu0 }
 0x1df   :  { %v267_v19 = vadd.f32 %v3574_v12, %v266_v17 }
 0x1e0   :  { %v4698_v20 = vpack.c.bf16 %v275_v16, %v272_v15 }
 0x1e1   :  { %v4700_v21 = vpack.c.bf16 %v267_v19, %v264_v18 }
 0x1e2   :  { %332 = vrot.lane.b32.xlu1 %v4698_v20, %s4468_s21 }
 0x1e3   :  { %281 = vrot.lane.b32.xlu0 %v4700_v21, %s4468_s21 }
 0x254   :  { %v333_v22 = vpop.permute.xlu1 %332 }
 0x255   :  { %v338_v23 = vsel %vm283_vm2, %v333_v22, 0  ;;  %v282_v24 = vpop.permute.xlu0 %281 }
 0x256   :  { %3813 = vmatpush3.bf16.xpose.msra.mxu0 %v338_v23  ;;  %v288_v25 = vsel %vm283_vm2, %v282_v24, 0 }
 0x257   :  { %3807 = vmatpush3.bf16.xpose.msra.mxu1 %v288_v25  ;;  %3824 = vmatprep.subr.bf16.mxu0 %v4466_v10 }
 0x258   :  { %3818 = vmatprep.subr.bf16.mxu1 %v4466_v10 }
 0x25d   :  { %3815 = vmatmul.mubr.msk.bf16.vlgmr.msra.gmra.mrb[4].mxu0 %vm283_vm2, %v4698_v20 }
 0x25e   :  { %3809 = vmatmul.mubr.msk.bf16.vlgmr.msra.gmra.mrb[0].mxu1 %vm283_vm2, %v4700_v21  ;;  %3826 = vmatprep.mubr.msk.bf16.mxu0 %vm4467_vm1, %v4466_v10 }
 0x25f   :  { %3820 = vmatprep.mubr.msk.bf16.mxu1 %vm4467_vm1, %v4466_v10 }
 0x330   :  { %v374_v26 = vpop.f32.mrb[4].mxu0 }
 0x331   :  { %v324_v27 = vpop.f32.mrb[0].mxu1  ;;  %v3816_v28 = vpop.f32.mrb[5].mxu0  ;;  %v383_v36 = vmul.f32 0.35355338, %v374_v26 }
 0x332   :  { %v381_v30 = vmul.f32 0.35355338, %v324_v27  ;;  %v3810_v31 = vpop.f32.mrb[1].mxu1  ;;  %v377_v32 = vpop.f32.mrb[6].mxu0 }
 0x333   :  { %v384_v33 = vmul.f32 0.35355338, %v377_v32  ;;  %v327_v34 = vpop.f32.mrb[2].mxu1  ;;  %v3817_v35 = vpop.f32.mrb[7].mxu0  ;;  %v399_v45 = vadd.f32 %v4727_v40, %v383_v36 }
 0x334   :  { %v382_v37 = vmul.f32 0.35355338, %v327_v34  ;;  %v3811_v38 = vpop.f32.mrb[3].mxu1  ;;  %v397_v39 = vadd.f32 %v4721_v29, %v381_v30 }
 0x335   :  { %v400_v43 = vadd.f32 %v4727_v40, %v384_v33  ;;  %v408_v47 = vsel %vm401_vm3, %v399_v45, -inf }
 0x336   :  { %v402_v41 = vsel %vm401_vm3, %v397_v39, -inf  ;;  %v398_v42 = vadd.f32 %v4721_v29, %v382_v37 }
 0x337   :  { %403 = vmax.xlane.f32.xlu1 %v402_v41  ;;  %v411_v46 = vsel %vm401_vm3, %v400_v43, -inf }
 0x338   :  { %v405_v44 = vsel %vm401_vm3, %v398_v42, -inf }
 0x339   :  { %406 = vmax.xlane.f32.xlu0 %v405_v44 }
 0x33b   :  { %412 = vmax.xlane.f32.xlu1 %v411_v46 }
 0x33d   :  { %409 = vmax.xlane.f32.xlu0 %v408_v47 }
 0x34c   :  { %495 = vrot.lane.b32.xlu1 %v4698_v20, %s4464_s24 }
 0x350   :  { %544 = vrot.lane.b32.xlu1 %v4700_v21, %s4469_s10 }
 0x3c4   :  { %v404_v48 = vpop.xlane.xlu1 %403 }
 0x3c5   :  { %v414_v52 = vsub.f32 %v397_v39, %v404_v48 }
 0x3c6   :  { %v407_v49 = vpop.xlane.xlu0 %406 }
 0x3c7   :  { %v415_v50 = vsub.f32 %v398_v42, %v407_v49  ;;  %v418_v59 = vmul.f32 1.442695, %v414_v52 }
 0x3c8   :  { %v413_v51 = vpop.xlane.xlu1 %412 }
 0x3c9   :  { %v417_v53 = vsub.f32 %v400_v43, %v413_v51  ;;  %v420_v54 = vmul.f32 1.442695, %v415_v50 }
 0x3ca   :  { %v410_v55 = vpop.xlane.xlu0 %409 }
 0x3cb   :  { %v424_v56 = vmul.f32 1.442695, %v417_v53  ;;  %v416_v57 = vsub.f32 %v399_v45, %v410_v55 }
 0x3cc   :  { %v496_v58 = vpop.permute.xlu1 %495 }
 0x3cd   :  { %4191 = vpow2.f32 %v424_v56  ;;  %v422_v60 = vmul.f32 1.442695, %v416_v57  ;;  %3825 = vmatpush3.bf16.msra.mxu0 %v496_v58 }
 0x3ce   :  { %4193 = vpow2.f32 %v420_v54  ;;  %3836 = vmatprep.subr.bf16.mxu0 %v4466_v10 }
 0x3cf   :  { %4195 = vpow2.f32 %v422_v60 }
 0x3d0   :  { %4197 = vpow2.f32 %v418_v59  ;;  %v545_v0 = vpop.permute.xlu1 %544 }
 0x3d1   :  { %v550_v31 = vsel %vm283_vm2, %v545_v0, 0 }
 0x3d7   :  { %v4192_v61 = vpop.eup %4191 }
 0x3d8   :  { %v4194_v62 = vpop.eup %4193  ;;  %v435_v63 = vsel %vm401_vm3, %v4192_v61, 0.0 }
 0x3d9   :  { %v4196_v4 = vpop.eup %4195  ;;  %436 = vadd.xlane.f32.xlu1 %v435_v63  ;;  %v429_v7 = vsel %vm401_vm3, %v4194_v62, 0.0 }
 0x3da   :  { %v432_v6 = vsel %vm401_vm3, %v4196_v4, 0.0  ;;  %v4198_v1 = vpop.eup %4197 }
 0x3db   :  { %433 = vadd.xlane.f32.xlu0 %v432_v6  ;;  %v426_v8 = vsel %vm401_vm3, %v4198_v1, 0.0 }
 0x3dd   :  { %430 = vadd.xlane.f32.xlu1 %v429_v7 }
 0x3df   :  { %427 = vadd.xlane.f32.xlu0 %v426_v8 }
 0x3ee   :  { %595 = vrot.lane.b32.xlu1 %v4698_v20, %s4469_s10 }
 0x3f2   :  { %593 = vrot.lane.b32.xlu1 %v4698_v20, %s4470_s1 }
 0x3f5   :  { %448 = vrot.lane.b32.xlu0 %v4700_v21, %s4464_s24 }
 0x3f9   :  { %542 = vrot.lane.b32.xlu0 %v4700_v21, %s4470_s1 }
 0x466   :  { %v437_v11 = vpop.xlane.xlu1 %436 }
 0x467   :  { %4199 = vrcp.f32 %v437_v11 }
 0x468   :  { %v434_v12 = vpop.xlane.xlu0 %433 }
 0x469   :  { %4201 = vrcp.f32 %v434_v12 }
 0x46a   :  { %v431_v13 = vpop.xlane.xlu1 %430 }
 0x46b   :  { %4203 = vrcp.f32 %v431_v13 }
 0x46c   :  { %v428_v14 = vpop.xlane.xlu0 %427 }
 0x46d   :  { %4205 = vrcp.f32 %v428_v14 }
 0x46e   :  { %v596_v23 = vpop.permute.xlu1 %595 }
 0x46f   :  { %v601_v28 = vsel %vm283_vm2, %v596_v23, 0 }
 0x470   :  { %v449_v15 = vpop.permute.xlu0 %448 }
 0x471   :  { %v4200_v16 = vpop.eup %4199  ;;  %3819 = vmatpush3.bf16.msra.mxu1 %v449_v15 }
 0x472   :  { %3830 = vmatprep.subr.bf16.mxu1 %v4466_v10  ;;  %v445_v18 = vmul.f32 %v4200_v16, %v4192_v61  ;;  %v594_v32 = vpop.permute.xlu1 %593 }
 0x473   :  { %v4202_v17 = vpop.eup %4201 }
 0x474   :  { %v444_v19 = vmul.f32 %v4202_v17, %v4196_v4  ;;  %v543_v33 = vpop.permute.xlu0 %542 }
 0x475   :  { %v4204_v22 = vpop.eup %4203 }
 0x476   :  { %v447_v24 = vpack.c.bf16 %v445_v18, %v444_v19  ;;  %v443_v26 = vmul.f32 %v4204_v22, %v4194_v62 }
 0x477   :  { %v4206_v25 = vpop.eup %4205 }
 0x478   :  { %v442_v27 = vmul.f32 %v4206_v25, %v4198_v1  ;;  %3827 = vmatmul.mubr.msk.bf16.vlgmr.msra.gmra.mrb[8].mxu0 %vm401_vm3, %v447_v24 }
 0x479   :  { %3837 = vmatpush3.bf16.xpose.msra.mxu0 %v601_v28  ;;  %3838 = vmatprep.mubr.msk.bf16.mxu0 %vm4467_vm1, %v4466_v10 }
 0x47a   :  { %v446_v30 = vpack.c.bf16 %v443_v26, %v442_v27  ;;  %3848 = vmatprep.subr.bf16.mxu0 %v4466_v10 }
 0x47c   :  { %3821 = vmatmul.mubr.msk.bf16.vlgmr.msra.gmra.mrb[4].mxu1 %vm401_vm3, %v446_v30 }
 0x47d   :  { %3831 = vmatpush3.bf16.xpose.msra.mxu1 %v550_v31  ;;  %3832 = vmatprep.mubr.msk.bf16.mxu1 %vm4467_vm1, %v4466_v10 }
 0x47e   :  { %3842 = vmatprep.subr.bf16.mxu1 %v4466_v10 }
 0x480   :  { %3839 = vmatmul.mubr.msk.bf16.vlgmr.msra.gmra.mrb[12].mxu0 %vm283_vm2, %v594_v32 }
 0x481   :  { %3850 = vmatprep.mubr.msk.bf16.mxu0 %vm4467_vm1, %v4466_v10 }
 0x484   :  { %3833 = vmatmul.mubr.msk.bf16.vlgmr.msra.gmra.mrb[8].mxu1 %vm283_vm2, %v543_v33 }
 0x485   :  { %3844 = vmatprep.mubr.msk.bf16.mxu1 %vm4467_vm1, %v4466_v10 }
 0x54b   :  { %v4770_v34 = vpop.f32.mrb[8].mxu0 }
 0x54c   :  { %v3828_v35 = vpop.f32.mrb[9].mxu0 }
 0x54d   :  { %v4772_v36 = vpop.f32.mrb[10].mxu0 }
 0x54e   :  { %v3829_v37 = vpop.f32.mrb[11].mxu0 }
 0x54f   :  { %v4774_v38 = vpop.f32.mrb[4].mxu1 }
 0x550   :  { %v3822_v39 = vpop.f32.mrb[5].mxu1 }
 0x551   :  { %v4776_v41 = vpop.f32.mrb[6].mxu1 }
 0x552   :  { %v3823_v42 = vpop.f32.mrb[7].mxu1 }
 0x553   :  { %v637_v43 = vpop.f32.mrb[12].mxu0 }
 0x554   :  { %v3840_v44 = vpop.f32.mrb[13].mxu0  ;;  %v646_v48 = vmul.f32 0.35355338, %v637_v43 }
 0x555   :  { %v640_v45 = vpop.f32.mrb[14].mxu0 }
 0x556   :  { %v3841_v46 = vpop.f32.mrb[15].mxu0  ;;  %v647_v55 = vmul.f32 0.35355338, %v640_v45  ;;  %v650_v58 = vadd.f32 %v4727_v40, %v646_v48 }
 0x557   :  { %v586_v47 = vpop.f32.mrb[8].mxu1 }
 0x558   :  { %v644_v49 = vmul.f32 0.35355338, %v586_v47  ;;  %v3834_v50 = vpop.f32.mrb[9].mxu1  ;;  %v658_v60 = vsel %vm401_vm3, %v650_v58, -inf  ;;  %v651_v61 = vadd.f32 %v4727_v40, %v647_v55 }
 0x559   :  { %v589_v51 = vpop.f32.mrb[10].mxu1 }
 0x55a   :  { %v645_v52 = vmul.f32 0.35355338, %v589_v51  ;;  %v3835_v53 = vpop.f32.mrb[11].mxu1  ;;  %v648_v54 = vadd.f32 %v4721_v29, %v644_v49  ;;  %v661_v62 = vsel %vm401_vm3, %v651_v61, -inf }
 0x55c   :  { %v652_v56 = vsel %vm401_vm3, %v648_v54, -inf  ;;  %v649_v57 = vadd.f32 %v4721_v29, %v645_v52 }
 0x55d   :  { %653 = vmax.xlane.f32.xlu0 %v652_v56 }
 0x55e   :  { %v655_v59 = vsel %vm401_vm3, %v649_v57, -inf }
 0x55f   :  { %656 = vmax.xlane.f32.xlu1 %v655_v59 }
 0x561   :  { %659 = vmax.xlane.f32.xlu0 %v658_v60 }
 0x565   :  { %662 = vmax.xlane.f32.xlu0 %v661_v62 }
 0x570   :  { %745 = vrot.lane.b32.xlu1 %v4698_v20, %s4471_s4 }
 0x574   :  { %794 = vrot.lane.b32.xlu1 %v4700_v21, %s4472_s29 }
 0x5ea   :  { %v654_v63 = vpop.xlane.xlu0 %653 }
 0x5eb   :  { %v664_v6 = vsub.f32 %v648_v54, %v654_v63 }
 0x5ec   :  { %v657_v4 = vpop.xlane.xlu1 %656 }
 0x5ed   :  { %v668_v0 = vmul.f32 1.442695, %v664_v6  ;;  %v665_v11 = vsub.f32 %v649_v57, %v657_v4 }
 0x5ee   :  { %v660_v1 = vpop.xlane.xlu0 %659 }
 0x5ef   :  { %v666_v7 = vsub.f32 %v650_v58, %v660_v1  ;;  %v670_v15 = vmul.f32 1.442695, %v665_v11 }
 0x5f0   :  { %v746_v8 = vpop.permute.xlu1 %745 }
 0x5f1   :  { %v672_v12 = vmul.f32 1.442695, %v666_v7  ;;  %3849 = vmatpush3.bf16.msra.mxu0 %v746_v8 }
 0x5f2   :  { %v663_v13 = vpop.xlane.xlu0 %662  ;;  %3860 = vmatprep.subr.bf16.mxu0 %v4466_v10 }
 0x5f3   :  { %4207 = vpow2.f32 %v672_v12  ;;  %v667_v14 = vsub.f32 %v651_v61, %v663_v13 }
 0x5f4   :  { %4209 = vpow2.f32 %v668_v0  ;;  %v795_v27 = vpop.permute.xlu1 %794 }
 0x5f5   :  { %v674_v16 = vmul.f32 1.442695, %v667_v14  ;;  %v800_v51 = vsel %vm283_vm2, %v795_v27, 0 }
 0x5f7   :  { %4211 = vpow2.f32 %v674_v16 }
 0x5f8   :  { %4213 = vpow2.f32 %v670_v15 }
 0x5fd   :  { %v4208_v17 = vpop.eup %4207 }
 0x5fe   :  { %v682_v18 = vsel %vm401_vm3, %v4208_v17, 0.0  ;;  %v4210_v19 = vpop.eup %4209 }
 0x5ff   :  { %683 = vadd.xlane.f32.xlu0 %v682_v18  ;;  %v676_v23 = vsel %vm401_vm3, %v4210_v19, 0.0 }
 0x601   :  { %v4212_v22 = vpop.eup %4211 }
 0x602   :  { %v685_v24 = vsel %vm401_vm3, %v4212_v22, 0.0  ;;  %v4214_v25 = vpop.eup %4213 }
 0x603   :  { %677 = vadd.xlane.f32.xlu0 %v676_v23  ;;  %686 = vadd.xlane.f32.xlu1 %v685_v24  ;;  %v679_v26 = vsel %vm401_vm3, %v4214_v25, 0.0 }
 0x607   :  { %680 = vadd.xlane.f32.xlu1 %v679_v26 }
 0x618   :  { %845 = vrot.lane.b32.xlu1 %v4698_v20, %s4472_s29 }
 0x619   :  { %698 = vrot.lane.b32.xlu0 %v4700_v21, %s4471_s4 }
 0x61c   :  { %843 = vrot.lane.b32.xlu1 %v4698_v20, %s5494_s25 }
 0x61d   :  { %792 = vrot.lane.b32.xlu0 %v4700_v21, %s5494_s25 }
 0x68c   :  { %v684_v28 = vpop.xlane.xlu0 %683 }
 0x68d   :  { %4215 = vrcp.f32 %v684_v28 }
 0x690   :  { %v678_v30 = vpop.xlane.xlu0 %677  ;;  %v687_v31 = vpop.xlane.xlu1 %686 }
 0x691   :  { %4217 = vrcp.f32 %v687_v31 }
 0x692   :  { %4219 = vrcp.f32 %v678_v30 }
 0x694   :  { %v699_v32 = vpop.permute.xlu0 %698  ;;  %v681_v33 = vpop.xlane.xlu1 %680 }
 0x695   :  { %4221 = vrcp.f32 %v681_v33  ;;  %3843 = vmatpush3.bf16.msra.mxu1 %v699_v32 }
 0x696   :  { %3854 = vmatprep.subr.bf16.mxu1 %v4466_v10 }
 0x697   :  { %v4216_v35 = vpop.eup %4215 }
 0x698   :  { %v694_v42 = vmul.f32 %v4216_v35, %v4208_v17  ;;  %v846_v44 = vpop.permute.xlu1 %845  ;;  %v793_v53 = vpop.permute.xlu0 %792 }
 0x699   :  { %v851_v49 = vsel %vm283_vm2, %v846_v44, 0 }
 0x69b   :  { %v4218_v37 = vpop.eup %4217 }
 0x69c   :  { %v4220_v39 = vpop.eup %4219  ;;  %v695_v43 = vmul.f32 %v4218_v37, %v4212_v22  ;;  %v844_v52 = vpop.permute.xlu1 %843 }
 0x69d   :  { %v692_v47 = vmul.f32 %v4220_v39, %v4210_v19 }
 0x69e   :  { %v697_v46 = vpack.c.bf16 %v695_v43, %v694_v42 }
 0x69f   :  { %v4222_v45 = vpop.eup %4221 }
 0x6a0   :  { %v693_v48 = vmul.f32 %v4222_v45, %v4214_v25  ;;  %3851 = vmatmul.mubr.msk.bf16.vlgmr.msra.gmra.mrb[16].mxu0 %vm401_vm3, %v697_v46 }
 0x6a1   :  { %3861 = vmatpush3.bf16.xpose.msra.mxu0 %v851_v49  ;;  %3862 = vmatprep.mubr.msk.bf16.mxu0 %vm4467_vm1, %v4466_v10 }
 0x6a2   :  { %v696_v50 = vpack.c.bf16 %v693_v48, %v692_v47  ;;  %3872 = vmatprep.subr.bf16.mxu0 %v4466_v10 }
 0x6a4   :  { %3845 = vmatmul.mubr.msk.bf16.vlgmr.msra.gmra.mrb[12].mxu1 %vm401_vm3, %v696_v50 }
 0x6a5   :  { %3855 = vmatpush3.bf16.xpose.msra.mxu1 %v800_v51  ;;  %3856 = vmatprep.mubr.msk.bf16.mxu1 %vm4467_vm1, %v4466_v10 }
 0x6a6   :  { %3866 = vmatprep.subr.bf16.mxu1 %v4466_v10 }
 0x6a8   :  { %3863 = vmatmul.mubr.msk.bf16.vlgmr.msra.gmra.mrb[20].mxu0 %vm283_vm2, %v844_v52 }
 0x6a9   :  { %3874 = vmatprep.mubr.msk.bf16.mxu0 %vm4467_vm1, %v4466_v10 }
 0x6ac   :  { %3857 = vmatmul.mubr.msk.bf16.vlgmr.msra.gmra.mrb[16].mxu1 %vm283_vm2, %v793_v53 }
 0x6ad   :  { %3868 = vmatprep.mubr.msk.bf16.mxu1 %vm4467_vm1, %v4466_v10 }
 0x773   :  { %v4820_v54 = vpop.f32.mrb[16].mxu0 }
 0x774   :  { %v3852_v55 = vpop.f32.mrb[17].mxu0 }
 0x775   :  { %v4822_v56 = vpop.f32.mrb[18].mxu0 }
 0x776   :  { %v4104_v57 = vpack.i.bf16 %v4822_v56, %v4820_v54  ;;  %v3853_v58 = vpop.f32.mrb[19].mxu0 }
 0x777   :  { %v4826_v59 = vpop.f32.mrb[12].mxu1 }
 0x778   :  { %v3846_v60 = vpop.f32.mrb[13].mxu1 }
 0x779   :  { %v4828_v61 = vpop.f32.mrb[14].mxu1 }
 0x77a   :  { %v4099_v62 = vpack.i.bf16 %v4828_v61, %v4826_v59  ;;  %v3847_v63 = vpop.f32.mrb[15].mxu1 }
 0x77b   :  { %v887_v4 = vpop.f32.mrb[20].mxu0 }
 0x77c   :  { %v3864_v6 = vpop.f32.mrb[21].mxu0  ;;  %v896_v0 = vmul.f32 0.35355338, %v887_v4 }
 0x77d   :  { %v890_v1 = vpop.f32.mrb[22].mxu0 }
 0x77e   :  { %v3865_v7 = vpop.f32.mrb[23].mxu0  ;;  %v897_v17 = vmul.f32 0.35355338, %v890_v1  ;;  %v900_v22 = vadd.f32 %v4727_v40, %v896_v0 }
 0x77f   :  { %v836_v8 = vpop.f32.mrb[16].mxu1 }
 0x780   :  { %v894_v11 = vmul.f32 0.35355338, %v836_v8  ;;  %v3858_v12 = vpop.f32.mrb[17].mxu1  ;;  %v908_v24 = vsel %vm401_vm3, %v900_v22, -inf  ;;  %v901_v25 = vadd.f32 %v4727_v40, %v897_v17 }
 0x781   :  { %v839_v13 = vpop.f32.mrb[18].mxu1 }
 0x782   :  { %v895_v14 = vmul.f32 0.35355338, %v839_v13  ;;  %v3859_v15 = vpop.f32.mrb[19].mxu1  ;;  %v898_v16 = vadd.f32 %v4721_v29, %v894_v11  ;;  %v911_v26 = vsel %vm401_vm3, %v901_v25, -inf }
 0x784   :  { %v902_v18 = vsel %vm401_vm3, %v898_v16, -inf  ;;  %v899_v19 = vadd.f32 %v4721_v29, %v895_v14 }
 0x785   :  { %903 = vmax.xlane.f32.xlu0 %v902_v18 }
 0x786   :  { %v905_v23 = vsel %vm401_vm3, %v899_v19, -inf }
 0x787   :  { %906 = vmax.xlane.f32.xlu1 %v905_v23 }
 0x789   :  { %909 = vmax.xlane.f32.xlu0 %v908_v24 }
 0x78d   :  { %912 = vmax.xlane.f32.xlu0 %v911_v26 }
 0x798   :  { %995 = vrot.lane.b32.xlu1 %v4698_v20, %s5492_s0 }
 0x79c   :  { %1044 = vrot.lane.b32.xlu1 %v4700_v21, %s5490_s22 }
 0x812   :  { %v904_v27 = vpop.xlane.xlu0 %903 }
 0x813   :  { %v914_v30 = vsub.f32 %v898_v16, %v904_v27 }
 0x814   :  { %v907_v28 = vpop.xlane.xlu1 %906 }
 0x815   :  { %v918_v35 = vmul.f32 1.442695, %v914_v30  ;;  %v915_v37 = vsub.f32 %v899_v19, %v907_v28 }
 0x816   :  { %v910_v31 = vpop.xlane.xlu0 %909 }
 0x817   :  { %v916_v32 = vsub.f32 %v900_v22, %v910_v31  ;;  %v920_v44 = vmul.f32 1.442695, %v915_v37 }
 0x818   :  { %v996_v33 = vpop.permute.xlu1 %995 }
 0x819   :  { %v922_v39 = vmul.f32 1.442695, %v916_v32  ;;  %3873 = vmatpush3.bf16.msra.mxu0 %v996_v33 }
 0x81a   :  { %v913_v42 = vpop.xlane.xlu0 %912  ;;  %3884 = vmatprep.subr.bf16.mxu0 %v4466_v10 }
 0x81b   :  { %4223 = vpow2.f32 %v922_v39  ;;  %v917_v43 = vsub.f32 %v901_v25, %v913_v42 }
 0x81c   :  { %4225 = vpow2.f32 %v918_v35  ;;  %v1045_v55 = vpop.permute.xlu1 %1044 }
 0x81d   :  { %v924_v45 = vmul.f32 1.442695, %v917_v43  ;;  %v1050_v19 = vsel %vm283_vm2, %v1045_v55, 0 }
 0x81f   :  { %4227 = vpow2.f32 %v924_v45 }
 0x820   :  { %4229 = vpow2.f32 %v920_v44 }
 0x825   :  { %v4224_v46 = vpop.eup %4223 }
 0x826   :  { %v932_v47 = vsel %vm401_vm3, %v4224_v46, 0.0  ;;  %v4226_v48 = vpop.eup %4225 }
 0x827   :  { %933 = vadd.xlane.f32.xlu0 %v932_v47  ;;  %v926_v50 = vsel %vm401_vm3, %v4226_v48, 0.0 }
 0x829   :  { %v4228_v49 = vpop.eup %4227 }
 0x82a   :  { %v935_v51 = vsel %vm401_vm3, %v4228_v49, 0.0  ;;  %v4230_v52 = vpop.eup %4229 }
 0x82b   :  { %927 = vadd.xlane.f32.xlu0 %v926_v50  ;;  %936 = vadd.xlane.f32.xlu1 %v935_v51  ;;  %v929_v53 = vsel %vm401_vm3, %v4230_v52, 0.0 }
 0x82f   :  { %930 = vadd.xlane.f32.xlu1 %v929_v53 }
 0x840   :  { %1095 = vrot.lane.b32.xlu1 %v4698_v20, %s5490_s22 }
 0x841   :  { %948 = vrot.lane.b32.xlu0 %v4700_v21, %s5492_s0  ;;  %s5513_s0 = smov 24  }
 0x844   :  { %1093 = vrot.lane.b32.xlu1 %v4698_v20, %s5486_s3 }
 0x845   :  { %1042 = vrot.lane.b32.xlu0 %v4700_v21, %s5486_s3  ;;  %s5488_s3 = smov 24  }
 0x8b4   :  { %v934_v58 = vpop.xlane.xlu0 %933 }
 0x8b5   :  { %4231 = vrcp.f32 %v934_v58 }
 0x8b8   :  { %v928_v60 = vpop.xlane.xlu0 %927  ;;  %v937_v63 = vpop.xlane.xlu1 %936 }
 0x8b9   :  { %4233 = vrcp.f32 %v937_v63 }
 0x8ba   :  { %4235 = vrcp.f32 %v928_v60 }
 0x8bc   :  { %v949_v4 = vpop.permute.xlu0 %948  ;;  %v931_v6 = vpop.xlane.xlu1 %930 }
 0x8bd   :  { %4237 = vrcp.f32 %v931_v6  ;;  %3867 = vmatpush3.bf16.msra.mxu1 %v949_v4 }
 0x8be   :  { %3878 = vmatprep.subr.bf16.mxu1 %v4466_v10 }
 0x8bf   :  { %v4232_v1 = vpop.eup %4231 }
 0x8c0   :  { %v944_v0 = vmul.f32 %v4232_v1, %v4224_v46  ;;  %v1096_v12 = vpop.permute.xlu1 %1095  ;;  %v1043_v23 = vpop.permute.xlu0 %1042 }
 0x8c1   :  { %v1101_v17 = vsel %vm283_vm2, %v1096_v12, 0 }
 0x8c3   :  { %v4234_v7 = vpop.eup %4233 }
 0x8c4   :  { %v4236_v8 = vpop.eup %4235  ;;  %v945_v11 = vmul.f32 %v4234_v7, %v4228_v49  ;;  %v1094_v22 = vpop.permute.xlu1 %1093 }
 0x8c5   :  { %v942_v15 = vmul.f32 %v4236_v8, %v4226_v48 }
 0x8c6   :  { %v947_v14 = vpack.c.bf16 %v945_v11, %v944_v0 }
 0x8c7   :  { %v4238_v13 = vpop.eup %4237 }
 0x8c8   :  { %v943_v16 = vmul.f32 %v4238_v13, %v4230_v52  ;;  %3875 = vmatmul.mubr.msk.bf16.vlgmr.msra.gmra.mrb[24].mxu0 %vm401_vm3, %v947_v14 }
 0x8c9   :  { %3885 = vmatpush3.bf16.xpose.msra.mxu0 %v1101_v17  ;;  %3886 = vmatprep.mubr.msk.bf16.mxu0 %vm4467_vm1, %v4466_v10 }
 0x8ca   :  { %v946_v18 = vpack.c.bf16 %v943_v16, %v942_v15  ;;  %3896 = vmatprep.subr.bf16.mxu0 %v4466_v10 }
 0x8cc   :  { %3869 = vmatmul.mubr.msk.bf16.vlgmr.msra.gmra.mrb[20].mxu1 %vm401_vm3, %v946_v18 }
 0x8cd   :  { %3879 = vmatpush3.bf16.xpose.msra.mxu1 %v1050_v19  ;;  %3880 = vmatprep.mubr.msk.bf16.mxu1 %vm4467_vm1, %v4466_v10 }
 0x8ce   :  { %3890 = vmatprep.subr.bf16.mxu1 %v4466_v10 }
 0x8d0   :  { %3887 = vmatmul.mubr.msk.bf16.vlgmr.msra.gmra.mrb[28].mxu0 %vm283_vm2, %v1094_v22 }
 0x8d1   :  { %3898 = vmatprep.mubr.msk.bf16.mxu0 %vm4467_vm1, %v4466_v10 }
 0x8d4   :  { %3881 = vmatmul.mubr.msk.bf16.vlgmr.msra.gmra.mrb[24].mxu1 %vm283_vm2, %v1043_v23 }
 0x8d5   :  { %3892 = vmatprep.mubr.msk.bf16.mxu1 %vm4467_vm1, %v4466_v10 }
 0x99b   :  { %v4874_v24 = vpop.f32.mrb[24].mxu0 }
 0x99c   :  { %v3876_v25 = vpop.f32.mrb[25].mxu0 }
 0x99d   :  { %v4876_v26 = vpop.f32.mrb[26].mxu0 }
 0x99e   :  { %v4114_v27 = vpack.i.bf16 %v4876_v26, %v4874_v24  ;;  %v3877_v28 = vpop.f32.mrb[27].mxu0 }
 0x99f   :  { %v4880_v30 = vpop.f32.mrb[20].mxu1 }
 0x9a0   :  { %v3870_v31 = vpop.f32.mrb[21].mxu1 }
 0x9a1   :  { %v991_v32 = vpop.f32.mrb[22].mxu1 }
 0x9a2   :  { %v4109_v33 = vpack.i.bf16 %v991_v32, %v4880_v30  ;;  %v3871_v35 = vpop.f32.mrb[23].mxu1 }
 0x9a3   :  { %v1137_v37 = vpop.f32.mrb[28].mxu0 }
 0x9a4   :  { %v3888_v39 = vpop.f32.mrb[29].mxu0  ;;  %v1146_v45 = vmul.f32 0.35355338, %v1137_v37 }
 0x9a5   :  { %v1140_v42 = vpop.f32.mrb[30].mxu0  ;;  %v4161_v39 = vld [vmem:[%s5460_s6] sm:$0xff]  }
 0x9a6   :  { %v3889_v43 = vpop.f32.mrb[31].mxu0  ;;  %v1147_v52 = vmul.f32 0.35355338, %v1140_v42  ;;  %v1150_v58 = vadd.f32 %v4727_v40, %v1146_v45  ;;  %v4162_v42 = vld [vmem:[%s5460_s6 + $0x8] sm:$0xff]  }
 0x9a7   :  { %v1086_v44 = vpop.f32.mrb[24].mxu1 }
 0x9a8   :  { %v1144_v46 = vmul.f32 0.35355338, %v1086_v44  ;;  %v3882_v47 = vpop.f32.mrb[25].mxu1  ;;  %v1158_v63 = vsel %vm401_vm3, %v1150_v58, -inf  ;;  %v1151_v4 = vadd.f32 %v4727_v40, %v1147_v52 }
 0x9a9   :  { %v1089_v48 = vpop.f32.mrb[26].mxu1 }
 0x9aa   :  { %v1145_v49 = vmul.f32 0.35355338, %v1089_v48  ;;  %v3883_v50 = vpop.f32.mrb[27].mxu1  ;;  %v1148_v51 = vadd.f32 %v4721_v29, %v1144_v46  ;;  %v1161_v6 = vsel %vm401_vm3, %v1151_v4, -inf }
 0x9ac   :  { %v1152_v53 = vsel %vm401_vm3, %v1148_v51, -inf  ;;  %v1149_v55 = vadd.f32 %v4721_v29, %v1145_v49 }
 0x9ad   :  { %1153 = vmax.xlane.f32.xlu0 %v1152_v53 }
 0x9ae   :  { %v1155_v60 = vsel %vm401_vm3, %v1149_v55, -inf }
 0x9af   :  { %1156 = vmax.xlane.f32.xlu1 %v1155_v60 }
 0x9b1   :  { %1159 = vmax.xlane.f32.xlu0 %v1158_v63 }
 0x9b5   :  { %1162 = vmax.xlane.f32.xlu0 %v1161_v6 }
 0xa3a   :  { %v1154_v1 = vpop.xlane.xlu0 %1153 }
 0xa3b   :  { %v1164_v7 = vsub.f32 %v1148_v51, %v1154_v1 }
 0xa3c   :  { %v1157_v8 = vpop.xlane.xlu1 %1156 }
 0xa3d   :  { %v1168_v29 = vmul.f32 1.442695, %v1164_v7  ;;  %v1165_v12 = vsub.f32 %v1149_v55, %v1157_v8 }
 0xa3e   :  { %v1160_v0 = vpop.xlane.xlu0 %1159 }
 0xa3f   :  { %v1166_v11 = vsub.f32 %v1150_v58, %v1160_v0  ;;  %v1170_v16 = vmul.f32 1.442695, %v1165_v12 }
 0xa41   :  { %v1172_v13 = vmul.f32 1.442695, %v1166_v11 }
 0xa42   :  { %v1163_v14 = vpop.xlane.xlu0 %1162 }
 0xa43   :  { %4239 = vpow2.f32 %v1172_v13  ;;  %v1167_v15 = vsub.f32 %v1151_v4, %v1163_v14 }
 0xa44   :  { %4241 = vpow2.f32 %v1168_v29 }
 0xa45   :  { %v1174_v17 = vmul.f32 1.442695, %v1167_v15 }
 0xa47   :  { %4243 = vpow2.f32 %v1174_v17 }
 0xa48   :  { %4245 = vpow2.f32 %v1170_v16 }
 0xa4d   :  { %v4240_v40 = vpop.eup %4239 }
 0xa4e   :  { %v1182_v18 = vsel %vm401_vm3, %v4240_v40, 0.0  ;;  %v4242_v19 = vpop.eup %4241 }
 0xa4f   :  { %1183 = vadd.xlane.f32.xlu0 %v1182_v18  ;;  %v1176_v23 = vsel %vm401_vm3, %v4242_v19, 0.0 }
 0xa51   :  { %v4244_v22 = vpop.eup %4243 }
 0xa52   :  { %v1185_v25 = vsel %vm401_vm3, %v4244_v22, 0.0  ;;  %v4246_v28 = vpop.eup %4245 }
 0xa53   :  { %1177 = vadd.xlane.f32.xlu0 %v1176_v23  ;;  %1186 = vadd.xlane.f32.xlu1 %v1185_v25  ;;  %v1179_v30 = vsel %vm401_vm3, %v4246_v28, 0.0 }
 0xa57   :  { %1180 = vadd.xlane.f32.xlu1 %v1179_v30 }
 0xa68   :  { %1245 = vrot.lane.b32.xlu1 %v4698_v20, %s5484_s23 }
 0xa69   :  { %1198 = vrot.lane.b32.xlu0 %v4700_v21, %s5484_s23 }
 0xa6c   :  { %4100 = vrot.lane.b32.xlu1 %v4099_v62, %s5482_s2 }
 0xa6d   :  { %4110 = vrot.lane.b32.xlu0 %v4109_v33, %s5480_s28 }
 0xa70   :  { %4105 = vrot.lane.b32.xlu1 %v4104_v57, %s5482_s2  ;;  %s5512_s2 = smov 16  }
 0xa74   :  { %4115 = vrot.lane.b32.xlu1 %v4114_v27, %s5480_s28 }
 0xadc   :  { %v1184_v20 = vpop.xlane.xlu0 %1183 }
 0xadd   :  { %4247 = vrcp.f32 %v1184_v20 }
 0xae0   :  { %v1178_v21 = vpop.xlane.xlu0 %1177  ;;  %v1187_v31 = vpop.xlane.xlu1 %1186 }
 0xae1   :  { %4249 = vrcp.f32 %v1187_v31 }
 0xae2   :  { %4251 = vrcp.f32 %v1178_v21  ;;  %v3597_v21 = vld [vmem:[%s5461_s7] ss:$0 sm:$0xff] }
 0xae4   :  { %v1199_v59 = vpop.permute.xlu0 %1198  ;;  %v1181_v61 = vpop.xlane.xlu1 %1180 }
 0xae5   :  { %4253 = vrcp.f32 %v1181_v61  ;;  %3891 = vmatpush3.bf16.msra.mxu1 %v1199_v59 }
 0xae6   :  { %3902 = vmatprep.subr.bf16.mxu1 %v4161_v39 }
 0xae7   :  { %v4248_v32 = vpop.eup %4247 }
 0xae8   :  { %v1246_v62 = vpop.permute.xlu1 %1245  ;;  %v1194_v57 = vmul.f32 %v4248_v32, %v4240_v40  ;;  %v4111_v8 = vpop.permute.xlu0 %4110 }
 0xae9   :  { %3897 = vmatpush3.bf16.msra.mxu0 %v1246_v62  ;;  %v4113_v40 = vunpack.i.h.bf16 %v4111_v8  ;;  %v4112_v18 = vunpack.i.l.bf16 %v4111_v8 }
 0xaeb   :  { %v4250_v54 = vpop.eup %4249 }
 0xaec   :  { %v4252_v56 = vpop.eup %4251  ;;  %v1195_v33 = vmul.f32 %v4250_v54, %v4244_v22  ;;  %v4101_v53 = vpop.permute.xlu1 %4100 }
 0xaed   :  { %v1192_v26 = vmul.f32 %v4252_v56, %v4242_v19  ;;  %v4103_v4 = vunpack.i.h.bf16 %v4101_v53  ;;  %v4102_v6 = vunpack.i.l.bf16 %v4101_v53 }
 0xaee   :  { %v1197_v24 = vpack.c.bf16 %v1195_v33, %v1194_v57 }
 0xaef   :  { %v4254_v35 = vpop.eup %4253  ;;  %v1341_v14 = vsel %vm283_vm2, %v4776_v41, %v4103_v4  ;;  %v1340_v15 = vsel %vm283_vm2, %v4774_v38, %v4102_v6 }
 0xaf0   :  { %v1193_v27 = vmul.f32 %v4254_v35, %v4246_v28  ;;  %3899 = vmatmul.mubr.msk.bf16.vlgmr.msra.gmra.mrb[32].mxu0 %vm401_vm3, %v1197_v24  ;;  %v4106_v55 = vpop.permute.xlu1 %4105  ;;  %v1344_v28 = vsel %vm401_vm3, %v1340_v15, %v4112_v18  ;;  %v1345_v41 = vsel %vm401_vm3, %v1341_v14, %v4113_v40 }
 0xaf1   :  { %v4108_v60 = vunpack.i.h.bf16 %v4106_v55  ;;  %v4107_v63 = vunpack.i.l.bf16 %v4106_v55 }
 0xaf2   :  { %v1196_v37 = vpack.c.bf16 %v1193_v27, %v1192_v26 }
 0xaf3   :  { %v1343_v11 = vsel %vm283_vm2, %v4772_v36, %v4108_v60  ;;  %v1342_v29 = vsel %vm283_vm2, %v4770_v34, %v4107_v63 }
 0xaf4   :  { %3893 = vmatmul.mubr.msk.bf16.vlgmr.msra.gmra.mrb[28].mxu1 %vm401_vm3, %v1196_v37  ;;  %v4116_v58 = vpop.permute.xlu1 %4115 }
 0xaf5   :  { %3903 = vmatpush3.bf16.msra.mxu1 %v4161_v39  ;;  %v4118_v1 = vunpack.i.h.bf16 %v4116_v58  ;;  %v4117_v7 = vunpack.i.l.bf16 %v4116_v58 }
 0xaf6   :  { %3904 = vmatprep.subr.bf16.mxu1 %v4162_v42 }
 0xaf7   :  { %v1346_v16 = vsel %vm401_vm3, %v1342_v29, %v4117_v7  ;;  %v1347_v17 = vsel %vm401_vm3, %v1343_v11, %v4118_v1 }
 0xaf9   :  { %3905 = vmatpush3.bf16.msra.mxu1 %v4162_v42 }
 0xbc3   :  { %v1285_v43 = vpop.f32.mrb[32].mxu0 }
 0xbc4   :  { %v3900_v44 = vpop.f32.mrb[33].mxu0 }
 0xbc5   :  { %v1288_v45 = vpop.f32.mrb[34].mxu0 }
 0xbc6   :  { %v4124_v46 = vpack.i.bf16 %v1288_v45, %v1285_v43  ;;  %v3901_v47 = vpop.f32.mrb[35].mxu0 }
 0xbc7   :  { %v1238_v48 = vpop.f32.mrb[28].mxu1  ;;  %v4163_v47 = vld [vmem:[#allocation7] sm:$0xff]  }
 0xbc8   :  { %v3894_v49 = vpop.f32.mrb[29].mxu1  ;;  %4125 = vrot.lane.b32.xlu1 %v4124_v46, %s5488_s3  ;;  %3910 = vmatprep.subr.bf16.mxu0 %v4163_v47 }
 0xbc9   :  { %v1241_v50 = vpop.f32.mrb[30].mxu1  ;;  %3911 = vmatpush3.bf16.msra.mxu0 %v4163_v47 }
 0xbca   :  { %v4119_v51 = vpack.i.bf16 %v1241_v50, %v1238_v48  ;;  %v3895_v52 = vpop.f32.mrb[31].mxu1  ;;  %v4164_v48 = vld [vmem:[#allocation7 + $0x8] sm:$0xff]  }
 0xbcb   :  { %3912 = vmatprep.subr.bf16.mxu0 %v4164_v48 }
 0xbcc   :  { %4120 = vrot.lane.b32.xlu0 %v4119_v51, %s5488_s3 }
 0xbcd   :  { %3913 = vmatpush3.bf16.msra.mxu0 %v4164_v48 }
 0xc3a   :  { %v4126_v0 = vpop.permute.xlu1 %4125 }
 0xc3b   :  { %v4128_v12 = vunpack.i.h.bf16 %v4126_v0  ;;  %v4127_v13 = vunpack.i.l.bf16 %v4126_v0 }
 0xc3d   :  { %v1351_v19 = vsel %vm1348_vm4, %v1346_v16, %v4127_v13  ;;  %v1352_v36 = vsel %vm1348_vm4, %v1347_v17, %v4128_v12 }
 0xc3e   :  { %v4121_v22 = vpop.permute.xlu0 %4120  ;;  %v1354_v34 = vpack.c.bf16 %v1352_v36, %v1351_v19 }
 0xc3f   :  { %v4123_v23 = vunpack.i.h.bf16 %v4121_v22  ;;  %v4122_v25 = vunpack.i.l.bf16 %v4121_v22 }
 0xc41   :  { %v1349_v38 = vsel %vm1348_vm4, %v1344_v28, %v4122_v25  ;;  %v1350_v30 = vsel %vm1348_vm4, %v1345_v41, %v4123_v23 }
 0xc42   :  { %v1353_v20 = vpack.c.bf16 %v1350_v30, %v1349_v38 }
 0xc44   :  { %3906 = vmatprep.mubr.msk.bf16.mxu1 %vm112_vm0, %v1353_v20  ;;  %v3602_v20 = vld [vmem:[%s5462_s8] ss:$0 sm:$0xff] }
 0xc45   :  { %3907 = vmatmul.mubr.msk.bf16.vlgmr.msra.gmra.mrb[32].mxu1 %vm112_vm0, %v1354_v34 }
 0xd18   :  { %v3908_v31 = vpop.f32.mrb[32].mxu1 }
 0xd19   :  { %v1427_v59 = vadd.f32 %v3908_v31, %v3597_v21  ;;  %v1418_v61 = vpop.f32.mrb[33].mxu1 }
 0xd1a   :  { %v1419_v62 = vadd.f32 %v3597_v21, %v1418_v61  ;;  %v3909_v32 = vpop.f32.mrb[34].mxu1 }
 0xd1b   :  { %v4944_v54 = vadd.f32 %v1427_v59, %v4684_v2  ;;  %v1421_v56 = vpop.f32.mrb[35].mxu1  ;;  %v1430_v57 = vadd.f32 %v3909_v32, %v3597_v21 }
 0xd1c   :  { %v1422_v33 = vadd.f32 %v3597_v21, %v1421_v56  ;;  %v4947_v35 = vadd.f32 %v1419_v62, %v4677_v5 }
 0xd1d   :  { %v1445_v24 = vsel %vm112_vm0, %v4944_v54, 0.0  ;;  %v4955_v27 = vadd.f32 %v1430_v57, %v4681_v9  ;;  %v1457_v45 = vmul.f32 %v4944_v54, %v4944_v54  ;;  %v3603_v57 = vld [vmem:[%s5463_s9] ss:$0 sm:$0xff] }
 0xd1e   :  { %v4952_v26 = vadd.f32 %v1422_v33, %v4675_v3  ;;  %1446 = vadd.xlane.f32.xlu0 %v1445_v24  ;;  %v1439_v5 = vsel %vm112_vm0, %v4947_v35, 0.0  ;;  %v1455_v42 = vmul.f32 %v4947_v35, %v4947_v35 }
 0xd1f   :  { %v1458_v3 = vmul.f32 %v4955_v27, %v4955_v27  ;;  %v1448_v9 = vsel %vm112_vm0, %v4955_v27, 0.0  ;;  %v1465_v46 = vsel %vm112_vm0, %v1457_v45, 0.0  ;;  %v4168_v45 = vld [vmem:[%s5466_s12 + $0x18] sm:$0xff]  }
 0xd20   :  { %v1442_v2 = vsel %vm112_vm0, %v4952_v26, 0.0  ;;  %v1456_v37 = vmul.f32 %v4952_v26, %v4952_v26  ;;  %v1459_v44 = vsel %vm112_vm0, %v1455_v42, 0.0  ;;  %v4165_v42 = vld [vmem:[%s5466_s12] sm:$0xff]  }
 0xd21   :  { %1443 = vadd.xlane.f32.xlu1 %v1442_v2  ;;  %v1468_v43 = vsel %vm112_vm0, %v1458_v3, 0.0  ;;  %3918 = vmatprep.subr.bf16.mxu1 %v4165_v42 }
 0xd22   :  { %1440 = vadd.xlane.f32.xlu0 %v1439_v5  ;;  %v1462_v39 = vsel %vm112_vm0, %v1456_v37, 0.0  ;;  %3919 = vmatpush3.bf16.msra.mxu1 %v4165_v42 }
 0xd25   :  { %1463 = vadd.xlane.f32.xlu1 %v1462_v39 }
 0xd26   :  { %1449 = vadd.xlane.f32.xlu0 %v1448_v9 }
 0xd29   :  { %1469 = vadd.xlane.f32.xlu1 %v1468_v43  ;;  %v4166_v43 = vld [vmem:[%s5466_s12 + $0x8] sm:$0xff]  }
 0xd2a   :  { %1460 = vadd.xlane.f32.xlu0 %v1459_v44  ;;  %3920 = vmatprep.subr.bf16.mxu1 %v4166_v43  ;;  %v4167_v44 = vld [vmem:[%s5466_s12 + $0x10] sm:$0xff]  }
 0xd2b   :  { %3921 = vmatpush3.bf16.msra.mxu1 %v4166_v43 }
 0xd2c   :  { %3922 = vmatprep.subr.bf16.mxu1 %v4167_v44 }
 0xd2e   :  { %1466 = vadd.xlane.f32.xlu0 %v1465_v46  ;;  %v3604_v46 = vld [vmem:[%s5465_s11] ss:$0 sm:$0xff] }
 0xd2f   :  { %3923 = vmatpush3.bf16.msra.mxu1 %v4167_v44 }
 0xd30   :  { %3924 = vmatprep.subr.bf16.mxu1 %v4168_v45 }
 0xd33   :  { %3925 = vmatpush3.bf16.msra.mxu1 %v4168_v45 }
 0xd34   :  { %3944 = vmatprep.subr.bf16.mxu1 %v4466_v10 }
 0xdab   :  { %v1447_v49 = vpop.xlane.xlu0 %1446 }
 0xdac   :  { %v1453_v29 = vmul.f32 0.03125, %v1447_v49 }
 0xdae   :  { %v1444_v50 = vpop.xlane.xlu1 %1443  ;;  %v1477_v18 = vmul.f32 %v1453_v29, %v1453_v29  ;;  %v1489_v33 = vsub.f32 %v4944_v54, %v1453_v29 }
 0xdaf   :  { %v1452_v51 = vmul.f32 0.03125, %v1444_v50  ;;  %v1441_v52 = vpop.xlane.xlu0 %1440 }
 0xdb0   :  { %v1451_v63 = vmul.f32 0.03125, %v1441_v52 }
 0xdb1   :  { %v1476_v55 = vmul.f32 %v1452_v51, %v1452_v51  ;;  %v1488_v38 = vsub.f32 %v4952_v26, %v1452_v51 }
 0xdb2   :  { %v1464_v53 = vpop.xlane.xlu1 %1463  ;;  %v1475_v12 = vmul.f32 %v1451_v63, %v1451_v63  ;;  %v1487_v31 = vsub.f32 %v4947_v35, %v1451_v63 }
 0xdb3   :  { %v1472_v58 = vmul.f32 0.03125, %v1464_v53  ;;  %v1450_v60 = vpop.xlane.xlu0 %1449 }
 0xdb4   :  { %v1454_v4 = vmul.f32 0.03125, %v1450_v60 }
 0xdb5   :  { %v1480_v6 = vsub.f32 %v1472_v58, %v1476_v55 }
 0xdb6   :  { %v1478_v1 = vmul.f32 %v1454_v4, %v1454_v4  ;;  %v1470_v7 = vpop.xlane.xlu1 %1469  ;;  %v1490_v59 = vsub.f32 %v4955_v27, %v1454_v4 }
 0xdb7   :  { %v1484_v8 = vmax.f32 %v1480_v6, 0.0  ;;  %v1474_v0 = vmul.f32 0.03125, %v1470_v7  ;;  %v1461_v11 = vpop.xlane.xlu0 %1460 }
 0xdb8   :  { %v1471_v13 = vmul.f32 0.03125, %v1461_v11 }
 0xdb9   :  { %v1492_v14 = vadd.f32 1e-12, %v1484_v8  ;;  %v1482_v15 = vsub.f32 %v1474_v0, %v1478_v1 }
 0xdba   :  { %v1479_v16 = vsub.f32 %v1471_v13, %v1475_v12 }
 0xdbb   :  { %4255 = vrsqrt.f32 %v1492_v14  ;;  %v1486_v17 = vmax.f32 %v1482_v15, 0.0  ;;  %v1467_v40 = vpop.xlane.xlu0 %1466 }
 0xdbc   :  { %v1483_v19 = vmax.f32 %v1479_v16, 0.0  ;;  %v1473_v36 = vmul.f32 0.03125, %v1467_v40 }
 0xdbd   :  { %v1494_v22 = vadd.f32 1e-12, %v1486_v17 }
 0xdbe   :  { %v1491_v34 = vadd.f32 1e-12, %v1483_v19  ;;  %v1481_v23 = vsub.f32 %v1473_v36, %v1477_v18 }
 0xdbf   :  { %4257 = vrsqrt.f32 %v1494_v22 }
 0xdc0   :  { %4259 = vrsqrt.f32 %v1491_v34  ;;  %v1485_v25 = vmax.f32 %v1481_v23, 0.0 }
 0xdc2   :  { %v1493_v28 = vadd.f32 1e-12, %v1485_v25 }
 0xdc4   :  { %4261 = vrsqrt.f32 %v1493_v28 }
 0xdc5   :  { %v4256_v41 = vpop.eup %4255 }
 0xdc6   :  { %v1500_v30 = vmul.f32 %v4256_v41, %v1488_v38 }
 0xdc8   :  { %v1510_v56 = vmul.f32 %v3602_v20, %v1500_v30 }
 0xdc9   :  { %v4258_v21 = vpop.eup %4257 }
 0xdca   :  { %v4260_v61 = vpop.eup %4259  ;;  %v1502_v62 = vmul.f32 %v4258_v21, %v1490_v59  ;;  %v4987_v5 = vadd.f32 %v3603_v57, %v1510_v56 }
 0xdcb   :  { %v1499_v32 = vmul.f32 %v4260_v61, %v1487_v31 }
 0xdcc   :  { %v1512_v35 = vmul.f32 %v3602_v20, %v1502_v62 }
 0xdcd   :  { %v1509_v24 = vmul.f32 %v3602_v20, %v1499_v32 }
 0xdce   :  { %v4262_v26 = vpop.eup %4261  ;;  %v4994_v9 = vadd.f32 %v3603_v57, %v1512_v35 }
 0xdcf   :  { %v1501_v2 = vmul.f32 %v4262_v26, %v1489_v33  ;;  %v4985_v37 = vadd.f32 %v3603_v57, %v1509_v24  ;;  %v3609_v33 = vld [vmem:[%s5467_s13] ss:$0 sm:$0xff] }
 0xdd1   :  { %v1523_v27 = vpack.c.bf16 %v4987_v5, %v4985_v37  ;;  %v1511_v39 = vmul.f32 %v3602_v20, %v1501_v2 }
 0xdd3   :  { %3914 = vmatprep.mubr.msk.bf16.mxu0 %vm112_vm0, %v1523_v27  ;;  %v4992_v3 = vadd.f32 %v3603_v57, %v1511_v39 }
 0xdd5   :  { %v1524_v54 = vpack.c.bf16 %v4994_v9, %v4992_v3 }
 0xdd7   :  { %3915 = vmatmul.mubr.msk.bf16.vlgmr.msra.gmra.mrb[36].mxu0 %vm112_vm0, %v1524_v54 }
 0xeaa   :  { %v3916_v47 = vpop.f32.mrb[36].mxu0 }
 0xeab   :  { %v1597_v48 = vadd.f32 %v3916_v47, %v3604_v46  ;;  %v1588_v49 = vpop.f32.mrb[37].mxu0 }
 0xeac   :  { %v1589_v50 = vadd.f32 %v3604_v46, %v1588_v49  ;;  %v3917_v51 = vpop.f32.mrb[38].mxu0 }
 0xead   :  { %v1605_v52 = vmul.f32 %v1597_v48, %v1597_v48  ;;  %v1600_v53 = vadd.f32 %v3917_v51, %v3604_v46  ;;  %v1591_v55 = vpop.f32.mrb[39].mxu0 }
 0xeae   :  { %v1603_v58 = vmul.f32 %v1589_v50, %v1589_v50  ;;  %v1592_v60 = vadd.f32 %v3604_v46, %v1591_v55 }
 0xeaf   :  { %v1609_v63 = vmul.f32 %v1605_v52, %v1597_v48  ;;  %v1606_v4 = vmul.f32 %v1600_v53, %v1600_v53 }
 0xeb0   :  { %v1607_v6 = vmul.f32 %v1603_v58, %v1589_v50  ;;  %v1604_v1 = vmul.f32 %v1592_v60, %v1592_v60  ;;  %v4169_v58 = vld [vmem:[%s5504_s30 + $0x10] sm:$0xff]  }
 0xeb1   :  { %v1613_v7 = vmul.f32 0.044715, %v1609_v63  ;;  %v1610_v8 = vmul.f32 %v1606_v4, %v1600_v53  ;;  %3930 = vmatprep.subr.bf16.mxu0 %v4169_v58 }
 0xeb2   :  { %v1611_v0 = vmul.f32 0.044715, %v1607_v6  ;;  %v1608_v11 = vmul.f32 %v1604_v1, %v1592_v60  ;;  %3931 = vmatpush3.bf16.msra.mxu0 %v4169_v58 }
 0xeb3   :  { %v1617_v29 = vadd.f32 %v1613_v7, %v1597_v48  ;;  %v1614_v12 = vmul.f32 0.044715, %v1610_v8 }
 0xeb4   :  { %v1615_v13 = vadd.f32 %v1611_v0, %v1589_v50  ;;  %v1612_v14 = vmul.f32 0.044715, %v1608_v11 }
 0xeb5   :  { %v1621_v15 = vmul.f32 0.7978846, %v1617_v29  ;;  %v1618_v16 = vadd.f32 %v1614_v12, %v1600_v53 }
 0xeb6   :  { %v1619_v17 = vmul.f32 0.7978846, %v1615_v13  ;;  %v1616_v40 = vadd.f32 %v1612_v14, %v1592_v60 }
 0xeb7   :  { %4263 = vtanh.f32 %v1621_v15  ;;  %v1622_v18 = vmul.f32 0.7978846, %v1618_v16 }
 0xeb8   :  { %4265 = vtanh.f32 %v1619_v17  ;;  %v1620_v19 = vmul.f32 0.7978846, %v1616_v40 }
 0xeb9   :  { %4267 = vtanh.f32 %v1622_v18 }
 0xeba   :  { %4269 = vtanh.f32 %v1620_v19 }
 0xec1   :  { %v4264_v36 = vpop.eup %4263 }
 0xec2   :  { %v4266_v22 = vpop.eup %4265  ;;  %v1629_v34 = vadd.f32 1.0, %v4264_v36 }
 0xec3   :  { %v4268_v23 = vpop.eup %4267  ;;  %v1627_v25 = vadd.f32 1.0, %v4266_v22 }
 0xec4   :  { %v4270_v28 = vpop.eup %4269  ;;  %v1633_v41 = vmul.f32 0.5, %v1629_v34  ;;  %v1630_v38 = vadd.f32 1.0, %v4268_v23 }
 0xec5   :  { %v1631_v30 = vmul.f32 0.5, %v1627_v25  ;;  %v1628_v20 = vadd.f32 1.0, %v4270_v28 }
 0xec6   :  { %v1634_v21 = vmul.f32 0.5, %v1630_v38  ;;  %v1637_v59 = vmul.f32 %v1633_v41, %v1597_v48 }
 0xec7   :  { %v1632_v31 = vmul.f32 0.5, %v1628_v20  ;;  %v1635_v62 = vmul.f32 %v1631_v30, %v1589_v50 }
 0xec8   :  { %v1638_v61 = vmul.f32 %v1634_v21, %v1600_v53 }
 0xec9   :  { %v1636_v32 = vmul.f32 %v1632_v31, %v1592_v60  ;;  %v4170_v60 = vld [vmem:[%s5504_s30 + $0x18] sm:$0xff]  }
 0xeca   :  { %v1640_v56 = vpack.c.bf16 %v1638_v61, %v1637_v59  ;;  %3932 = vmatprep.subr.bf16.mxu0 %v4170_v60 }
 0xecb   :  { %v1639_v57 = vpack.c.bf16 %v1636_v32, %v1635_v62  ;;  %3933 = vmatpush3.bf16.msra.mxu0 %v4170_v60 }
 0xecc   :  { %3938 = vmatprep.subr.bf16.mxu0 %v4466_v10 }
 0xecd   :  { %3926 = vmatprep.mubr.msk.bf16.mxu1 %vm1680_vm5, %v1639_v57 }
 0xece   :  { %3927 = vmatmul.mubr.msk.bf16.vlgmr.msra.gmra.mrb[36].mxu1 %vm1680_vm5, %v1640_v56  ;;  %v3616_v56 = vld [vmem:[%s5468_s14] ss:$0 sm:$0xff] }
 0xecf   :  { %3946 = vmatprep.mubr.msk.bf16.mxu1 %vm4467_vm1, %v4466_v10 }
 0xfa1   :  { %v3928_v24 = vpop.f32.mrb[36].mxu1 }
 0xfa2   :  { %v1730_v26 = vadd.f32 %v3928_v24, %v3609_v33  ;;  %v1721_v2 = vpop.f32.mrb[37].mxu1 }
 0xfa3   :  { %v1722_v35 = vadd.f32 %v3609_v33, %v1721_v2  ;;  %v3929_v27 = vpop.f32.mrb[38].mxu1 }
 0xfa4   :  { %v5023_v39 = vadd.f32 %v1730_v26, %v4992_v3  ;;  %v1733_v54 = vadd.f32 %v3929_v27, %v3609_v33  ;;  %v1724_v42 = vpop.f32.mrb[39].mxu1 }
 0xfa5   :  { %v1725_v43 = vadd.f32 %v3609_v33, %v1724_v42  ;;  %v5026_v44 = vadd.f32 %v1722_v35, %v4985_v37 }
 0xfa6   :  { %v5029_v45 = vadd.f32 %v1733_v54, %v4994_v9  ;;  %v1748_v46 = vsel %vm112_vm0, %v5023_v39, 0.0  ;;  %v1760_v50 = vmul.f32 %v5023_v39, %v5023_v39  ;;  %v3617_v54 = vld [vmem:[%s5469_s15] ss:$0 sm:$0xff] }
 0xfa7   :  { %1749 = vadd.xlane.f32.xlu0 %v1748_v46  ;;  %v5034_v47 = vadd.f32 %v1725_v43, %v4987_v5  ;;  %v1742_v48 = vsel %vm112_vm0, %v5026_v44, 0.0  ;;  %v1758_v37 = vmul.f32 %v5026_v44, %v5026_v44 }
 0xfa8   :  { %v1751_v3 = vsel %vm112_vm0, %v5029_v45, 0.0  ;;  %v1761_v52 = vmul.f32 %v5029_v45, %v5029_v45  ;;  %v1768_v53 = vsel %vm112_vm0, %v1760_v50, 0.0 }
 0xfa9   :  { %1752 = vadd.xlane.f32.xlu1 %v1751_v3  ;;  %v1745_v9 = vsel %vm112_vm0, %v5034_v47, 0.0  ;;  %v1759_v49 = vmul.f32 %v5034_v47, %v5034_v47  ;;  %v1762_v5 = vsel %vm112_vm0, %v1758_v37, 0.0 }
 0xfaa   :  { %v1771_v55 = vsel %vm112_vm0, %v1761_v52, 0.0 }
 0xfab   :  { %1743 = vadd.xlane.f32.xlu0 %v1742_v48  ;;  %v1765_v51 = vsel %vm112_vm0, %v1759_v49, 0.0 }
 0xfad   :  { %1746 = vadd.xlane.f32.xlu1 %v1745_v9 }
 0xfaf   :  { %1763 = vadd.xlane.f32.xlu0 %v1762_v5 }
 0xfb1   :  { %1766 = vadd.xlane.f32.xlu1 %v1765_v51  ;;  %v3623_v51 = vld [vmem:[%s5459_s5 + $0x1] ss:$0 sm:$0xff] }
 0xfb3   :  { %1769 = vadd.xlane.f32.xlu0 %v1768_v53 }
 0xfb5   :  { %1772 = vadd.xlane.f32.xlu1 %v1771_v55 }
0x1034   :  { %v1750_v63 = vpop.xlane.xlu0 %1749 }
0x1035   :  { %v1756_v11 = vmul.f32 0.03125, %v1750_v63 }
0x1036   :  { %v1753_v4 = vpop.xlane.xlu1 %1752 }
0x1037   :  { %v1757_v13 = vmul.f32 0.03125, %v1753_v4  ;;  %v1780_v18 = vmul.f32 %v1756_v11, %v1756_v11  ;;  %v1792_v26 = vsub.f32 %v5023_v39, %v1756_v11 }
0x1038   :  { %v1744_v6 = vpop.xlane.xlu0 %1743 }
0x1039   :  { %v1754_v1 = vmul.f32 0.03125, %v1744_v6  ;;  %v1781_v34 = vmul.f32 %v1757_v13, %v1757_v13  ;;  %v1793_v42 = vsub.f32 %v5029_v45, %v1757_v13 }
0x103a   :  { %v1747_v7 = vpop.xlane.xlu1 %1746 }
0x103b   :  { %v1755_v8 = vmul.f32 0.03125, %v1747_v7  ;;  %v1778_v29 = vmul.f32 %v1754_v1, %v1754_v1  ;;  %v1790_v62 = vsub.f32 %v5026_v44, %v1754_v1 }
0x103c   :  { %v1764_v0 = vpop.xlane.xlu0 %1763 }
0x103d   :  { %v1774_v12 = vmul.f32 0.03125, %v1764_v0  ;;  %v1779_v15 = vmul.f32 %v1755_v8, %v1755_v8  ;;  %v1791_v57 = vsub.f32 %v5034_v47, %v1755_v8 }
0x103e   :  { %v1767_v14 = vpop.xlane.xlu1 %1766 }
0x103f   :  { %v1782_v16 = vsub.f32 %v1774_v12, %v1778_v29  ;;  %v1775_v17 = vmul.f32 0.03125, %v1767_v14 }
0x1040   :  { %v1770_v40 = vpop.xlane.xlu0 %1769 }
0x1041   :  { %v1786_v19 = vmax.f32 %v1782_v16, 0.0  ;;  %v1783_v36 = vsub.f32 %v1775_v17, %v1779_v15  ;;  %v1776_v22 = vmul.f32 0.03125, %v1770_v40 }
0x1042   :  { %v1773_v23 = vpop.xlane.xlu1 %1772 }
0x1043   :  { %v1794_v25 = vadd.f32 1e-12, %v1786_v19  ;;  %v1787_v28 = vmax.f32 %v1783_v36, 0.0  ;;  %v1784_v41 = vsub.f32 %v1776_v22, %v1780_v18  ;;  %v1777_v38 = vmul.f32 0.03125, %v1773_v23 }
0x1045   :  { %4271 = vrsqrt.f32 %v1794_v25  ;;  %v1795_v30 = vadd.f32 1e-12, %v1787_v28  ;;  %v1788_v20 = vmax.f32 %v1784_v41, 0.0  ;;  %v1785_v21 = vsub.f32 %v1777_v38, %v1781_v34  ;;  %v5113_v34 = vld [vmem:[%s5505_s27] ss:$0 sm:$0xff] }
0x1046   :  { %v5121_v41 = vld [vmem:[%s5505_s27 + $0x1] ss:$0 sm:$0xff]  ;;  %s5507_s27 = smov 48  }
0x1047   :  { %4273 = vrsqrt.f32 %v1795_v30  ;;  %v1796_v31 = vadd.f32 1e-12, %v1788_v20  ;;  %v1789_v59 = vmax.f32 %v1785_v21, 0.0 }
0x1049   :  { %4275 = vrsqrt.f32 %v1796_v31  ;;  %v1797_v61 = vadd.f32 1e-12, %v1789_v59 }
0x104b   :  { %4277 = vrsqrt.f32 %v1797_v61 }
0x104f   :  { %v4272_v32 = vpop.eup %4271 }
0x1050   :  { %v1802_v33 = vmul.f32 %v4272_v32, %v1790_v62 }
0x1051   :  { %v4274_v24 = vpop.eup %4273 }
0x1052   :  { %v1803_v2 = vmul.f32 %v4274_v24, %v1791_v57  ;;  %v1812_v35 = vmul.f32 %v3616_v56, %v1802_v33 }
0x1053   :  { %v4276_v27 = vpop.eup %4275 }
0x1054   :  { %v1804_v43 = vmul.f32 %v4276_v27, %v1792_v26  ;;  %v1813_v44 = vmul.f32 %v3616_v56, %v1803_v2  ;;  %v5071_v48 = vadd.f32 %v3617_v54, %v1812_v35 }
0x1055   :  { %v4278_v46 = vpop.eup %4277 }
0x1056   :  { %v1805_v3 = vmul.f32 %v4278_v46, %v1793_v42  ;;  %v5073_v47 = vadd.f32 %v3617_v54, %v1813_v44  ;;  %v1814_v37 = vmul.f32 %v3616_v56, %v1804_v43 }
0x1058   :  { %v1826_v39 = vpack.c.bf16 %v5073_v47, %v5071_v48  ;;  %v1815_v9 = vmul.f32 %v3616_v56, %v1805_v3  ;;  %v5078_v49 = vadd.f32 %v3617_v54, %v1814_v37 }
0x105a   :  { %3934 = vmatprep.mubr.msk.bf16.mxu0 %vm112_vm0, %v1826_v39  ;;  %v5080_v5 = vadd.f32 %v3617_v54, %v1815_v9 }
0x105c   :  { %v1827_v45 = vpack.c.bf16 %v5080_v5, %v5078_v49 }
0x105e   :  { %3935 = vmatmul.mubr.msk.bf16.vlgmr.msra.gmra.mrb[40].mxu0 %vm112_vm0, %v1827_v45 }
0x105f   :  { %3940 = vmatprep.mubr.msk.bf16.mxu0 %vm4467_vm1, %v4466_v10 }
0x1131   :  { %v3936_v50 = vpop.f32.mrb[40].mxu0 }
0x1132   :  { %v1893_v52 = vpop.f32.mrb[41].mxu0  ;;  %v1902_v55 = vadd.f32 %v3936_v50, %v3623_v51 }
0x1133   :  { %v3937_v53 = vpop.f32.mrb[42].mxu0  ;;  %v1894_v63 = vadd.f32 %v3623_v51, %v1893_v52 }
0x1134   :  { %v1905_v58 = vadd.f32 %v3937_v53, %v3623_v51  ;;  %v1896_v60 = vpop.f32.mrb[43].mxu0 }
0x1135   :  { %v1897_v4 = vadd.f32 %v3623_v51, %v1896_v60 }
0x1136   :  { %v5090_v6 = vpack.c.bf16 %v1905_v58, %v1902_v55 }
0x1137   :  { %v5092_v1 = vpack.c.bf16 %v1897_v4, %v1894_v63 }
0x1138   :  { %1961 = vrot.lane.b32.xlu1 %v5090_v6, %s4468_s21 }
0x1139   :  { %1911 = vrot.lane.b32.xlu0 %v5092_v1, %s4468_s21 }
0x11aa   :  { %v1962_v7 = vpop.permute.xlu1 %1961 }
0x11ab   :  { %v1967_v8 = vsel %vm283_vm2, %v1962_v7, 0  ;;  %v1912_v0 = vpop.permute.xlu0 %1911 }
0x11ac   :  { %v1917_v11 = vsel %vm283_vm2, %v1912_v0, 0  ;;  %3945 = vmatpush3.bf16.xpose.msra.mxu1 %v1967_v8 }
0x11ad   :  { %3939 = vmatpush3.bf16.xpose.msra.mxu0 %v1917_v11  ;;  %3956 = vmatprep.subr.bf16.mxu1 %v4466_v10 }
0x11ae   :  { %3950 = vmatprep.subr.bf16.mxu0 %v4466_v10 }
0x11b3   :  { %3947 = vmatmul.mubr.msk.bf16.vlgmr.msra.gmra.mrb[40].mxu1 %vm283_vm2, %v5090_v6 }
0x11b4   :  { %3941 = vmatmul.mubr.msk.bf16.vlgmr.msra.gmra.mrb[44].mxu0 %vm283_vm2, %v5092_v1  ;;  %3958 = vmatprep.mubr.msk.bf16.mxu1 %vm4467_vm1, %v4466_v10 }
0x11b5   :  { %3952 = vmatprep.mubr.msk.bf16.mxu0 %vm4467_vm1, %v4466_v10 }
0x1286   :  { %v2003_v29 = vpop.f32.mrb[40].mxu1 }
0x1287   :  { %v1953_v12 = vpop.f32.mrb[44].mxu0  ;;  %v3948_v13 = vpop.f32.mrb[41].mxu1  ;;  %v2012_v19 = vmul.f32 0.35355338, %v2003_v29 }
0x1288   :  { %v2010_v14 = vmul.f32 0.35355338, %v1953_v12  ;;  %v3942_v15 = vpop.f32.mrb[45].mxu0  ;;  %v2006_v16 = vpop.f32.mrb[42].mxu1 }
0x1289   :  { %v2013_v17 = vmul.f32 0.35355338, %v2006_v16  ;;  %v1956_v40 = vpop.f32.mrb[46].mxu0  ;;  %v3949_v18 = vpop.f32.mrb[43].mxu1  ;;  %v2016_v20 = vadd.f32 %v5121_v41, %v2012_v19 }
0x128a   :  { %v2011_v36 = vmul.f32 0.35355338, %v1956_v40  ;;  %v3943_v22 = vpop.f32.mrb[47].mxu0  ;;  %v2014_v23 = vadd.f32 %v5113_v34, %v2010_v14 }
0x128b   :  { %v2017_v38 = vadd.f32 %v5121_v41, %v2013_v17  ;;  %v2024_v31 = vsel %vm401_vm3, %v2016_v20, -inf }
0x128c   :  { %v2018_v25 = vsel %vm401_vm3, %v2014_v23, -inf  ;;  %v2015_v28 = vadd.f32 %v5113_v34, %v2011_v36 }
0x128d   :  { %2019 = vmax.xlane.f32.xlu1 %v2018_v25  ;;  %v2027_v21 = vsel %vm401_vm3, %v2017_v38, -inf }
0x128e   :  { %v2021_v30 = vsel %vm401_vm3, %v2015_v28, -inf }
0x128f   :  { %2022 = vmax.xlane.f32.xlu0 %v2021_v30 }
0x1291   :  { %2028 = vmax.xlane.f32.xlu1 %v2027_v21 }
0x1293   :  { %2025 = vmax.xlane.f32.xlu0 %v2024_v31 }
0x12a2   :  { %2111 = vrot.lane.b32.xlu1 %v5090_v6, %s4464_s24 }
0x12a6   :  { %2160 = vrot.lane.b32.xlu1 %v5092_v1, %s4469_s10 }
0x131a   :  { %v2020_v59 = vpop.xlane.xlu1 %2019 }
0x131b   :  { %v2030_v56 = vsub.f32 %v2014_v23, %v2020_v59 }
0x131c   :  { %v2023_v61 = vpop.xlane.xlu0 %2022 }
0x131d   :  { %v2031_v62 = vsub.f32 %v2015_v28, %v2023_v61  ;;  %v2034_v27 = vmul.f32 1.442695, %v2030_v56 }
0x131e   :  { %v2029_v32 = vpop.xlane.xlu1 %2028 }
0x131f   :  { %v2033_v57 = vsub.f32 %v2017_v38, %v2029_v32  ;;  %v2036_v33 = vmul.f32 1.442695, %v2031_v62 }
0x1320   :  { %v2026_v24 = vpop.xlane.xlu0 %2025 }
0x1321   :  { %v2040_v26 = vmul.f32 1.442695, %v2033_v57  ;;  %v2032_v2 = vsub.f32 %v2016_v20, %v2026_v24 }
0x1322   :  { %v2112_v35 = vpop.permute.xlu1 %2111 }
0x1323   :  { %4279 = vpow2.f32 %v2040_v26  ;;  %v2038_v54 = vmul.f32 1.442695, %v2032_v2  ;;  %3957 = vmatpush3.bf16.msra.mxu1 %v2112_v35 }
0x1324   :  { %4281 = vpow2.f32 %v2036_v33  ;;  %3968 = vmatprep.subr.bf16.mxu1 %v4466_v10 }
0x1325   :  { %4283 = vpow2.f32 %v2038_v54 }
0x1326   :  { %4285 = vpow2.f32 %v2034_v27  ;;  %v2161_v45 = vpop.permute.xlu1 %2160 }
0x1327   :  { %v2166_v15 = vsel %vm283_vm2, %v2161_v45, 0 }
0x132d   :  { %v4280_v42 = vpop.eup %4279 }
0x132e   :  { %v4282_v43 = vpop.eup %4281  ;;  %v2051_v44 = vsel %vm401_vm3, %v4280_v42, 0.0 }
0x132f   :  { %v4284_v46 = vpop.eup %4283  ;;  %2052 = vadd.xlane.f32.xlu1 %v2051_v44  ;;  %v2045_v39 = vsel %vm401_vm3, %v4282_v43, 0.0 }
0x1330   :  { %v2048_v3 = vsel %vm401_vm3, %v4284_v46, 0.0  ;;  %v4286_v37 = vpop.eup %4285 }
0x1331   :  { %2049 = vadd.xlane.f32.xlu0 %v2048_v3  ;;  %v2042_v9 = vsel %vm401_vm3, %v4286_v37, 0.0 }
0x1333   :  { %2046 = vadd.xlane.f32.xlu1 %v2045_v39 }
0x1335   :  { %2043 = vadd.xlane.f32.xlu0 %v2042_v9 }
0x1344   :  { %2211 = vrot.lane.b32.xlu1 %v5090_v6, %s4469_s10  ;;  %s5508_s10 = smov 72  }
0x1348   :  { %2209 = vrot.lane.b32.xlu1 %v5090_v6, %s4470_s1 }
0x134b   :  { %2064 = vrot.lane.b32.xlu0 %v5092_v1, %s4464_s24  ;;  %s5506_s24 = smov 112  }
0x134f   :  { %2158 = vrot.lane.b32.xlu0 %v5092_v1, %s4470_s1  ;;  %s5509_s1 = smov 104  }
0x13bc   :  { %v2053_v50 = vpop.xlane.xlu1 %2052 }
0x13bd   :  { %4287 = vrcp.f32 %v2053_v50 }
0x13be   :  { %v2050_v51 = vpop.xlane.xlu0 %2049 }
0x13bf   :  { %4289 = vrcp.f32 %v2050_v51 }
0x13c0   :  { %v2047_v52 = vpop.xlane.xlu1 %2046 }
0x13c1   :  { %4291 = vrcp.f32 %v2047_v52 }
0x13c2   :  { %v2044_v53 = vpop.xlane.xlu0 %2043 }
0x13c3   :  { %4293 = vrcp.f32 %v2044_v53 }
0x13c4   :  { %v2212_v8 = vpop.permute.xlu1 %2211 }
0x13c5   :  { %v2217_v13 = vsel %vm283_vm2, %v2212_v8, 0 }
0x13c6   :  { %v2065_v55 = vpop.permute.xlu0 %2064 }
0x13c7   :  { %v4288_v58 = vpop.eup %4287  ;;  %3951 = vmatpush3.bf16.msra.mxu0 %v2065_v55 }
0x13c8   :  { %3962 = vmatprep.subr.bf16.mxu0 %v4466_v10  ;;  %v2061_v63 = vmul.f32 %v4288_v58, %v4280_v42  ;;  %v2210_v16 = vpop.permute.xlu1 %2209 }
0x13c9   :  { %v4290_v60 = vpop.eup %4289 }
0x13ca   :  { %v2060_v4 = vmul.f32 %v4290_v60, %v4284_v46  ;;  %v2159_v17 = vpop.permute.xlu0 %2158 }
0x13cb   :  { %v4292_v7 = vpop.eup %4291 }
0x13cc   :  { %v2063_v0 = vpack.c.bf16 %v2061_v63, %v2060_v4  ;;  %v2059_v29 = vmul.f32 %v4292_v7, %v4282_v43 }
0x13cd   :  { %v4294_v11 = vpop.eup %4293 }
0x13ce   :  { %v2058_v12 = vmul.f32 %v4294_v11, %v4286_v37  ;;  %3959 = vmatmul.mubr.msk.bf16.vlgmr.msra.gmra.mrb[44].mxu1 %vm401_vm3, %v2063_v0 }
0x13cf   :  { %3969 = vmatpush3.bf16.xpose.msra.mxu1 %v2217_v13  ;;  %3970 = vmatprep.mubr.msk.bf16.mxu1 %vm4467_vm1, %v4466_v10 }
0x13d0   :  { %v2062_v14 = vpack.c.bf16 %v2059_v29, %v2058_v12  ;;  %3980 = vmatprep.subr.bf16.mxu1 %v4466_v10 }
0x13d2   :  { %3953 = vmatmul.mubr.msk.bf16.vlgmr.msra.gmra.mrb[48].mxu0 %vm401_vm3, %v2062_v14 }
0x13d3   :  { %3963 = vmatpush3.bf16.xpose.msra.mxu0 %v2166_v15  ;;  %3964 = vmatprep.mubr.msk.bf16.mxu0 %vm4467_vm1, %v4466_v10 }
0x13d4   :  { %3974 = vmatprep.subr.bf16.mxu0 %v4466_v10 }
0x13d6   :  { %3971 = vmatmul.mubr.msk.bf16.vlgmr.msra.gmra.mrb[48].mxu1 %vm283_vm2, %v2210_v16 }
0x13d7   :  { %3982 = vmatprep.mubr.msk.bf16.mxu1 %vm4467_vm1, %v4466_v10 }
0x13da   :  { %3965 = vmatmul.mubr.msk.bf16.vlgmr.msra.gmra.mrb[52].mxu0 %vm283_vm2, %v2159_v17 }
0x13db   :  { %3976 = vmatprep.mubr.msk.bf16.mxu0 %vm4467_vm1, %v4466_v10 }
0x14a1   :  { %v5162_v40 = vpop.f32.mrb[44].mxu1 }
0x14a2   :  { %v3960_v18 = vpop.f32.mrb[45].mxu1 }
0x14a3   :  { %v5164_v19 = vpop.f32.mrb[46].mxu1 }
0x14a4   :  { %v3961_v36 = vpop.f32.mrb[47].mxu1 }
0x14a5   :  { %v5166_v22 = vpop.f32.mrb[48].mxu0 }
0x14a6   :  { %v3954_v23 = vpop.f32.mrb[49].mxu0 }
0x14a7   :  { %v5168_v25 = vpop.f32.mrb[50].mxu0 }
0x14a8   :  { %v3955_v28 = vpop.f32.mrb[51].mxu0 }
0x14a9   :  { %v2253_v38 = vpop.f32.mrb[48].mxu1 }
0x14aa   :  { %v3972_v30 = vpop.f32.mrb[49].mxu1  ;;  %v2262_v59 = vmul.f32 0.35355338, %v2253_v38 }
0x14ab   :  { %v2256_v20 = vpop.f32.mrb[50].mxu1 }
0x14ac   :  { %v3973_v21 = vpop.f32.mrb[51].mxu1  ;;  %v2266_v24 = vadd.f32 %v5121_v41, %v2262_v59  ;;  %v2263_v26 = vmul.f32 0.35355338, %v2256_v20 }
0x14ad   :  { %v2202_v31 = vpop.f32.mrb[52].mxu0 }
0x14ae   :  { %v2260_v61 = vmul.f32 0.35355338, %v2202_v31  ;;  %v3966_v62 = vpop.f32.mrb[53].mxu0  ;;  %v2267_v54 = vadd.f32 %v5121_v41, %v2263_v26  ;;  %v2274_v42 = vsel %vm401_vm3, %v2266_v24, -inf }
0x14af   :  { %v2205_v32 = vpop.f32.mrb[54].mxu0 }
0x14b0   :  { %v2264_v56 = vadd.f32 %v5113_v34, %v2260_v61  ;;  %v2261_v57 = vmul.f32 0.35355338, %v2205_v32  ;;  %v3967_v33 = vpop.f32.mrb[55].mxu0  ;;  %v2277_v43 = vsel %vm401_vm3, %v2267_v54, -inf }
0x14b2   :  { %v2265_v2 = vadd.f32 %v5113_v34, %v2261_v57  ;;  %v2268_v35 = vsel %vm401_vm3, %v2264_v56, -inf }
0x14b3   :  { %2269 = vmax.xlane.f32.xlu0 %v2268_v35 }
0x14b4   :  { %v2271_v27 = vsel %vm401_vm3, %v2265_v2, -inf }
0x14b5   :  { %2272 = vmax.xlane.f32.xlu1 %v2271_v27 }
0x14b7   :  { %2275 = vmax.xlane.f32.xlu0 %v2274_v42 }
0x14bb   :  { %2278 = vmax.xlane.f32.xlu0 %v2277_v43 }
0x14c6   :  { %2361 = vrot.lane.b32.xlu1 %v5090_v6, %s4471_s4 }
0x14ca   :  { %2410 = vrot.lane.b32.xlu1 %v5092_v1, %s4472_s29 }
0x1540   :  { %v2270_v44 = vpop.xlane.xlu0 %2269 }
0x1541   :  { %v2280_v3 = vsub.f32 %v2264_v56, %v2270_v44 }
0x1542   :  { %v2273_v46 = vpop.xlane.xlu1 %2272 }
0x1543   :  { %v2284_v45 = vmul.f32 1.442695, %v2280_v3  ;;  %v2281_v50 = vsub.f32 %v2265_v2, %v2273_v46 }
0x1544   :  { %v2276_v37 = vpop.xlane.xlu0 %2275 }
0x1545   :  { %v2282_v39 = vsub.f32 %v2266_v24, %v2276_v37  ;;  %v2286_v55 = vmul.f32 1.442695, %v2281_v50 }
0x1546   :  { %v2362_v9 = vpop.permute.xlu1 %2361 }
0x1547   :  { %v2288_v51 = vmul.f32 1.442695, %v2282_v39  ;;  %3981 = vmatpush3.bf16.msra.mxu1 %v2362_v9 }
0x1548   :  { %v2279_v52 = vpop.xlane.xlu0 %2278  ;;  %3992 = vmatprep.subr.bf16.mxu1 %v4466_v10 }
0x1549   :  { %4295 = vpow2.f32 %v2288_v51  ;;  %v2283_v53 = vsub.f32 %v2267_v54, %v2279_v52 }
0x154a   :  { %4297 = vpow2.f32 %v2284_v45  ;;  %v2411_v12 = vpop.permute.xlu1 %2410 }
0x154b   :  { %v2290_v58 = vmul.f32 1.442695, %v2283_v53  ;;  %v2416_v32 = vsel %vm283_vm2, %v2411_v12, 0 }
0x154d   :  { %4299 = vpow2.f32 %v2290_v58 }
0x154e   :  { %4301 = vpow2.f32 %v2286_v55 }
0x1553   :  { %v4296_v60 = vpop.eup %4295 }
0x1554   :  { %v2298_v63 = vsel %vm401_vm3, %v4296_v60, 0.0  ;;  %v4298_v4 = vpop.eup %4297 }
0x1555   :  { %2299 = vadd.xlane.f32.xlu0 %v2298_v63  ;;  %v2292_v8 = vsel %vm401_vm3, %v4298_v4, 0.0 }
0x1557   :  { %v4300_v7 = vpop.eup %4299 }
0x1558   :  { %v2301_v0 = vsel %vm401_vm3, %v4300_v7, 0.0  ;;  %v4302_v11 = vpop.eup %4301 }
0x1559   :  { %2293 = vadd.xlane.f32.xlu0 %v2292_v8  ;;  %2302 = vadd.xlane.f32.xlu1 %v2301_v0  ;;  %v2295_v29 = vsel %vm401_vm3, %v4302_v11, 0.0 }
0x155d   :  { %2296 = vadd.xlane.f32.xlu1 %v2295_v29 }
0x156e   :  { %2461 = vrot.lane.b32.xlu1 %v5090_v6, %s4472_s29  ;;  %s5511_s29 = smov 8  }
0x156f   :  { %2314 = vrot.lane.b32.xlu0 %v5092_v1, %s4471_s4  ;;  %s5510_s4 = smov 40  }
0x1572   :  { %2459 = vrot.lane.b32.xlu1 %v5090_v6, %s5506_s24 }
0x1573   :  { %2408 = vrot.lane.b32.xlu0 %v5092_v1, %s5506_s24 }
0x15e2   :  { %v2300_v13 = vpop.xlane.xlu0 %2299 }
0x15e3   :  { %4303 = vrcp.f32 %v2300_v13 }
0x15e6   :  { %v2294_v14 = vpop.xlane.xlu0 %2293  ;;  %v2303_v15 = vpop.xlane.xlu1 %2302 }
0x15e7   :  { %4305 = vrcp.f32 %v2303_v15 }
0x15e8   :  { %4307 = vrcp.f32 %v2294_v14 }
0x15ea   :  { %v2315_v16 = vpop.permute.xlu0 %2314  ;;  %v2297_v17 = vpop.xlane.xlu1 %2296 }
0x15eb   :  { %4309 = vrcp.f32 %v2297_v17  ;;  %3975 = vmatpush3.bf16.msra.mxu0 %v2315_v16 }
0x15ec   :  { %3986 = vmatprep.subr.bf16.mxu0 %v4466_v10 }
0x15ed   :  { %v4304_v18 = vpop.eup %4303 }
0x15ee   :  { %v2310_v28 = vmul.f32 %v4304_v18, %v4296_v60  ;;  %v2462_v30 = vpop.permute.xlu1 %2461  ;;  %v2409_v57 = vpop.permute.xlu0 %2408 }
0x15ef   :  { %v2467_v61 = vsel %vm283_vm2, %v2462_v30, 0 }
0x15f1   :  { %v4306_v36 = vpop.eup %4305 }
0x15f2   :  { %v4308_v23 = vpop.eup %4307  ;;  %v2311_v38 = vmul.f32 %v4306_v36, %v4300_v7  ;;  %v2460_v56 = vpop.permute.xlu1 %2459 }
0x15f3   :  { %v2308_v31 = vmul.f32 %v4308_v23, %v4298_v4 }
0x15f4   :  { %v2313_v21 = vpack.c.bf16 %v2311_v38, %v2310_v28 }
0x15f5   :  { %v4310_v20 = vpop.eup %4309 }
0x15f6   :  { %v2309_v59 = vmul.f32 %v4310_v20, %v4302_v11  ;;  %3983 = vmatmul.mubr.msk.bf16.vlgmr.msra.gmra.mrb[52].mxu1 %vm401_vm3, %v2313_v21 }
0x15f7   :  { %3993 = vmatpush3.bf16.xpose.msra.mxu1 %v2467_v61  ;;  %3994 = vmatprep.mubr.msk.bf16.mxu1 %vm4467_vm1, %v4466_v10 }
0x15f8   :  { %v2312_v62 = vpack.c.bf16 %v2309_v59, %v2308_v31  ;;  %4004 = vmatprep.subr.bf16.mxu1 %v4466_v10 }
0x15fa   :  { %3977 = vmatmul.mubr.msk.bf16.vlgmr.msra.gmra.mrb[56].mxu0 %vm401_vm3, %v2312_v62 }
0x15fb   :  { %3987 = vmatpush3.bf16.xpose.msra.mxu0 %v2416_v32  ;;  %3988 = vmatprep.mubr.msk.bf16.mxu0 %vm4467_vm1, %v4466_v10 }
0x15fc   :  { %3998 = vmatprep.subr.bf16.mxu0 %v4466_v10 }
0x15fe   :  { %3995 = vmatmul.mubr.msk.bf16.vlgmr.msra.gmra.mrb[56].mxu1 %vm283_vm2, %v2460_v56 }
0x15ff   :  { %4006 = vmatprep.mubr.msk.bf16.mxu1 %vm4467_vm1, %v4466_v10 }
0x1602   :  { %3989 = vmatmul.mubr.msk.bf16.vlgmr.msra.gmra.mrb[60].mxu0 %vm283_vm2, %v2409_v57 }
0x1603   :  { %4000 = vmatprep.mubr.msk.bf16.mxu0 %vm4467_vm1, %v4466_v10 }
0x16c9   :  { %v5212_v33 = vpop.f32.mrb[52].mxu1 }
0x16ca   :  { %v3984_v24 = vpop.f32.mrb[53].mxu1 }
0x16cb   :  { %v5214_v26 = vpop.f32.mrb[54].mxu1 }
0x16cc   :  { %v4134_v2 = vpack.i.bf16 %v5214_v26, %v5212_v33  ;;  %v3985_v35 = vpop.f32.mrb[55].mxu1 }
0x16cd   :  { %v5218_v27 = vpop.f32.mrb[56].mxu0 }
0x16ce   :  { %v3978_v54 = vpop.f32.mrb[57].mxu0 }
0x16cf   :  { %v5220_v42 = vpop.f32.mrb[58].mxu0 }
0x16d0   :  { %v4129_v43 = vpack.i.bf16 %v5220_v42, %v5218_v27  ;;  %v3979_v44 = vpop.f32.mrb[59].mxu0 }
0x16d1   :  { %v2503_v46 = vpop.f32.mrb[56].mxu1 }
0x16d2   :  { %v3996_v3 = vpop.f32.mrb[57].mxu1  ;;  %v2512_v45 = vmul.f32 0.35355338, %v2503_v46 }
0x16d3   :  { %v2506_v37 = vpop.f32.mrb[58].mxu1 }
0x16d4   :  { %v3997_v39 = vpop.f32.mrb[59].mxu1  ;;  %v2516_v60 = vadd.f32 %v5121_v41, %v2512_v45  ;;  %v2513_v63 = vmul.f32 0.35355338, %v2506_v37 }
0x16d5   :  { %v2452_v9 = vpop.f32.mrb[60].mxu0 }
0x16d6   :  { %v2510_v50 = vmul.f32 0.35355338, %v2452_v9  ;;  %v3990_v51 = vpop.f32.mrb[61].mxu0  ;;  %v2517_v0 = vadd.f32 %v5121_v41, %v2513_v63  ;;  %v2524_v11 = vsel %vm401_vm3, %v2516_v60, -inf }
0x16d7   :  { %v2455_v52 = vpop.f32.mrb[62].mxu0 }
0x16d8   :  { %v2514_v53 = vadd.f32 %v5113_v34, %v2510_v50  ;;  %v2511_v55 = vmul.f32 0.35355338, %v2455_v52  ;;  %v3991_v58 = vpop.f32.mrb[63].mxu0  ;;  %v2527_v29 = vsel %vm401_vm3, %v2517_v0, -inf }
0x16da   :  { %v2515_v4 = vadd.f32 %v5113_v34, %v2511_v55  ;;  %v2518_v7 = vsel %vm401_vm3, %v2514_v53, -inf }
0x16db   :  { %2519 = vmax.xlane.f32.xlu0 %v2518_v7 }
0x16dc   :  { %v2521_v8 = vsel %vm401_vm3, %v2515_v4, -inf }
0x16dd   :  { %2522 = vmax.xlane.f32.xlu1 %v2521_v8 }
0x16df   :  { %2525 = vmax.xlane.f32.xlu0 %v2524_v11 }
0x16e3   :  { %2528 = vmax.xlane.f32.xlu0 %v2527_v29 }
0x16ee   :  { %2611 = vrot.lane.b32.xlu1 %v5090_v6, %s5507_s27 }
0x16f2   :  { %2660 = vrot.lane.b32.xlu1 %v5092_v1, %s5508_s10 }
0x1768   :  { %v2520_v12 = vpop.xlane.xlu0 %2519 }
0x1769   :  { %v2530_v14 = vsub.f32 %v2514_v53, %v2520_v12 }
0x176a   :  { %v2523_v13 = vpop.xlane.xlu1 %2522 }
0x176b   :  { %v2534_v18 = vmul.f32 1.442695, %v2530_v14  ;;  %v2531_v36 = vsub.f32 %v2515_v4, %v2523_v13 }
0x176c   :  { %v2526_v15 = vpop.xlane.xlu0 %2525 }
0x176d   :  { %v2532_v16 = vsub.f32 %v2516_v60, %v2526_v15  ;;  %v2536_v30 = vmul.f32 1.442695, %v2531_v36 }
0x176e   :  { %v2612_v17 = vpop.permute.xlu1 %2611 }
0x176f   :  { %v2538_v23 = vmul.f32 1.442695, %v2532_v16  ;;  %4005 = vmatpush3.bf16.msra.mxu1 %v2612_v17 }
0x1770   :  { %v2529_v28 = vpop.xlane.xlu0 %2528  ;;  %4016 = vmatprep.subr.bf16.mxu1 %v4466_v10 }
0x1771   :  { %4311 = vpow2.f32 %v2538_v23  ;;  %v2533_v38 = vsub.f32 %v2517_v0, %v2529_v28 }
0x1772   :  { %4313 = vpow2.f32 %v2534_v18  ;;  %v2661_v24 = vpop.permute.xlu1 %2660 }
0x1773   :  { %v2540_v20 = vmul.f32 1.442695, %v2533_v38  ;;  %v2666_v4 = vsel %vm283_vm2, %v2661_v24, 0 }
0x1775   :  { %4315 = vpow2.f32 %v2540_v20 }
0x1776   :  { %4317 = vpow2.f32 %v2536_v30 }
0x177b   :  { %v4312_v21 = vpop.eup %4311 }
0x177c   :  { %v2548_v31 = vsel %vm401_vm3, %v4312_v21, 0.0  ;;  %v4314_v59 = vpop.eup %4313 }
0x177d   :  { %2549 = vadd.xlane.f32.xlu0 %v2548_v31  ;;  %v2542_v62 = vsel %vm401_vm3, %v4314_v59, 0.0 }
0x177f   :  { %v4316_v61 = vpop.eup %4315 }
0x1780   :  { %v2551_v32 = vsel %vm401_vm3, %v4316_v61, 0.0  ;;  %v4318_v56 = vpop.eup %4317 }
0x1781   :  { %2543 = vadd.xlane.f32.xlu0 %v2542_v62  ;;  %2552 = vadd.xlane.f32.xlu1 %v2551_v32  ;;  %v2545_v57 = vsel %vm401_vm3, %v4318_v56, 0.0 }
0x1785   :  { %2546 = vadd.xlane.f32.xlu1 %v2545_v57 }
0x1796   :  { %2711 = vrot.lane.b32.xlu1 %v5090_v6, %s5508_s10 }
0x1797   :  { %2564 = vrot.lane.b32.xlu0 %v5092_v1, %s5507_s27 }
0x179a   :  { %2709 = vrot.lane.b32.xlu1 %v5090_v6, %s5509_s1 }
0x179b   :  { %2658 = vrot.lane.b32.xlu0 %v5092_v1, %s5509_s1 }
0x180a   :  { %v2550_v35 = vpop.xlane.xlu0 %2549 }
0x180b   :  { %4319 = vrcp.f32 %v2550_v35 }
0x180e   :  { %v2544_v54 = vpop.xlane.xlu0 %2543  ;;  %v2553_v44 = vpop.xlane.xlu1 %2552 }
0x180f   :  { %4321 = vrcp.f32 %v2553_v44 }
0x1810   :  { %4323 = vrcp.f32 %v2544_v54 }
0x1812   :  { %v2565_v46 = vpop.permute.xlu0 %2564  ;;  %v2547_v3 = vpop.xlane.xlu1 %2546 }
0x1813   :  { %4325 = vrcp.f32 %v2547_v3  ;;  %3999 = vmatpush3.bf16.msra.mxu0 %v2565_v46 }
0x1814   :  { %4010 = vmatprep.subr.bf16.mxu0 %v4466_v10 }
0x1815   :  { %v4320_v37 = vpop.eup %4319 }
0x1816   :  { %v2560_v45 = vmul.f32 %v4320_v37, %v4312_v21  ;;  %v2712_v51 = vpop.permute.xlu1 %2711  ;;  %v2659_v8 = vpop.permute.xlu0 %2658 }
0x1817   :  { %v2717_v60 = vsel %vm283_vm2, %v2712_v51, 0 }
0x1819   :  { %v4322_v39 = vpop.eup %4321 }
0x181a   :  { %v4324_v9 = vpop.eup %4323  ;;  %v2561_v50 = vmul.f32 %v4322_v39, %v4316_v61  ;;  %v2710_v7 = vpop.permute.xlu1 %2709 }
0x181b   :  { %v2558_v55 = vmul.f32 %v4324_v9, %v4314_v59 }
0x181c   :  { %v2563_v53 = vpack.c.bf16 %v2561_v50, %v2560_v45 }
0x181d   :  { %v4326_v52 = vpop.eup %4325 }
0x181e   :  { %v2559_v58 = vmul.f32 %v4326_v52, %v4318_v56  ;;  %4007 = vmatmul.mubr.msk.bf16.vlgmr.msra.gmra.mrb[60].mxu1 %vm401_vm3, %v2563_v53 }
0x181f   :  { %4017 = vmatpush3.bf16.xpose.msra.mxu1 %v2717_v60  ;;  %4018 = vmatprep.mubr.msk.bf16.mxu1 %vm4467_vm1, %v4466_v10 }
0x1820   :  { %v2562_v63 = vpack.c.bf16 %v2559_v58, %v2558_v55  ;;  %4028 = vmatprep.subr.bf16.mxu1 %v4466_v10 }
0x1822   :  { %4001 = vmatmul.mubr.msk.bf16.vlgmr.msra.gmra.mrb[64].mxu0 %vm401_vm3, %v2562_v63 }
0x1823   :  { %4011 = vmatpush3.bf16.xpose.msra.mxu0 %v2666_v4  ;;  %4012 = vmatprep.mubr.msk.bf16.mxu0 %vm4467_vm1, %v4466_v10 }
0x1824   :  { %4022 = vmatprep.subr.bf16.mxu0 %v4466_v10 }
0x1826   :  { %4019 = vmatmul.mubr.msk.bf16.vlgmr.msra.gmra.mrb[64].mxu1 %vm283_vm2, %v2710_v7 }
0x1827   :  { %4030 = vmatprep.mubr.msk.bf16.mxu1 %vm4467_vm1, %v4466_v10 }
0x182a   :  { %4013 = vmatmul.mubr.msk.bf16.vlgmr.msra.gmra.mrb[68].mxu0 %vm283_vm2, %v2659_v8 }
0x182b   :  { %4024 = vmatprep.mubr.msk.bf16.mxu0 %vm4467_vm1, %v4466_v10 }
0x18f1   :  { %v5266_v0 = vpop.f32.mrb[60].mxu1 }
0x18f2   :  { %v4008_v11 = vpop.f32.mrb[61].mxu1 }
0x18f3   :  { %v5268_v29 = vpop.f32.mrb[62].mxu1 }
0x18f4   :  { %v4144_v12 = vpack.i.bf16 %v5268_v29, %v5266_v0  ;;  %v4009_v13 = vpop.f32.mrb[63].mxu1 }
0x18f5   :  { %v2604_v14 = vpop.f32.mrb[64].mxu0 }
0x18f6   :  { %v4002_v15 = vpop.f32.mrb[65].mxu0 }
0x18f7   :  { %v2607_v16 = vpop.f32.mrb[66].mxu0 }
0x18f8   :  { %v4139_v17 = vpack.i.bf16 %v2607_v16, %v2604_v14  ;;  %v4003_v18 = vpop.f32.mrb[67].mxu0 }
0x18f9   :  { %v2753_v36 = vpop.f32.mrb[64].mxu1 }
0x18fa   :  { %v4020_v23 = vpop.f32.mrb[65].mxu1  ;;  %v2762_v20 = vmul.f32 0.35355338, %v2753_v36 }
0x18fb   :  { %v2756_v28 = vpop.f32.mrb[66].mxu1  ;;  %v4171_v23 = vld [vmem:[%s5460_s6 + $0x10] sm:$0xff]  }
0x18fc   :  { %v4021_v38 = vpop.f32.mrb[67].mxu1  ;;  %v2766_v56 = vadd.f32 %v5121_v41, %v2762_v20  ;;  %v2763_v57 = vmul.f32 0.35355338, %v2756_v28  ;;  %v4172_v28 = vld [vmem:[%s5460_s6 + $0x18] sm:$0xff]  }
0x18fd   :  { %v2702_v30 = vpop.f32.mrb[68].mxu0 }
0x18fe   :  { %v2760_v21 = vmul.f32 0.35355338, %v2702_v30  ;;  %v4014_v31 = vpop.f32.mrb[69].mxu0  ;;  %v2767_v44 = vadd.f32 %v5121_v41, %v2763_v57  ;;  %v2774_v46 = vsel %vm401_vm3, %v2766_v56, -inf }
0x18ff   :  { %v2705_v59 = vpop.f32.mrb[70].mxu0 }
0x1900   :  { %v2764_v61 = vadd.f32 %v5113_v34, %v2760_v21  ;;  %v2761_v62 = vmul.f32 0.35355338, %v2705_v59  ;;  %v4015_v32 = vpop.f32.mrb[71].mxu0  ;;  %v2777_v3 = vsel %vm401_vm3, %v2767_v44, -inf }
0x1902   :  { %v2765_v24 = vadd.f32 %v5113_v34, %v2761_v62  ;;  %v2768_v35 = vsel %vm401_vm3, %v2764_v61, -inf }
0x1903   :  { %2769 = vmax.xlane.f32.xlu0 %v2768_v35 }
0x1904   :  { %v2771_v54 = vsel %vm401_vm3, %v2765_v24, -inf }
0x1905   :  { %2772 = vmax.xlane.f32.xlu1 %v2771_v54 }
0x1907   :  { %2775 = vmax.xlane.f32.xlu0 %v2774_v46 }
0x190b   :  { %2778 = vmax.xlane.f32.xlu0 %v2777_v3 }
0x1990   :  { %v2770_v37 = vpop.xlane.xlu0 %2769 }
0x1991   :  { %v2780_v39 = vsub.f32 %v2764_v61, %v2770_v37 }
0x1992   :  { %v2773_v9 = vpop.xlane.xlu1 %2772 }
0x1993   :  { %v2784_v34 = vmul.f32 1.442695, %v2780_v39  ;;  %v2781_v51 = vsub.f32 %v2765_v24, %v2773_v9 }
0x1994   :  { %v2776_v45 = vpop.xlane.xlu0 %2775 }
0x1995   :  { %v2782_v50 = vsub.f32 %v2766_v56, %v2776_v45  ;;  %v2786_v58 = vmul.f32 1.442695, %v2781_v51 }
0x1997   :  { %v2788_v52 = vmul.f32 1.442695, %v2782_v50 }
0x1998   :  { %v2779_v53 = vpop.xlane.xlu0 %2778 }
0x1999   :  { %4327 = vpow2.f32 %v2788_v52  ;;  %v2783_v55 = vsub.f32 %v2767_v44, %v2779_v53 }
0x199a   :  { %4329 = vpow2.f32 %v2784_v34 }
0x199b   :  { %v2790_v41 = vmul.f32 1.442695, %v2783_v55 }
0x199d   :  { %4331 = vpow2.f32 %v2790_v41 }
0x199e   :  { %4333 = vpow2.f32 %v2786_v58 }
0x19a3   :  { %v4328_v60 = vpop.eup %4327 }
0x19a4   :  { %v2798_v63 = vsel %vm401_vm3, %v4328_v60, 0.0  ;;  %v4330_v4 = vpop.eup %4329 }
0x19a5   :  { %2799 = vadd.xlane.f32.xlu0 %v2798_v63  ;;  %v2792_v8 = vsel %vm401_vm3, %v4330_v4, 0.0 }
0x19a7   :  { %v4332_v7 = vpop.eup %4331 }
0x19a8   :  { %v2801_v11 = vsel %vm401_vm3, %v4332_v7, 0.0  ;;  %v4334_v13 = vpop.eup %4333 }
0x19a9   :  { %2793 = vadd.xlane.f32.xlu0 %v2792_v8  ;;  %2802 = vadd.xlane.f32.xlu1 %v2801_v11  ;;  %v2795_v14 = vsel %vm401_vm3, %v4334_v13, 0.0 }
0x19ad   :  { %2796 = vadd.xlane.f32.xlu1 %v2795_v14 }
0x19be   :  { %2861 = vrot.lane.b32.xlu1 %v5090_v6, %s5510_s4 }
0x19bf   :  { %2814 = vrot.lane.b32.xlu0 %v5092_v1, %s5510_s4 }
0x19c2   :  { %4130 = vrot.lane.b32.xlu1 %v4129_v43, %s5511_s29 }
0x19c3   :  { %4140 = vrot.lane.b32.xlu0 %v4139_v17, %s5512_s2 }
0x19c6   :  { %4135 = vrot.lane.b32.xlu1 %v4134_v2, %s5511_s29 }
0x19ca   :  { %4145 = vrot.lane.b32.xlu1 %v4144_v12, %s5512_s2 }
0x1a32   :  { %v2800_v6 = vpop.xlane.xlu0 %2799 }
0x1a33   :  { %4335 = vrcp.f32 %v2800_v6 }
0x1a36   :  { %v2794_v1 = vpop.xlane.xlu0 %2793  ;;  %v2803_v15 = vpop.xlane.xlu1 %2802 }
0x1a37   :  { %4337 = vrcp.f32 %v2803_v15 }
0x1a38   :  { %4339 = vrcp.f32 %v2794_v1  ;;  %v3649_v1 = vld [vmem:[%s5461_s7 + $0x1] ss:$0 sm:$0xff] }
0x1a3a   :  { %v2815_v27 = vpop.permute.xlu0 %2814  ;;  %v2797_v42 = vpop.xlane.xlu1 %2796 }
0x1a3b   :  { %4341 = vrcp.f32 %v2797_v42  ;;  %4023 = vmatpush3.bf16.msra.mxu0 %v2815_v27 }
0x1a3c   :  { %4034 = vmatprep.subr.bf16.mxu0 %v4171_v23 }
0x1a3d   :  { %v4336_v16 = vpop.eup %4335 }
0x1a3e   :  { %v2862_v43 = vpop.permute.xlu1 %2861  ;;  %v2810_v2 = vmul.f32 %v4336_v16, %v4328_v60  ;;  %v4141_v9 = vpop.permute.xlu0 %4140 }
0x1a3f   :  { %4029 = vmatpush3.bf16.msra.mxu1 %v2862_v43  ;;  %v4143_v60 = vunpack.i.h.bf16 %v4141_v9  ;;  %v4142_v63 = vunpack.i.l.bf16 %v4141_v9 }
0x1a41   :  { %v4338_v33 = vpop.eup %4337 }
0x1a42   :  { %v4340_v26 = vpop.eup %4339  ;;  %v2811_v17 = vmul.f32 %v4338_v33, %v4332_v7  ;;  %v4131_v57 = vpop.permute.xlu1 %4130 }
0x1a43   :  { %v2808_v29 = vmul.f32 %v4340_v26, %v4330_v4  ;;  %v4133_v46 = vunpack.i.h.bf16 %v4131_v57  ;;  %v4132_v3 = vunpack.i.l.bf16 %v4131_v57 }
0x1a44   :  { %v2813_v0 = vpack.c.bf16 %v2811_v17, %v2810_v2 }
0x1a45   :  { %v4342_v18 = vpop.eup %4341  ;;  %v2957_v53 = vsel %vm283_vm2, %v5168_v25, %v4133_v46  ;;  %v2956_v55 = vsel %vm283_vm2, %v5166_v22, %v4132_v3 }
0x1a46   :  { %v2809_v12 = vmul.f32 %v4342_v18, %v4334_v13  ;;  %4031 = vmatmul.mubr.msk.bf16.vlgmr.msra.gmra.mrb[68].mxu1 %vm401_vm3, %v2813_v0  ;;  %v4136_v24 = vpop.permute.xlu1 %4135  ;;  %v2960_v13 = vsel %vm401_vm3, %v2956_v55, %v4142_v63  ;;  %v2961_v25 = vsel %vm401_vm3, %v2957_v53, %v4143_v60 }
0x1a47   :  { %v4138_v54 = vunpack.i.h.bf16 %v4136_v24  ;;  %v4137_v44 = vunpack.i.l.bf16 %v4136_v24 }
0x1a48   :  { %v2812_v36 = vpack.c.bf16 %v2809_v12, %v2808_v29 }
0x1a49   :  { %v2959_v50 = vsel %vm283_vm2, %v5164_v19, %v4138_v54  ;;  %v2958_v34 = vsel %vm283_vm2, %v5162_v40, %v4137_v44 }
0x1a4a   :  { %4025 = vmatmul.mubr.msk.bf16.vlgmr.msra.gmra.mrb[72].mxu0 %vm401_vm3, %v2812_v36  ;;  %v4146_v35 = vpop.permute.xlu1 %4145 }
0x1a4b   :  { %4035 = vmatpush3.bf16.msra.mxu0 %v4171_v23  ;;  %v4148_v37 = vunpack.i.h.bf16 %v4146_v35  ;;  %v4147_v39 = vunpack.i.l.bf16 %v4146_v35 }
0x1a4c   :  { %4036 = vmatprep.subr.bf16.mxu0 %v4172_v28 }
0x1a4d   :  { %v2962_v58 = vsel %vm401_vm3, %v2958_v34, %v4147_v39  ;;  %v2963_v41 = vsel %vm401_vm3, %v2959_v50, %v4148_v37 }
0x1a4f   :  { %4037 = vmatpush3.bf16.msra.mxu0 %v4172_v28 }
0x1b19   :  { %v2901_v38 = vpop.f32.mrb[68].mxu1 }
0x1b1a   :  { %v4032_v30 = vpop.f32.mrb[69].mxu1 }
0x1b1b   :  { %v2904_v20 = vpop.f32.mrb[70].mxu1 }
0x1b1c   :  { %v4154_v21 = vpack.i.bf16 %v2904_v20, %v2901_v38  ;;  %v4033_v31 = vpop.f32.mrb[71].mxu1 }
0x1b1d   :  { %v2854_v59 = vpop.f32.mrb[72].mxu0  ;;  %v4173_v31 = vld [vmem:[#allocation7 + $0x10] sm:$0xff]  }
0x1b1e   :  { %v4026_v61 = vpop.f32.mrb[73].mxu0  ;;  %4155 = vrot.lane.b32.xlu1 %v4154_v21, %s5513_s0  ;;  %4042 = vmatprep.subr.bf16.mxu1 %v4173_v31 }
0x1b1f   :  { %v2857_v62 = vpop.f32.mrb[74].mxu0  ;;  %4043 = vmatpush3.bf16.msra.mxu1 %v4173_v31 }
0x1b20   :  { %v4149_v32 = vpack.i.bf16 %v2857_v62, %v2854_v59  ;;  %v4027_v56 = vpop.f32.mrb[75].mxu0  ;;  %v4174_v59 = vld [vmem:[#allocation7 + $0x18] sm:$0xff]  }
0x1b21   :  { %4044 = vmatprep.subr.bf16.mxu1 %v4174_v59 }
0x1b22   :  { %4150 = vrot.lane.b32.xlu0 %v4149_v32, %s5513_s0 }
0x1b23   :  { %4045 = vmatpush3.bf16.msra.mxu1 %v4174_v59 }
0x1b24   :  { %4062 = vmatprep.subr.bf16.mxu1 %v4466_v10 }
0x1b90   :  { %v4156_v45 = vpop.permute.xlu1 %4155 }
0x1b91   :  { %v4158_v51 = vunpack.i.h.bf16 %v4156_v45  ;;  %v4157_v52 = vunpack.i.l.bf16 %v4156_v45 }
0x1b93   :  { %v2966_v4 = vsel %vm1348_vm4, %v2962_v58, %v4157_v52  ;;  %v2967_v19 = vsel %vm1348_vm4, %v2963_v41, %v4158_v51 }
0x1b94   :  { %v4151_v7 = vpop.permute.xlu0 %4150  ;;  %v2969_v40 = vpack.c.bf16 %v2967_v19, %v2966_v4 }
0x1b95   :  { %v4153_v8 = vunpack.i.h.bf16 %v4151_v7  ;;  %v4152_v11 = vunpack.i.l.bf16 %v4151_v7 }
0x1b97   :  { %v2965_v22 = vsel %vm1348_vm4, %v2961_v25, %v4153_v8  ;;  %v2964_v14 = vsel %vm1348_vm4, %v2960_v13, %v4152_v11 }
0x1b98   :  { %v2968_v6 = vpack.c.bf16 %v2965_v22, %v2964_v14 }
0x1b9a   :  { %4038 = vmatprep.mubr.msk.bf16.mxu0 %vm112_vm0, %v2968_v6  ;;  %v3656_v6 = vld [vmem:[%s5462_s8 + $0x1] ss:$0 sm:$0xff] }
0x1b9b   :  { %4039 = vmatmul.mubr.msk.bf16.vlgmr.msra.gmra.mrb[76].mxu0 %vm112_vm0, %v2969_v40 }
0x1c6e   :  { %v4040_v15 = vpop.f32.mrb[76].mxu0 }
0x1c6f   :  { %v3044_v27 = vadd.f32 %v4040_v15, %v3649_v1  ;;  %v3035_v42 = vpop.f32.mrb[77].mxu0 }
0x1c70   :  { %v3036_v43 = vadd.f32 %v3649_v1, %v3035_v42  ;;  %v4041_v16 = vpop.f32.mrb[78].mxu0 }
0x1c71   :  { %v5333_v33 = vadd.f32 %v3044_v27, %v5078_v49  ;;  %v3038_v26 = vpop.f32.mrb[79].mxu0  ;;  %v3047_v2 = vadd.f32 %v4041_v16, %v3649_v1 }
0x1c72   :  { %v3039_v17 = vadd.f32 %v3649_v1, %v3038_v26  ;;  %v5336_v18 = vadd.f32 %v3036_v43, %v5071_v48 }
0x1c73   :  { %v3064_v0 = vsel %vm112_vm0, %v5333_v33, 0.0  ;;  %v5344_v12 = vadd.f32 %v3047_v2, %v5080_v5  ;;  %v3076_v20 = vmul.f32 %v5333_v33, %v5333_v33  ;;  %v3657_v2 = vld [vmem:[%s5463_s9 + $0x1] ss:$0 sm:$0xff] }
0x1c74   :  { %v5341_v29 = vadd.f32 %v3039_v17, %v5073_v47  ;;  %3065 = vadd.xlane.f32.xlu0 %v3064_v0  ;;  %v3058_v48 = vsel %vm112_vm0, %v5336_v18, 0.0  ;;  %v3074_v28 = vmul.f32 %v5336_v18, %v5336_v18 }
0x1c75   :  { %v3077_v47 = vmul.f32 %v5344_v12, %v5344_v12  ;;  %v3067_v5 = vsel %vm112_vm0, %v5344_v12, 0.0  ;;  %v3084_v21 = vsel %vm112_vm0, %v3076_v20, 0.0  ;;  %v4178_v20 = vld [vmem:[%s5466_s12 + $0x38] sm:$0xff]  }
0x1c76   :  { %v3061_v49 = vsel %vm112_vm0, %v5341_v29, 0.0  ;;  %v3075_v36 = vmul.f32 %v5341_v29, %v5341_v29  ;;  %v3078_v30 = vsel %vm112_vm0, %v3074_v28, 0.0 }
0x1c77   :  { %3062 = vadd.xlane.f32.xlu1 %v3061_v49  ;;  %v3087_v38 = vsel %vm112_vm0, %v3077_v47, 0.0 }
0x1c78   :  { %3059 = vadd.xlane.f32.xlu0 %v3058_v48  ;;  %v3081_v23 = vsel %vm112_vm0, %v3075_v36, 0.0 }
0x1c7b   :  { %3082 = vadd.xlane.f32.xlu1 %v3081_v23 }
0x1c7c   :  { %3068 = vadd.xlane.f32.xlu0 %v3067_v5 }
0x1c7f   :  { %3088 = vadd.xlane.f32.xlu1 %v3087_v38  ;;  %v4176_v38 = vld [vmem:[%s5466_s12 + $0x28] sm:$0xff]  }
0x1c80   :  { %3079 = vadd.xlane.f32.xlu0 %v3078_v30  ;;  %v4177_v30 = vld [vmem:[%s5466_s12 + $0x30] sm:$0xff]  }
0x1c84   :  { %3085 = vadd.xlane.f32.xlu0 %v3084_v21  ;;  %v3659_v21 = vld [vmem:[%s5465_s11 + $0x1] ss:$0 sm:$0xff] }
0x1d01   :  { %v3066_v61 = vpop.xlane.xlu0 %3065 }
0x1d02   :  { %v3072_v34 = vmul.f32 0.03125, %v3066_v61 }
0x1d04   :  { %v3063_v62 = vpop.xlane.xlu1 %3062  ;;  %v3096_v63 = vmul.f32 %v3072_v34, %v3072_v34  ;;  %v3108_v17 = vsub.f32 %v5333_v33, %v3072_v34  ;;  %v4175_v33 = vld [vmem:[%s5466_s12 + $0x20] sm:$0xff]  }
0x1d05   :  { %v3071_v32 = vmul.f32 0.03125, %v3063_v62  ;;  %v3060_v56 = vpop.xlane.xlu0 %3059  ;;  %4050 = vmatprep.subr.bf16.mxu0 %v4175_v33 }
0x1d06   :  { %v3070_v44 = vmul.f32 0.03125, %v3060_v56  ;;  %4051 = vmatpush3.bf16.msra.mxu0 %v4175_v33 }
0x1d07   :  { %v3095_v24 = vmul.f32 %v3071_v32, %v3071_v32  ;;  %v3107_v22 = vsub.f32 %v5341_v29, %v3071_v32  ;;  %4052 = vmatprep.subr.bf16.mxu0 %v4176_v38 }
0x1d08   :  { %v3083_v57 = vpop.xlane.xlu1 %3082  ;;  %v3094_v51 = vmul.f32 %v3070_v44, %v3070_v44  ;;  %v3106_v15 = vsub.f32 %v5336_v18, %v3070_v44 }
0x1d09   :  { %v3091_v35 = vmul.f32 0.03125, %v3083_v57  ;;  %v3069_v54 = vpop.xlane.xlu0 %3068 }
0x1d0a   :  { %v3073_v46 = vmul.f32 0.03125, %v3069_v54  ;;  %4053 = vmatpush3.bf16.msra.mxu0 %v4176_v38 }
0x1d0b   :  { %v3099_v3 = vsub.f32 %v3091_v35, %v3095_v24  ;;  %4054 = vmatprep.subr.bf16.mxu0 %v4177_v30 }
0x1d0c   :  { %v3097_v37 = vmul.f32 %v3073_v46, %v3073_v46  ;;  %v3089_v39 = vpop.xlane.xlu1 %3088  ;;  %v3109_v27 = vsub.f32 %v5344_v12, %v3073_v46 }
0x1d0d   :  { %v3103_v9 = vmax.f32 %v3099_v3, 0.0  ;;  %v3093_v45 = vmul.f32 0.03125, %v3089_v39  ;;  %v3080_v50 = vpop.xlane.xlu0 %3079 }
0x1d0e   :  { %v3090_v52 = vmul.f32 0.03125, %v3080_v50  ;;  %4055 = vmatpush3.bf16.msra.mxu0 %v4177_v30 }
0x1d0f   :  { %v3111_v53 = vadd.f32 1e-12, %v3103_v9  ;;  %v3101_v55 = vsub.f32 %v3093_v45, %v3097_v37  ;;  %4056 = vmatprep.subr.bf16.mxu0 %v4178_v20 }
0x1d10   :  { %v3098_v58 = vsub.f32 %v3090_v52, %v3094_v51 }
0x1d11   :  { %4343 = vrsqrt.f32 %v3111_v53  ;;  %v3105_v41 = vmax.f32 %v3101_v55, 0.0  ;;  %v3086_v60 = vpop.xlane.xlu0 %3085 }
0x1d12   :  { %v3102_v4 = vmax.f32 %v3098_v58, 0.0  ;;  %v3092_v19 = vmul.f32 0.03125, %v3086_v60  ;;  %4057 = vmatpush3.bf16.msra.mxu0 %v4178_v20 }
0x1d13   :  { %v3113_v7 = vadd.f32 1e-12, %v3105_v41 }
0x1d14   :  { %v3110_v40 = vadd.f32 1e-12, %v3102_v4  ;;  %v3100_v8 = vsub.f32 %v3092_v19, %v3096_v63 }
0x1d15   :  { %4345 = vrsqrt.f32 %v3113_v7 }
0x1d16   :  { %4347 = vrsqrt.f32 %v3110_v40  ;;  %v3104_v11 = vmax.f32 %v3100_v8, 0.0 }
0x1d18   :  { %v3112_v13 = vadd.f32 1e-12, %v3104_v11 }
0x1d1a   :  { %4349 = vrsqrt.f32 %v3112_v13 }
0x1d1b   :  { %v4344_v25 = vpop.eup %4343 }
0x1d1c   :  { %v3119_v14 = vmul.f32 %v4344_v25, %v3107_v22 }
0x1d1e   :  { %v3129_v26 = vmul.f32 %v3656_v6, %v3119_v14 }
0x1d1f   :  { %v4346_v1 = vpop.eup %4345 }
0x1d20   :  { %v4348_v42 = vpop.eup %4347  ;;  %v3121_v43 = vmul.f32 %v4346_v1, %v3109_v27  ;;  %v3139_v48 = vadd.f32 %v3657_v2, %v3129_v26 }
0x1d21   :  { %v3118_v16 = vmul.f32 %v4348_v42, %v3106_v15 }
0x1d22   :  { %v3131_v23 = vmul.f32 %v3656_v6, %v3121_v43 }
0x1d23   :  { %v3128_v0 = vmul.f32 %v3656_v6, %v3118_v16 }
0x1d24   :  { %v4350_v29 = vpop.eup %4349  ;;  %v3141_v5 = vadd.f32 %v3657_v2, %v3131_v23 }
0x1d25   :  { %v3120_v49 = vmul.f32 %v4350_v29, %v3108_v17  ;;  %v5375_v36 = vadd.f32 %v3657_v2, %v3128_v0  ;;  %v3673_v17 = vld [vmem:[%s5467_s13 + $0x1] ss:$0 sm:$0xff] }
0x1d27   :  { %v3142_v18 = vpack.c.bf16 %v3139_v48, %v5375_v36  ;;  %v3130_v12 = vmul.f32 %v3656_v6, %v3120_v49 }
0x1d29   :  { %4046 = vmatprep.mubr.msk.bf16.mxu1 %vm112_vm0, %v3142_v18  ;;  %v5379_v47 = vadd.f32 %v3657_v2, %v3130_v12 }
0x1d2b   :  { %v3143_v28 = vpack.c.bf16 %v3141_v5, %v5379_v47 }
0x1d2d   :  { %4047 = vmatmul.mubr.msk.bf16.vlgmr.msra.gmra.mrb[72].mxu1 %vm112_vm0, %v3143_v28 }
0x1d2e   :  { %4066 = vmatprep.mubr.msk.bf16.mxu1 %vm4467_vm1, %v4466_v10 }
0x1e00   :  { %v4048_v31 = vpop.f32.mrb[72].mxu1 }
0x1e01   :  { %v3218_v59 = vadd.f32 %v4048_v31, %v3659_v21  ;;  %v3209_v61 = vpop.f32.mrb[73].mxu1 }
0x1e02   :  { %v3210_v62 = vadd.f32 %v3659_v21, %v3209_v61  ;;  %v4049_v32 = vpop.f32.mrb[74].mxu1 }
0x1e03   :  { %v3226_v56 = vmul.f32 %v3218_v59, %v3218_v59  ;;  %v3221_v57 = vadd.f32 %v4049_v32, %v3659_v21  ;;  %v3212_v24 = vpop.f32.mrb[75].mxu1 }
0x1e04   :  { %v3224_v35 = vmul.f32 %v3210_v62, %v3210_v62  ;;  %v3213_v54 = vadd.f32 %v3659_v21, %v3212_v24 }
0x1e05   :  { %v3230_v44 = vmul.f32 %v3226_v56, %v3218_v59  ;;  %v3227_v46 = vmul.f32 %v3221_v57, %v3221_v57 }
0x1e06   :  { %v3228_v3 = vmul.f32 %v3224_v35, %v3210_v62  ;;  %v3225_v37 = vmul.f32 %v3213_v54, %v3213_v54 }
0x1e07   :  { %v3234_v39 = vmul.f32 0.044715, %v3230_v44  ;;  %v3231_v9 = vmul.f32 %v3227_v46, %v3221_v57 }
0x1e08   :  { %v3232_v45 = vmul.f32 0.044715, %v3228_v3  ;;  %v3229_v50 = vmul.f32 %v3225_v37, %v3213_v54 }
0x1e09   :  { %v3238_v34 = vadd.f32 %v3234_v39, %v3218_v59  ;;  %v3235_v51 = vmul.f32 0.044715, %v3231_v9 }
0x1e0a   :  { %v3236_v52 = vadd.f32 %v3232_v45, %v3210_v62  ;;  %v3233_v53 = vmul.f32 0.044715, %v3229_v50 }
0x1e0b   :  { %v3242_v55 = vmul.f32 0.7978846, %v3238_v34  ;;  %v3239_v58 = vadd.f32 %v3235_v51, %v3221_v57  ;;  %v3682_v51 = vld [vmem:[%s5468_s14 + $0x1] ss:$0 sm:$0xff] }
0x1e0c   :  { %v3240_v41 = vmul.f32 0.7978846, %v3236_v52  ;;  %v3237_v60 = vadd.f32 %v3233_v53, %v3213_v54 }
0x1e0d   :  { %4351 = vtanh.f32 %v3242_v55  ;;  %v3243_v63 = vmul.f32 0.7978846, %v3239_v58  ;;  %v3683_v58 = vld [vmem:[%s5469_s15 + $0x1] ss:$0 sm:$0xff] }
0x1e0e   :  { %4353 = vtanh.f32 %v3240_v41  ;;  %v3241_v4 = vmul.f32 0.7978846, %v3237_v60 }
0x1e0f   :  { %4355 = vtanh.f32 %v3243_v63 }
0x1e10   :  { %4357 = vtanh.f32 %v3241_v4 }
0x1e17   :  { %v4352_v19 = vpop.eup %4351 }
0x1e18   :  { %v4354_v7 = vpop.eup %4353  ;;  %v3250_v40 = vadd.f32 1.0, %v4352_v19 }
0x1e19   :  { %v4356_v8 = vpop.eup %4355  ;;  %v3248_v11 = vadd.f32 1.0, %v4354_v7 }
0x1e1a   :  { %v4358_v13 = vpop.eup %4357  ;;  %v3254_v25 = vmul.f32 0.5, %v3250_v40  ;;  %v3251_v22 = vadd.f32 1.0, %v4356_v8 }
0x1e1b   :  { %v3252_v14 = vmul.f32 0.5, %v3248_v11  ;;  %v3249_v6 = vadd.f32 1.0, %v4358_v13 }
0x1e1c   :  { %v3255_v1 = vmul.f32 0.5, %v3251_v22  ;;  %v3258_v27 = vmul.f32 %v3254_v25, %v3218_v59  ;;  %v4181_v22 = vld [vmem:[%s5472_s18] sm:$0xff]  }
0x1e1d   :  { %v3253_v15 = vmul.f32 0.5, %v3249_v6  ;;  %v3256_v43 = vmul.f32 %v3252_v14, %v3210_v62  ;;  %v4182_v14 = vld [vmem:[%s5472_s18 + $0x8] sm:$0xff]   ;;  %v3684_v6 = vld [vmem:[%s5471_s17] ss:$0 sm:$0xff]  ;;  %s4481_s18 = smov [#allocation8]  }
0x1e1e   :  { %v3259_v42 = vmul.f32 %v3255_v1, %v3221_v57  ;;  %s3562_s9 = sshll.u32 %s4481_s18, 4  ;;  %s3563_s9 = int_to_ptr.vmem [resolvable:$true] %s3562_s9 }
0x1e1f   :  { %v3257_v16 = vmul.f32 %v3253_v15, %v3213_v54  ;;  %s4433_s17 = scalar_lea.vmem %s3563_s9, 32  ;;  %p4438_p11 = scmp.lt.s32.totalorder %s3563_s9, %s3563_s9 }
0x1e20   :  { %v3261_v26 = vpack.c.bf16 %v3259_v42, %v3258_v27  ;;  %p4434_p10 = scmp.ne.s32.totalorder %s3563_s9, %s4433_s17  ;;  %p4439_p12 = scmp.lt.s32.totalorder %s4433_s17, %s4433_s17 }
0x1e21   :  { %v3260_v2 = vpack.c.bf16 %v3257_v16, %v3256_v43 }
0x1e22   :  { %p4440_p13 = por %p4439_p12, %p4438_p11 }
0x1e23   :  { %4058 = vmatprep.mubr.msk.bf16.mxu0 %vm1680_vm5, %v3260_v2 }
0x1e24   :  { %4059 = vmatmul.mubr.msk.bf16.vlgmr.msra.gmra.mrb[80].mxu0 %vm1680_vm5, %v3261_v26  ;;  %p4441_p0 = pnand %p4440_p13, %p4434_p10 }
0x1ef7   :  { %v4060_v0 = vpop.f32.mrb[80].mxu0 }
0x1ef8   :  { %v3351_v29 = vadd.f32 %v4060_v0, %v3673_v17  ;;  %v3343_v49 = vpop.f32.mrb[81].mxu0 }
0x1ef9   :  { %v3344_v48 = vadd.f32 %v3673_v17, %v3343_v49  ;;  %v4061_v23 = vpop.f32.mrb[82].mxu0 }
0x1efa   :  { %v3357_v18 = vadd.f32 %v3351_v29, %v5379_v47  ;;  %v3346_v12 = vpop.f32.mrb[83].mxu0  ;;  %v4179_v47 = vld [vmem:[%s5470_s16] sm:$0xff]  }
0x1efb   :  { %v3356_v5 = vadd.f32 %v3344_v48, %v5375_v36  ;;  %4063 = vmatpush3.bf16.msra.mxu1 %v4179_v47  ;;  %v4180_v36 = vld [vmem:[%s5470_s16 + $0x8] sm:$0xff]  }
0x1efc   :  { %v3365_v28 = vsel %vm112_vm0, %v3357_v18, 0.0  ;;  %v3371_v33 = vmul.f32 %v3357_v18, %v3357_v18  ;;  %4064 = vmatprep.subr.bf16.mxu1 %v4466_v10 }
0x1efd   :  { %3366 = vadd.xlane.f32.xlu0 %v3365_v28  ;;  %v3362_v38 = vsel %vm112_vm0, %v3356_v5, 0.0  ;;  %v3370_v30 = vmul.f32 %v3356_v5, %v3356_v5 }
0x1efe   :  { %3363 = vadd.xlane.f32.xlu1 %v3362_v38  ;;  %v3375_v20 = vsel %vm112_vm0, %v3371_v33, 0.0 }
0x1eff   :  { %v3372_v21 = vsel %vm112_vm0, %v3370_v30, 0.0  ;;  %4065 = vmatpush3.bf16.msra.mxu1 %v4180_v36 }
0x1f00   :  { %4070 = vmatprep.subr.bf16.mxu1 %v4466_v10 }
0x1f01   :  { %3376 = vadd.xlane.f32.xlu0 %v3375_v20 }
0x1f02   :  { %3373 = vadd.xlane.f32.xlu1 %v3372_v21 }
0x1f8a   :  { %v3367_v31 = vpop.xlane.xlu0 %3366 }
0x1f8b   :  { %v3369_v59 = vmul.f32 0.03125, %v3367_v31  ;;  %v3364_v61 = vpop.xlane.xlu1 %3363 }
0x1f8c   :  { %v3368_v62 = vmul.f32 0.03125, %v3364_v61 }
0x1f8d   :  { %v3381_v56 = vmul.f32 %v3369_v59, %v3369_v59  ;;  %v3387_v45 = vsub.f32 %v3357_v18, %v3369_v59 }
0x1f8e   :  { %v3377_v32 = vpop.xlane.xlu0 %3376  ;;  %v3380_v35 = vmul.f32 %v3368_v62, %v3368_v62  ;;  %v3386_v34 = vsub.f32 %v3356_v5, %v3368_v62 }
0x1f8f   :  { %v3379_v57 = vmul.f32 0.03125, %v3377_v32  ;;  %v3374_v24 = vpop.xlane.xlu1 %3373 }
0x1f90   :  { %v3378_v54 = vmul.f32 0.03125, %v3374_v24 }
0x1f91   :  { %v3383_v44 = vsub.f32 %v3379_v57, %v3381_v56 }
0x1f92   :  { %v3382_v46 = vsub.f32 %v3378_v54, %v3380_v35 }
0x1f93   :  { %v3385_v3 = vmax.f32 %v3383_v44, 0.0 }
0x1f94   :  { %v3384_v37 = vmax.f32 %v3382_v46, 0.0 }
0x1f95   :  { %v3389_v39 = vadd.f32 1e-12, %v3385_v3 }
0x1f96   :  { %v3388_v9 = vadd.f32 1e-12, %v3384_v37 }
0x1f97   :  { %4359 = vrsqrt.f32 %v3389_v39 }
0x1f98   :  { %4361 = vrsqrt.f32 %v3388_v9 }
0x1fa1   :  { %v4360_v50 = vpop.eup %4359 }
0x1fa2   :  { %v4362_v52 = vpop.eup %4361  ;;  %v3393_v53 = vmul.f32 %v4360_v50, %v3387_v45 }
0x1fa3   :  { %v3392_v55 = vmul.f32 %v4362_v52, %v3386_v34 }
0x1fa4   :  { %v3401_v41 = vmul.f32 %v3682_v51, %v3393_v53 }
0x1fa5   :  { %v3400_v60 = vmul.f32 %v3682_v51, %v3392_v55 }
0x1fa6   :  { %v3409_v63 = vadd.f32 %v3683_v58, %v3401_v41 }
0x1fa7   :  { %v3408_v4 = vadd.f32 %v3683_v58, %v3400_v60 }
0x1fa8   :  { %v3411_v19 = vpack.c.bf16 %v3409_v63, %v3409_v63 }
0x1fa9   :  { %v3410_v7 = vpack.c.bf16 %v3408_v4, %v3408_v4 }
0x1faa   :  { %v3426_v40 = vunpack.c.l.b16 %v3411_v19 }
0x1fab   :  { %v3425_v8 = vunpack.c.l.b16 %v3410_v7 }
0x1fac   :  { %v3427_v11 = vrot.slane %v3426_v40, 7 }
0x1fae   :  { %v3429_v13 = vsel %vm3428_vm6, %v3427_v11, %v3425_v8 }
0x1faf   :  { %v3430_v25 = vpack.c.b16 %v3429_v13, %v3429_v13 }
0x1fb1   :  { %4067 = vmatmul.mubr.msk.bf16.vlgmr.msra.gmra.mrb[76].mxu1 %vm112_vm0, %v3430_v25 }
0x1fb2   :  { %4074 = vmatprep.mubr.msk.bf16.mxu1 %vm4467_vm1, %v4466_v10  ;;  %4071 = vmatpush3.bf16.msra.mxu1 %v4181_v22 }
0x1fb3   :  { %4072 = vmatprep.subr.bf16.mxu1 %v4466_v10  ;;  %v3688_v10 = vld [vmem:[%s5473_s19] ss:$0 sm:$0xff] }
0x1fb6   :  { %4073 = vmatpush3.bf16.msra.mxu1 %v4182_v14 }
0x2084   :  { %v3480_v1 = vpop.f32.mrb[76].mxu1 }
0x2085   :  { %v3481_v15 = vadd.f32 %v3684_v6, %v3480_v1  ;;  %v4068_v27 = vpop.f32.mrb[77].mxu1 }
0x2086   :  { %v3483_v42 = vpop.f32.mrb[78].mxu1 }
0x2087   :  { %4363 = vtanh.f32 %v3481_v15  ;;  %v4069_v43 = vpop.f32.mrb[79].mxu1 }
0x2091   :  { %v4364_v16 = vpop.eup %4363 }
0x2092   :  { %v3487_v26 = vpack.c.bf16 %v4364_v16, %v4364_v16 }
0x2094   :  { %4075 = vmatmul.mubr.msk.bf16.vlgmr.msra.gmra.mrb[80].mxu1 %vm112_vm0, %v3487_v26 }
0x2167   :  { %v3548_v2 = vpop.f32.mrb[80].mxu1 }
0x2168   :  { %v3549_v17 = vadd.f32 %v3688_v10, %v3548_v2  ;;  %v4076_v0 = vpop.f32.mrb[81].mxu1 }
0x2169   :  { %v3551_v29 = vpop.f32.mrb[82].mxu1 }
0x216a   :  { %v4077_v49 = vpop.f32.mrb[83].mxu1  ;;  %3555 = vst.msk [vmem:[#allocation8] sm:$0x3] %vm3554_vm7, %v3549_v17 }
0x216b   :  { %4444 = shalt.err (!%p4441_p0)
}
0x216c   :  { %s4445_s19 = scalar_lea.hbm %s5474_s20, 32 }
0x216d   :  { %p4446_p1 = scmp.ne.s32.totalorder %s5474_s20, %s4445_s19  ;;  %p4449_p2 = scmp.lt.u32.totalorder %s4445_s19, %s5474_s20 }
0x216f   :  { %p4451_p3 = pnand %p4449_p2, %p4446_p1 }
0x2171   :  { %4454 = shalt.err (!%p4451_p3)
}
0x2172   :  { %3565 = dma.vmem_to_hbm [thread:$0]  %s3563_s9, 32, %s5474_s20, [#allocation4]  }
0x2173   :  { %4459 = dma.done.wait [#allocation4], 32  }
0x2174   :  { %4460 = vsyncadd [#allocation4], 4294967264 }
0x2175   :  { %3569 = vsyncpa [#allocation3], 1 }
0x2176   :  { %3570 = vsyncpa [#allocation6], 1 }
0x2177   :  { %3571 = vsyncpa [#allocation4], 1 }

</bundles_post_ra>
